<compile_context>
chip_gen: v7x
topology: tpu7x:2x2x1
jax: 0.10.0
libtpu: 0.0.40
codegen_flags: <defaults>
</compile_context>

<pallas_src>
import jax
import jax.numpy as jnp
from jax.experimental import pallas as pl
from jax.experimental.pallas import tpu as pltpu

# ---------------- scaled-down ViT-L/16 config ----------------
BATCH = 2
CHANNELS = 3
IMAGE = 32
PATCH = 16
HIDDEN = 256                     # ViT-L: 1024
HEADS = 2                        # ViT-L: 16
HEAD_DIM = HIDDEN // HEADS       # 128 (lane-aligned head slices; ViT-L: 64)
INTERMEDIATE = 4 * HIDDEN        # 1024 (ViT-L: 4096)
LAYERS = 2                       # ViT-L: 24
NUM_CLASSES = 10
CLS_PAD = 128                    # classifier output padded lane-dense
LN_EPS = 1e-12                   # HF ViT layer_norm_eps (≈0 at f32 resolution)
NUM_PATCHES = (IMAGE // PATCH) ** 2      # 4
SEQ = NUM_PATCHES + 1                    # CLS + patches = 5
SEQ_PAD = 8                              # sublane-friendly padded length
ATTN_SCALE = 1.0 / float(HEAD_DIM) ** 0.5


# ---------------- in-kernel helpers ----------------
def _layernorm(x, g, b):
    """x: (M, H) f32; g, b: (1, H) f32."""
    mean = jnp.mean(x, axis=-1, keepdims=True)
    var = jnp.mean(jnp.square(x - mean), axis=-1, keepdims=True)
    return (x - mean) * jax.lax.rsqrt(var + LN_EPS) * g + b


def _mm(a, w_bf16):
    """bf16 MXU matmul with f32 accumulation."""
    return jnp.dot(a.astype(jnp.bfloat16), w_bf16,
                   preferred_element_type=jnp.float32)


# ---------------- fused transformer-layer kernel ----------------
def _layer_kernel(x_ref, ln1_g_ref, ln1_b_ref, qkv_w_ref, qkv_b_ref,
                  ow_ref, ob_ref, ln2_g_ref, ln2_b_ref,
                  w1_ref, b1_ref, w2_ref, b2_ref, o_ref):
    # one batch element per grid step: x is (SEQ_PAD, HIDDEN)
    x = x_ref[...].astype(jnp.float32)

    # ---- self-attention block (pre-LN), fused QKV + per-head O-proj ----
    hn = _layernorm(x, ln1_g_ref[...], ln1_b_ref[...])
    qkv = _mm(hn, qkv_w_ref[...]) + qkv_b_ref[...]          # (SEQ_PAD, 3*HIDDEN)

    # additive key mask built in-kernel (padded key positions >= SEQ masked out)
    col = jax.lax.broadcasted_iota(jnp.int32, (SEQ_PAD, SEQ_PAD), 1)
    mask = jnp.where(col < SEQ, 0.0, -1e9).astype(jnp.float32)

    ow = ow_ref[...]                                        # (HIDDEN, HIDDEN) bf16
    attn = jnp.zeros((SEQ_PAD, HIDDEN), jnp.float32)
    for h in range(HEADS):                                  # static unroll
        lo = h * HEAD_DIM                                   # 128-aligned lane slices
        q = qkv[:, lo:lo + HEAD_DIM]
        k = qkv[:, HIDDEN + lo:HIDDEN + lo + HEAD_DIM]
        v = qkv[:, 2 * HIDDEN + lo:2 * HIDDEN + lo + HEAD_DIM]
        # contract last dims of q and k directly (no transpose materialization)
        s = jax.lax.dot_general(
            q.astype(jnp.bfloat16), k.astype(jnp.bfloat16),
            (((1,), (1,)), ((), ())),
            preferred_element_type=jnp.float32) * ATTN_SCALE + mask
        m = jnp.max(s, axis=-1, keepdims=True)
        e = jnp.exp(s - m)
        p = e * pl.reciprocal(jnp.sum(e, axis=-1, keepdims=True), approx=True)
        ctx = jnp.dot(p.astype(jnp.bfloat16), v.astype(jnp.bfloat16),
                      preferred_element_type=jnp.float32)   # (SEQ_PAD, HEAD_DIM)
        # accumulate the output projection head-by-head (avoids a lane concat)
        attn = attn + _mm(ctx, ow[lo:lo + HEAD_DIM, :])
    x1 = x + attn + ob_ref[...]

    # ---- MLP block (pre-LN), GELU fused as fc1 epilogue ----
    h2 = _layernorm(x1, ln2_g_ref[...], ln2_b_ref[...])
    m1 = _mm(h2, w1_ref[...]) + b1_ref[...]                 # (SEQ_PAD, INTERMEDIATE)
    # TODO(synk): HF ViT uses exact erf-GELU; tanh-approx GELU used here since
    # erf lowering inside Mosaic is not guaranteed (deviation ~1e-3).
    m1 = jax.nn.gelu(m1, approximate=True)
    y = _mm(m1, w2_ref[...]) + b2_ref[...]
    o_ref[...] = (x1 + y).astype(o_ref.dtype)


def transformer_layer(x2d, lp):
    """x2d: (BATCH*SEQ_PAD, HIDDEN) f32 -> same shape, one fused kernel call."""
    rows, _ = x2d.shape
    const2d = lambda b: (0, 0)
    in_specs = [
        pl.BlockSpec((SEQ_PAD, HIDDEN), lambda b: (b, 0)),          # x
        pl.BlockSpec((1, HIDDEN), const2d),                         # ln1_g
        pl.BlockSpec((1, HIDDEN), const2d),                         # ln1_b
        pl.BlockSpec((HIDDEN, 3 * HIDDEN), const2d),                # qkv_w
        pl.BlockSpec((1, 3 * HIDDEN), const2d),                     # qkv_b
        pl.BlockSpec((HIDDEN, HIDDEN), const2d),                    # o_w
        pl.BlockSpec((1, HIDDEN), const2d),                         # o_b
        pl.BlockSpec((1, HIDDEN), const2d),                         # ln2_g
        pl.BlockSpec((1, HIDDEN), const2d),                         # ln2_b
        pl.BlockSpec((HIDDEN, INTERMEDIATE), const2d),              # fc1_w
        pl.BlockSpec((1, INTERMEDIATE), const2d),                   # fc1_b
        pl.BlockSpec((INTERMEDIATE, HIDDEN), const2d),              # fc2_w
        pl.BlockSpec((1, HIDDEN), const2d),                         # fc2_b
    ]
    return pl.pallas_call(
        _layer_kernel,
        out_shape=jax.ShapeDtypeStruct((rows, HIDDEN), x2d.dtype),
        grid=(BATCH,),
        in_specs=in_specs,
        out_specs=pl.BlockSpec((SEQ_PAD, HIDDEN), lambda b: (b, 0)),
        compiler_params=pltpu.CompilerParams(
            dimension_semantics=("parallel",)),
    )(x2d,
      lp["ln1_g"].reshape(1, HIDDEN), lp["ln1_b"].reshape(1, HIDDEN),
      lp["qkv_w"], lp["qkv_b"].reshape(1, 3 * HIDDEN),
      lp["o_w"], lp["o_b"].reshape(1, HIDDEN),
      lp["ln2_g"].reshape(1, HIDDEN), lp["ln2_b"].reshape(1, HIDDEN),
      lp["fc1_w"], lp["fc1_b"].reshape(1, INTERMEDIATE),
      lp["fc2_w"], lp["fc2_b"].reshape(1, HIDDEN))


# ---------------- patch-embedding kernel ----------------
def _patch_embed_kernel(x_ref, w_ref, b_ref, o_ref):
    acc = _mm(x_ref[...], w_ref[...])
    o_ref[...] = (acc + b_ref[...]).astype(o_ref.dtype)


def patch_embed(patches2d, w, b):
    M, K = patches2d.shape
    N = w.shape[1]
    return pl.pallas_call(
        _patch_embed_kernel,
        out_shape=jax.ShapeDtypeStruct((M, N), jnp.float32),
        grid=(1,),
        in_specs=[pl.BlockSpec((M, K), lambda i: (0, 0)),
                  pl.BlockSpec((K, N), lambda i: (0, 0)),
                  pl.BlockSpec((1, N), lambda i: (0, 0))],
        out_specs=pl.BlockSpec((M, N), lambda i: (0, 0)),
    )(patches2d, w, b.reshape(1, N))


# ---------------- final LN + classifier head (lane-dense padded) ----------------
def _head_kernel(x_ref, g_ref, b_ref, w_ref, cb_ref, o_ref):
    x = x_ref[...].astype(jnp.float32)                      # (BATCH, HIDDEN)
    hn = _layernorm(x, g_ref[...], b_ref[...])
    logits = _mm(hn, w_ref[...]) + cb_ref[...]              # (BATCH, CLS_PAD)
    o_ref[...] = logits.astype(o_ref.dtype)


def classifier_head(cls_tok, g, b, w_pad, b_pad):
    B, H = cls_tok.shape
    out = pl.pallas_call(
        _head_kernel,
        out_shape=jax.ShapeDtypeStruct((B, CLS_PAD), jnp.float32),
        grid=(1,),
        in_specs=[pl.BlockSpec((B, H), lambda i: (0, 0)),
                  pl.BlockSpec((1, H), lambda i: (0, 0)),
                  pl.BlockSpec((1, H), lambda i: (0, 0)),
                  pl.BlockSpec((H, CLS_PAD), lambda i: (0, 0)),
                  pl.BlockSpec((1, CLS_PAD), lambda i: (0, 0))],
        out_specs=pl.BlockSpec((B, CLS_PAD), lambda i: (0, 0)),
    )(cls_tok, g.reshape(1, H), b.reshape(1, H), w_pad, b_pad.reshape(1, CLS_PAD))
    return out[:, :NUM_CLASSES]


# ---------------- deterministic parameter init ----------------
def init_params(key):
    keys = iter(jax.random.split(key, 4 + 4 * LAYERS))

    def w(shape, dtype=jnp.float32):
        return (jax.random.normal(next(keys), shape, jnp.float32) * 0.02).astype(dtype)

    zeros_h = jnp.zeros((HIDDEN,), jnp.float32)
    ones_h = jnp.ones((HIDDEN,), jnp.float32)

    cls_w = w((HIDDEN, NUM_CLASSES))
    cls_w_pad = (jnp.zeros((HIDDEN, CLS_PAD), jnp.float32)
                 .at[:, :NUM_CLASSES].set(cls_w).astype(jnp.bfloat16))

    params = {
        "patch_w": w((CHANNELS * PATCH * PATCH, HIDDEN), jnp.bfloat16),
        "patch_b": jnp.zeros((HIDDEN,), jnp.float32),
        "cls_token": w((1, 1, HIDDEN)),
        "pos_emb": w((1, SEQ, HIDDEN)),
        "final_ln_g": ones_h,
        "final_ln_b": zeros_h,
        "cls_w_pad": cls_w_pad,
        "cls_b_pad": jnp.zeros((CLS_PAD,), jnp.float32),
        "layers": [],
    }
    for _ in range(LAYERS):
        params["layers"].append({
            "ln1_g": ones_h, "ln1_b": zeros_h,
            "qkv_w": w((HIDDEN, 3 * HIDDEN), jnp.bfloat16),   # fused Q|K|V
            "qkv_b": jnp.zeros((3 * HIDDEN,), jnp.float32),
            "o_w": w((HIDDEN, HIDDEN), jnp.bfloat16), "o_b": zeros_h,
            "ln2_g": ones_h, "ln2_b": zeros_h,
            "fc1_w": w((HIDDEN, INTERMEDIATE), jnp.bfloat16),
            "fc1_b": jnp.zeros((INTERMEDIATE,), jnp.float32),
            "fc2_w": w((INTERMEDIATE, HIDDEN), jnp.bfloat16), "fc2_b": zeros_h,
        })
    return params


# ---------------- forward pass (ViTForImageClassification semantics) ----------------
def vit_forward(params, pixel_values):
    B, C, H, W = pixel_values.shape
    p = PATCH
    nh, nw = H // p, W // p

    # patch embedding: Conv2d(k=p, stride=p) == im2col (C, ph, pw order) @ W
    patches = pixel_values.reshape(B, C, nh, p, nw, p)
    patches = patches.transpose(0, 2, 4, 1, 3, 5).reshape(B * nh * nw, C * p * p)
    x = patch_embed(patches, params["patch_w"], params["patch_b"])
    x = x.reshape(B, nh * nw, HIDDEN)

    cls = jnp.broadcast_to(params["cls_token"], (B, 1, HIDDEN))
    x = jnp.concatenate([cls, x], axis=1) + params["pos_emb"]        # (B, SEQ, HIDDEN)

    # pad tokens to SEQ_PAD; padded rows carry garbage through the residual
    # stream but are masked out of attention keys and never read downstream
    # (only the CLS row feeds the classifier).
    x = jnp.pad(x, ((0, 0), (0, SEQ_PAD - SEQ), (0, 0)))
    x2d = x.reshape(B * SEQ_PAD, HIDDEN)

    for lp in params["layers"]:
        x2d = transformer_layer(x2d, lp)              # one fused kernel per layer

    x = x2d.reshape(B, SEQ_PAD, HIDDEN)
    cls_tok = x[:, 0, :]                              # (B, HIDDEN)
    logits = classifier_head(cls_tok, params["final_ln_g"], params["final_ln_b"],
                             params["cls_w_pad"], params["cls_b_pad"])
    return logits


if __name__ == "__main__":
    root = jax.random.PRNGKey(0)
    pkey, xkey = jax.random.split(root)
    params = init_params(pkey)
    pixel_values = jax.random.normal(xkey, (BATCH, CHANNELS, IMAGE, IMAGE), jnp.float32)

    logits = jax.jit(vit_forward)(params, pixel_values)
    jax.block_until_ready(logits)

    assert logits.shape == (BATCH, NUM_CLASSES), logits.shape
    assert bool(jnp.all(jnp.isfinite(logits)))
    print("KERNEL_OK")
</pallas_src>

<mosaic_0001>
module attributes {stable_mosaic.version = 11 : i64} {
  func.func @_patch_embed_kernel(%arg0: i32, %arg1: memref<8x768xf32, #tpu.memory_space<vmem>>, %arg2: memref<768x256xbf16, #tpu.memory_space<vmem>>, %arg3: memref<1x256xf32, #tpu.memory_space<vmem>>, %arg4: memref<8x256xf32, #tpu.memory_space<vmem>>) attributes {dimension_semantics = [#tpu.dimension_semantics<arbitrary>], iteration_bounds = array<i64: 1>, scalar_prefetch = 0 : i64, scratch_operands = 0 : i64, tpu.core_type = #tpu.core_type<tc>, window_params = [{pipeline_mode = #tpu.pipeline_mode<synchronous>, transform_indices = @transform_0, window_bounds = array<i64: 8, 768>}, {pipeline_mode = #tpu.pipeline_mode<synchronous>, transform_indices = @transform_1, window_bounds = array<i64: 768, 256>}, {pipeline_mode = #tpu.pipeline_mode<synchronous>, transform_indices = @transform_2, window_bounds = array<i64: 1, 256>}, {pipeline_mode = #tpu.pipeline_mode<synchronous>, transform_indices = @transform_3, window_bounds = array<i64: 8, 256>}]} {
    %c0 = arith.constant 0 : index
    %c0_0 = arith.constant 0 : index
    %0 = vector.load %arg1[%c0, %c0_0] : memref<8x768xf32, #tpu.memory_space<vmem>>, vector<8x768xf32>
    %c0_1 = arith.constant 0 : index
    %c0_2 = arith.constant 0 : index
    %1 = vector.load %arg2[%c0_1, %c0_2] : memref<768x256xbf16, #tpu.memory_space<vmem>>, vector<768x256xbf16>
    %2 = arith.truncf %0 : vector<8x768xf32> to vector<8x768xbf16>
    %cst = arith.constant dense<0.000000e+00> : vector<8x256xf32>
    %3 = tpu.matmul %2, %1, %cst {dimension_numbers = #tpu.dot_dimension_numbers<[1], [0], [0], [1], [0, 0, 1, 1], [], []>} : vector<8x768xbf16>, vector<768x256xbf16>, vector<8x256xf32> -> vector<8x256xf32>
    %c0_3 = arith.constant 0 : index
    %c0_4 = arith.constant 0 : index
    %4 = vector.load %arg3[%c0_3, %c0_4] : memref<1x256xf32, #tpu.memory_space<vmem>>, vector<1x256xf32>
    %5 = vector.broadcast %4 : vector<1x256xf32> to vector<8x256xf32>
    %6 = arith.addf %3, %5 : vector<8x256xf32>
    %c0_5 = arith.constant 0 : index
    %c0_6 = arith.constant 0 : index
    %7 = vector.load %arg4[%c0_5, %c0_6] : memref<8x256xf32, #tpu.memory_space<vmem>>, vector<8x256xf32>
    tpu.vector_store %arg4[%c0_5, %c0_6], %6 {strides = array<i32>} : memref<8x256xf32, #tpu.memory_space<vmem>>, vector<8x256xf32>,
    return
  }
  func.func @transform_0(%arg0: i32) -> (i32, i32) {
    %c0_i32 = arith.constant 0 : i32
    %c0_i32_0 = arith.constant 0 : i32
    %c0_i32_1 = arith.constant 0 : i32
    return %c0_i32, %c0_i32_0 : i32, i32
  }
  func.func @transform_1(%arg0: i32) -> (i32, i32) {
    %c0_i32 = arith.constant 0 : i32
    %c0_i32_0 = arith.constant 0 : i32
    %c0_i32_1 = arith.constant 0 : i32
    return %c0_i32, %c0_i32_0 : i32, i32
  }
  func.func @transform_2(%arg0: i32) -> (i32, i32) {
    %c0_i32 = arith.constant 0 : i32
    %c0_i32_0 = arith.constant 0 : i32
    %c0_i32_1 = arith.constant 0 : i32
    return %c0_i32, %c0_i32_0 : i32, i32
  }
  func.func @transform_3(%arg0: i32) -> (i32, i32) {
    %c0_i32 = arith.constant 0 : i32
    %c0_i32_0 = arith.constant 0 : i32
    %c0_i32_1 = arith.constant 0 : i32
    return %c0_i32, %c0_i32_0 : i32, i32
  }
}

module attributes {stable_mosaic.version = 11 : i64} {
  func.func @_layer_kernel(%arg0: i32, %arg1: memref<8x256xf32, #tpu.memory_space<vmem>>, %arg2: memref<1x256xf32, #tpu.memory_space<vmem>>, %arg3: memref<1x256xf32, #tpu.memory_space<vmem>>, %arg4: memref<256x768xbf16, #tpu.memory_space<vmem>>, %arg5: memref<1x768xf32, #tpu.memory_space<vmem>>, %arg6: memref<256x256xbf16, #tpu.memory_space<vmem>>, %arg7: memref<1x256xf32, #tpu.memory_space<vmem>>, %arg8: memref<1x256xf32, #tpu.memory_space<vmem>>, %arg9: memref<1x256xf32, #tpu.memory_space<vmem>>, %arg10: memref<256x1024xbf16, #tpu.memory_space<vmem>>, %arg11: memref<1x1024xf32, #tpu.memory_space<vmem>>, %arg12: memref<1024x256xbf16, #tpu.memory_space<vmem>>, %arg13: memref<1x256xf32, #tpu.memory_space<vmem>>, %arg14: memref<8x256xf32, #tpu.memory_space<vmem>>) attributes {dimension_semantics = [#tpu.dimension_semantics<parallel>], iteration_bounds = array<i64: 2>, scalar_prefetch = 0 : i64, scratch_operands = 0 : i64, tpu.core_type = #tpu.core_type<tc>, window_params = [{transform_indices = @transform_0, window_bounds = array<i64: 8, 256>}, {pipeline_mode = #tpu.pipeline_mode<synchronous>, transform_indices = @transform_1, window_bounds = array<i64: 1, 256>}, {pipeline_mode = #tpu.pipeline_mode<synchronous>, transform_indices = @transform_2, window_bounds = array<i64: 1, 256>}, {pipeline_mode = #tpu.pipeline_mode<synchronous>, transform_indices = @transform_3, window_bounds = array<i64: 256, 768>}, {pipeline_mode = #tpu.pipeline_mode<synchronous>, transform_indices = @transform_4, window_bounds = array<i64: 1, 768>}, {pipeline_mode = #tpu.pipeline_mode<synchronous>, transform_indices = @transform_5, window_bounds = array<i64: 256, 256>}, {pipeline_mode = #tpu.pipeline_mode<synchronous>, transform_indices = @transform_6, window_bounds = array<i64: 1, 256>}, {pipeline_mode = #tpu.pipeline_mode<synchronous>, transform_indices = @transform_7, window_bounds = array<i64: 1, 256>}, {pipeline_mode = #tpu.pipeline_mode<synchronous>, transform_indices = @transform_8, window_bounds = array<i64: 1, 256>}, {pipeline_mode = #tpu.pipeline_mode<synchronous>, transform_indices = @transform_9, window_bounds = array<i64: 256, 1024>}, {pipeline_mode = #tpu.pipeline_mode<synchronous>, transform_indices = @transform_10, window_bounds = array<i64: 1, 1024>}, {pipeline_mode = #tpu.pipeline_mode<synchronous>, transform_indices = @transform_11, window_bounds = array<i64: 1024, 256>}, {pipeline_mode = #tpu.pipeline_mode<synchronous>, transform_indices = @transform_12, window_bounds = array<i64: 1, 256>}, {transform_indices = @transform_13, window_bounds = array<i64: 8, 256>}]} {
    %c0 = arith.constant 0 : index
    %c0_0 = arith.constant 0 : index
    %0 = vector.load %arg1[%c0, %c0_0] : memref<8x256xf32, #tpu.memory_space<vmem>>, vector<8x256xf32>
    %c0_1 = arith.constant 0 : index
    %c0_2 = arith.constant 0 : index
    %1 = vector.load %arg2[%c0_1, %c0_2] : memref<1x256xf32, #tpu.memory_space<vmem>>, vector<1x256xf32>
    %c0_3 = arith.constant 0 : index
    %c0_4 = arith.constant 0 : index
    %2 = vector.load %arg3[%c0_3, %c0_4] : memref<1x256xf32, #tpu.memory_space<vmem>>, vector<1x256xf32>
    %cst = arith.constant dense<0.000000e+00> : vector<8xf32>
    %3 = vector.multi_reduction <add>, %0, %cst [1] : vector<8x256xf32> to vector<8xf32>
    %4 = vector.shape_cast %3 : vector<8xf32> to vector<8x1xf32>
    %cst_5 = arith.constant 2.560000e+02 : f32
    %5 = vector.broadcast %cst_5 : f32 to vector<8x1xf32>
    %6 = arith.divf %4, %5 : vector<8x1xf32>
    %7 = vector.broadcast %6 : vector<8x1xf32> to vector<8x256xf32>
    %8 = arith.subf %0, %7 : vector<8x256xf32>
    %9 = arith.mulf %8, %8 : vector<8x256xf32>
    %cst_6 = arith.constant dense<0.000000e+00> : vector<8xf32>
    %10 = vector.multi_reduction <add>, %9, %cst_6 [1] : vector<8x256xf32> to vector<8xf32>
    %11 = vector.shape_cast %10 : vector<8xf32> to vector<8x1xf32>
    %cst_7 = arith.constant 2.560000e+02 : f32
    %12 = vector.broadcast %cst_7 : f32 to vector<8x1xf32>
    %13 = arith.divf %11, %12 : vector<8x1xf32>
    %14 = vector.broadcast %6 : vector<8x1xf32> to vector<8x256xf32>
    %15 = arith.subf %0, %14 : vector<8x256xf32>
    %cst_8 = arith.constant 9.99999996E-13 : f32
    %16 = vector.broadcast %cst_8 : f32 to vector<8x1xf32>
    %17 = arith.addf %13, %16 : vector<8x1xf32>
    %18 = math.rsqrt %17 : vector<8x1xf32>
    %19 = vector.broadcast %18 : vector<8x1xf32> to vector<8x256xf32>
    %20 = arith.mulf %15, %19 : vector<8x256xf32>
    %21 = vector.broadcast %1 : vector<1x256xf32> to vector<8x256xf32>
    %22 = arith.mulf %20, %21 : vector<8x256xf32>
    %23 = vector.broadcast %2 : vector<1x256xf32> to vector<8x256xf32>
    %24 = arith.addf %22, %23 : vector<8x256xf32>
    %c0_9 = arith.constant 0 : index
    %c0_10 = arith.constant 0 : index
    %25 = vector.load %arg4[%c0_9, %c0_10] : memref<256x768xbf16, #tpu.memory_space<vmem>>, vector<256x768xbf16>
    %26 = arith.truncf %24 : vector<8x256xf32> to vector<8x256xbf16>
    %cst_11 = arith.constant dense<0.000000e+00> : vector<8x768xf32>
    %27 = tpu.matmul %26, %25, %cst_11 {dimension_numbers = #tpu.dot_dimension_numbers<[1], [0], [0], [1], [0, 0, 1, 1], [], []>} : vector<8x256xbf16>, vector<256x768xbf16>, vector<8x768xf32> -> vector<8x768xf32>
    %c0_12 = arith.constant 0 : index
    %c0_13 = arith.constant 0 : index
    %28 = vector.load %arg5[%c0_12, %c0_13] : memref<1x768xf32, #tpu.memory_space<vmem>>, vector<1x768xf32>
    %29 = vector.broadcast %28 : vector<1x768xf32> to vector<8x768xf32>
    %30 = arith.addf %27, %29 : vector<8x768xf32>
    %31 = tpu.iota {dimensions = array<i32: 1>} : vector<8x8xi32>
    %c5_i32 = arith.constant 5 : i32
    %32 = vector.broadcast %c5_i32 : i32 to vector<8x8xi32>
    %33 = arith.cmpi slt, %31, %32 : vector<8x8xi32>
    %cst_14 = arith.constant 0.000000e+00 : f32
    %cst_15 = arith.constant -1.000000e+09 : f32
    %34 = vector.broadcast %cst_14 : f32 to vector<8x8xf32>
    %35 = vector.broadcast %cst_15 : f32 to vector<8x8xf32>
    %36 = arith.select %33, %34, %35 : vector<8x8xi1>, vector<8x8xf32>
    %c0_16 = arith.constant 0 : index
    %c0_17 = arith.constant 0 : index
    %37 = vector.load %arg6[%c0_16, %c0_17] : memref<256x256xbf16, #tpu.memory_space<vmem>>, vector<256x256xbf16>
    %cst_18 = arith.constant 0.000000e+00 : f32
    %38 = vector.broadcast %cst_18 : f32 to vector<8x256xf32>
    %39 = vector.extract_strided_slice %30 {offsets = [0, 0], sizes = [8, 128], strides = [1, 1]} : vector<8x768xf32> to vector<8x128xf32>
    %40 = vector.extract_strided_slice %30 {offsets = [0, 256], sizes = [8, 128], strides = [1, 1]} : vector<8x768xf32> to vector<8x128xf32>
    %41 = vector.extract_strided_slice %30 {offsets = [0, 512], sizes = [8, 128], strides = [1, 1]} : vector<8x768xf32> to vector<8x128xf32>
    %42 = arith.truncf %39 : vector<8x128xf32> to vector<8x128xbf16>
    %43 = arith.truncf %40 : vector<8x128xf32> to vector<8x128xbf16>
    %cst_19 = arith.constant dense<0.000000e+00> : vector<8x8xf32>
    %44 = tpu.matmul %42, %43, %cst_19 {dimension_numbers = #tpu.dot_dimension_numbers<[1], [1], [0], [0], [0, 0, 1, 0], [], []>} : vector<8x128xbf16>, vector<8x128xbf16>, vector<8x8xf32> -> vector<8x8xf32>
    %cst_20 = arith.constant 0.0883883461 : f32
    %45 = vector.broadcast %cst_20 : f32 to vector<8x8xf32>
    %46 = arith.mulf %44, %45 : vector<8x8xf32>
    %47 = arith.addf %46, %36 : vector<8x8xf32>
    %cst_21 = arith.constant dense<0xFF800000> : vector<8xf32>
    %48 = vector.multi_reduction <maximumf>, %47, %cst_21 [1] : vector<8x8xf32> to vector<8xf32>
    %49 = vector.shape_cast %48 : vector<8xf32> to vector<8x1xf32>
    %50 = vector.broadcast %49 : vector<8x1xf32> to vector<8x8xf32>
    %51 = arith.subf %47, %50 : vector<8x8xf32>
    %52 = math.exp %51 : vector<8x8xf32>
    %cst_22 = arith.constant dense<0.000000e+00> : vector<8xf32>
    %53 = vector.multi_reduction <add>, %52, %cst_22 [1] : vector<8x8xf32> to vector<8xf32>
    %54 = vector.shape_cast %53 : vector<8xf32> to vector<8x1xf32>
    %55 = tpu.reciprocal %54 {approx = true} : vector<8x1xf32> -> vector<8x1xf32>
    %56 = vector.broadcast %55 : vector<8x1xf32> to vector<8x8xf32>
    %57 = arith.mulf %52, %56 : vector<8x8xf32>
    %58 = arith.truncf %57 : vector<8x8xf32> to vector<8x8xbf16>
    %59 = arith.truncf %41 : vector<8x128xf32> to vector<8x128xbf16>
    %cst_23 = arith.constant dense<0.000000e+00> : vector<8x128xf32>
    %60 = tpu.matmul %58, %59, %cst_23 {dimension_numbers = #tpu.dot_dimension_numbers<[1], [0], [0], [1], [0, 0, 1, 1], [], []>} : vector<8x8xbf16>, vector<8x128xbf16>, vector<8x128xf32> -> vector<8x128xf32>
    %61 = vector.extract_strided_slice %37 {offsets = [0, 0], sizes = [128, 256], strides = [1, 1]} : vector<256x256xbf16> to vector<128x256xbf16>
    %62 = arith.truncf %60 : vector<8x128xf32> to vector<8x128xbf16>
    %cst_24 = arith.constant dense<0.000000e+00> : vector<8x256xf32>
    %63 = tpu.matmul %62, %61, %cst_24 {dimension_numbers = #tpu.dot_dimension_numbers<[1], [0], [0], [1], [0, 0, 1, 1], [], []>} : vector<8x128xbf16>, vector<128x256xbf16>, vector<8x256xf32> -> vector<8x256xf32>
    %64 = arith.addf %38, %63 : vector<8x256xf32>
    %65 = vector.extract_strided_slice %30 {offsets = [0, 128], sizes = [8, 128], strides = [1, 1]} : vector<8x768xf32> to vector<8x128xf32>
    %66 = vector.extract_strided_slice %30 {offsets = [0, 384], sizes = [8, 128], strides = [1, 1]} : vector<8x768xf32> to vector<8x128xf32>
    %67 = vector.extract_strided_slice %30 {offsets = [0, 640], sizes = [8, 128], strides = [1, 1]} : vector<8x768xf32> to vector<8x128xf32>
    %68 = arith.truncf %65 : vector<8x128xf32> to vector<8x128xbf16>
    %69 = arith.truncf %66 : vector<8x128xf32> to vector<8x128xbf16>
    %cst_25 = arith.constant dense<0.000000e+00> : vector<8x8xf32>
    %70 = tpu.matmul %68, %69, %cst_25 {dimension_numbers = #tpu.dot_dimension_numbers<[1], [1], [0], [0], [0, 0, 1, 0], [], []>} : vector<8x128xbf16>, vector<8x128xbf16>, vector<8x8xf32> -> vector<8x8xf32>
    %cst_26 = arith.constant 0.0883883461 : f32
    %71 = vector.broadcast %cst_26 : f32 to vector<8x8xf32>
    %72 = arith.mulf %70, %71 : vector<8x8xf32>
    %73 = arith.addf %72, %36 : vector<8x8xf32>
    %cst_27 = arith.constant dense<0xFF800000> : vector<8xf32>
    %74 = vector.multi_reduction <maximumf>, %73, %cst_27 [1] : vector<8x8xf32> to vector<8xf32>
    %75 = vector.shape_cast %74 : vector<8xf32> to vector<8x1xf32>
    %76 = vector.broadcast %75 : vector<8x1xf32> to vector<8x8xf32>
    %77 = arith.subf %73, %76 : vector<8x8xf32>
    %78 = math.exp %77 : vector<8x8xf32>
    %cst_28 = arith.constant dense<0.000000e+00> : vector<8xf32>
    %79 = vector.multi_reduction <add>, %78, %cst_28 [1] : vector<8x8xf32> to vector<8xf32>
    %80 = vector.shape_cast %79 : vector<8xf32> to vector<8x1xf32>
    %81 = tpu.reciprocal %80 {approx = true} : vector<8x1xf32> -> vector<8x1xf32>
    %82 = vector.broadcast %81 : vector<8x1xf32> to vector<8x8xf32>
    %83 = arith.mulf %78, %82 : vector<8x8xf32>
    %84 = arith.truncf %83 : vector<8x8xf32> to vector<8x8xbf16>
    %85 = arith.truncf %67 : vector<8x128xf32> to vector<8x128xbf16>
    %cst_29 = arith.constant dense<0.000000e+00> : vector<8x128xf32>
    %86 = tpu.matmul %84, %85, %cst_29 {dimension_numbers = #tpu.dot_dimension_numbers<[1], [0], [0], [1], [0, 0, 1, 1], [], []>} : vector<8x8xbf16>, vector<8x128xbf16>, vector<8x128xf32> -> vector<8x128xf32>
    %87 = vector.extract_strided_slice %37 {offsets = [128, 0], sizes = [128, 256], strides = [1, 1]} : vector<256x256xbf16> to vector<128x256xbf16>
    %88 = arith.truncf %86 : vector<8x128xf32> to vector<8x128xbf16>
    %cst_30 = arith.constant dense<0.000000e+00> : vector<8x256xf32>
    %89 = tpu.matmul %88, %87, %cst_30 {dimension_numbers = #tpu.dot_dimension_numbers<[1], [0], [0], [1], [0, 0, 1, 1], [], []>} : vector<8x128xbf16>, vector<128x256xbf16>, vector<8x256xf32> -> vector<8x256xf32>
    %90 = arith.addf %64, %89 : vector<8x256xf32>
    %91 = arith.addf %0, %90 : vector<8x256xf32>
    %c0_31 = arith.constant 0 : index
    %c0_32 = arith.constant 0 : index
    %92 = vector.load %arg7[%c0_31, %c0_32] : memref<1x256xf32, #tpu.memory_space<vmem>>, vector<1x256xf32>
    %93 = vector.broadcast %92 : vector<1x256xf32> to vector<8x256xf32>
    %94 = arith.addf %91, %93 : vector<8x256xf32>
    %c0_33 = arith.constant 0 : index
    %c0_34 = arith.constant 0 : index
    %95 = vector.load %arg8[%c0_33, %c0_34] : memref<1x256xf32, #tpu.memory_space<vmem>>, vector<1x256xf32>
    %c0_35 = arith.constant 0 : index
    %c0_36 = arith.constant 0 : index
    %96 = vector.load %arg9[%c0_35, %c0_36] : memref<1x256xf32, #tpu.memory_space<vmem>>, vector<1x256xf32>
    %cst_37 = arith.constant dense<0.000000e+00> : vector<8xf32>
    %97 = vector.multi_reduction <add>, %94, %cst_37 [1] : vector<8x256xf32> to vector<8xf32>
    %98 = vector.shape_cast %97 : vector<8xf32> to vector<8x1xf32>
    %cst_38 = arith.constant 2.560000e+02 : f32
    %99 = vector.broadcast %cst_38 : f32 to vector<8x1xf32>
    %100 = arith.divf %98, %99 : vector<8x1xf32>
    %101 = vector.broadcast %100 : vector<8x1xf32> to vector<8x256xf32>
    %102 = arith.subf %94, %101 : vector<8x256xf32>
    %103 = arith.mulf %102, %102 : vector<8x256xf32>
    %cst_39 = arith.constant dense<0.000000e+00> : vector<8xf32>
    %104 = vector.multi_reduction <add>, %103, %cst_39 [1] : vector<8x256xf32> to vector<8xf32>
    %105 = vector.shape_cast %104 : vector<8xf32> to vector<8x1xf32>
    %cst_40 = arith.constant 2.560000e+02 : f32
    %106 = vector.broadcast %cst_40 : f32 to vector<8x1xf32>
    %107 = arith.divf %105, %106 : vector<8x1xf32>
    %108 = vector.broadcast %100 : vector<8x1xf32> to vector<8x256xf32>
    %109 = arith.subf %94, %108 : vector<8x256xf32>
    %cst_41 = arith.constant 9.99999996E-13 : f32
    %110 = vector.broadcast %cst_41 : f32 to vector<8x1xf32>
    %111 = arith.addf %107, %110 : vector<8x1xf32>
    %112 = math.rsqrt %111 : vector<8x1xf32>
    %113 = vector.broadcast %112 : vector<8x1xf32> to vector<8x256xf32>
    %114 = arith.mulf %109, %113 : vector<8x256xf32>
    %115 = vector.broadcast %95 : vector<1x256xf32> to vector<8x256xf32>
    %116 = arith.mulf %114, %115 : vector<8x256xf32>
    %117 = vector.broadcast %96 : vector<1x256xf32> to vector<8x256xf32>
    %118 = arith.addf %116, %117 : vector<8x256xf32>
    %c0_42 = arith.constant 0 : index
    %c0_43 = arith.constant 0 : index
    %119 = vector.load %arg10[%c0_42, %c0_43] : memref<256x1024xbf16, #tpu.memory_space<vmem>>, vector<256x1024xbf16>
    %120 = arith.truncf %118 : vector<8x256xf32> to vector<8x256xbf16>
    %cst_44 = arith.constant dense<0.000000e+00> : vector<8x1024xf32>
    %121 = tpu.matmul %120, %119, %cst_44 {dimension_numbers = #tpu.dot_dimension_numbers<[1], [0], [0], [1], [0, 0, 1, 1], [], []>} : vector<8x256xbf16>, vector<256x1024xbf16>, vector<8x1024xf32> -> vector<8x1024xf32>
    %c0_45 = arith.constant 0 : index
    %c0_46 = arith.constant 0 : index
    %122 = vector.load %arg11[%c0_45, %c0_46] : memref<1x1024xf32, #tpu.memory_space<vmem>>, vector<1x1024xf32>
    %123 = vector.broadcast %122 : vector<1x1024xf32> to vector<8x1024xf32>
    %124 = arith.addf %121, %123 : vector<8x1024xf32>
    %125 = arith.mulf %124, %124 : vector<8x1024xf32>
    %126 = arith.mulf %124, %125 : vector<8x1024xf32>
    %cst_47 = arith.constant 4.471500e-02 : f32
    %127 = vector.broadcast %cst_47 : f32 to vector<8x1024xf32>
    %128 = arith.mulf %127, %126 : vector<8x1024xf32>
    %129 = arith.addf %124, %128 : vector<8x1024xf32>
    %cst_48 = arith.constant 0.797884583 : f32
    %130 = vector.broadcast %cst_48 : f32 to vector<8x1024xf32>
    %131 = arith.mulf %130, %129 : vector<8x1024xf32>
    %132 = math.tanh %131 : vector<8x1024xf32>
    %cst_49 = arith.constant 1.000000e+00 : f32
    %133 = vector.broadcast %cst_49 : f32 to vector<8x1024xf32>
    %134 = arith.addf %133, %132 : vector<8x1024xf32>
    %cst_50 = arith.constant 5.000000e-01 : f32
    %135 = vector.broadcast %cst_50 : f32 to vector<8x1024xf32>
    %136 = arith.mulf %135, %134 : vector<8x1024xf32>
    %137 = arith.mulf %124, %136 : vector<8x1024xf32>
    %c0_51 = arith.constant 0 : index
    %c0_52 = arith.constant 0 : index
    %138 = vector.load %arg12[%c0_51, %c0_52] : memref<1024x256xbf16, #tpu.memory_space<vmem>>, vector<1024x256xbf16>
    %139 = arith.truncf %137 : vector<8x1024xf32> to vector<8x1024xbf16>
    %cst_53 = arith.constant dense<0.000000e+00> : vector<8x256xf32>
    %140 = tpu.matmul %139, %138, %cst_53 {dimension_numbers = #tpu.dot_dimension_numbers<[1], [0], [0], [1], [0, 0, 1, 1], [], []>} : vector<8x1024xbf16>, vector<1024x256xbf16>, vector<8x256xf32> -> vector<8x256xf32>
    %c0_54 = arith.constant 0 : index
    %c0_55 = arith.constant 0 : index
    %141 = vector.load %arg13[%c0_54, %c0_55] : memref<1x256xf32, #tpu.memory_space<vmem>>, vector<1x256xf32>
    %142 = vector.broadcast %141 : vector<1x256xf32> to vector<8x256xf32>
    %143 = arith.addf %140, %142 : vector<8x256xf32>
    %144 = arith.addf %94, %143 : vector<8x256xf32>
    %c0_56 = arith.constant 0 : index
    %c0_57 = arith.constant 0 : index
    %145 = vector.load %arg14[%c0_56, %c0_57] : memref<8x256xf32, #tpu.memory_space<vmem>>, vector<8x256xf32>
    tpu.vector_store %arg14[%c0_56, %c0_57], %144 {strides = array<i32>} : memref<8x256xf32, #tpu.memory_space<vmem>>, vector<8x256xf32>,
    return
  }
  func.func @transform_0(%arg0: i32) -> (i32, i32) {
    %c0_i32 = arith.constant 0 : i32
    %c0_i32_0 = arith.constant 0 : i32
    return %arg0, %c0_i32 : i32, i32
  }
  func.func @transform_1(%arg0: i32) -> (i32, i32) {
    %c0_i32 = arith.constant 0 : i32
    %c0_i32_0 = arith.constant 0 : i32
    %c0_i32_1 = arith.constant 0 : i32
    return %c0_i32, %c0_i32_0 : i32, i32
  }
  func.func @transform_2(%arg0: i32) -> (i32, i32) {
    %c0_i32 = arith.constant 0 : i32
    %c0_i32_0 = arith.constant 0 : i32
    %c0_i32_1 = arith.constant 0 : i32
    return %c0_i32, %c0_i32_0 : i32, i32
  }
  func.func @transform_3(%arg0: i32) -> (i32, i32) {
    %c0_i32 = arith.constant 0 : i32
    %c0_i32_0 = arith.constant 0 : i32
    %c0_i32_1 = arith.constant 0 : i32
    return %c0_i32, %c0_i32_0 : i32, i32
  }
  func.func @transform_4(%arg0: i32) -> (i32, i32) {
    %c0_i32 = arith.constant 0 : i32
    %c0_i32_0 = arith.constant 0 : i32
    %c0_i32_1 = arith.constant 0 : i32
    return %c0_i32, %c0_i32_0 : i32, i32
  }
  func.func @transform_5(%arg0: i32) -> (i32, i32) {
    %c0_i32 = arith.constant 0 : i32
    %c0_i32_0 = arith.constant 0 : i32
    %c0_i32_1 = arith.constant 0 : i32
    return %c0_i32, %c0_i32_0 : i32, i32
  }
  func.func @transform_6(%arg0: i32) -> (i32, i32) {
    %c0_i32 = arith.constant 0 : i32
    %c0_i32_0 = arith.constant 0 : i32
    %c0_i32_1 = arith.constant 0 : i32
    return %c0_i32, %c0_i32_0 : i32, i32
  }
  func.func @transform_7(%arg0: i32) -> (i32, i32) {
    %c0_i32 = arith.constant 0 : i32
    %c0_i32_0 = arith.constant 0 : i32
    %c0_i32_1 = arith.constant 0 : i32
    return %c0_i32, %c0_i32_0 : i32, i32
  }
  func.func @transform_8(%arg0: i32) -> (i32, i32) {
    %c0_i32 = arith.constant 0 : i32
    %c0_i32_0 = arith.constant 0 : i32
    %c0_i32_1 = arith.constant 0 : i32
    return %c0_i32, %c0_i32_0 : i32, i32
  }
  func.func @transform_9(%arg0: i32) -> (i32, i32) {
    %c0_i32 = arith.constant 0 : i32
    %c0_i32_0 = arith.constant 0 : i32
    %c0_i32_1 = arith.constant 0 : i32
    return %c0_i32, %c0_i32_0 : i32, i32
  }
  func.func @transform_10(%arg0: i32) -> (i32, i32) {
    %c0_i32 = arith.constant 0 : i32
    %c0_i32_0 = arith.constant 0 : i32
    %c0_i32_1 = arith.constant 0 : i32
    return %c0_i32, %c0_i32_0 : i32, i32
  }
  func.func @transform_11(%arg0: i32) -> (i32, i32) {
    %c0_i32 = arith.constant 0 : i32
    %c0_i32_0 = arith.constant 0 : i32
    %c0_i32_1 = arith.constant 0 : i32
    return %c0_i32, %c0_i32_0 : i32, i32
  }
  func.func @transform_12(%arg0: i32) -> (i32, i32) {
    %c0_i32 = arith.constant 0 : i32
    %c0_i32_0 = arith.constant 0 : i32
    %c0_i32_1 = arith.constant 0 : i32
    return %c0_i32, %c0_i32_0 : i32, i32
  }
  func.func @transform_13(%arg0: i32) -> (i32, i32) {
    %c0_i32 = arith.constant 0 : i32
    %c0_i32_0 = arith.constant 0 : i32
    return %arg0, %c0_i32 : i32, i32
  }
}

module attributes {stable_mosaic.version = 11 : i64} {
  func.func @_layer_kernel(%arg0: i32, %arg1: memref<8x256xf32, #tpu.memory_space<vmem>>, %arg2: memref<1x256xf32, #tpu.memory_space<vmem>>, %arg3: memref<1x256xf32, #tpu.memory_space<vmem>>, %arg4: memref<256x768xbf16, #tpu.memory_space<vmem>>, %arg5: memref<1x768xf32, #tpu.memory_space<vmem>>, %arg6: memref<256x256xbf16, #tpu.memory_space<vmem>>, %arg7: memref<1x256xf32, #tpu.memory_space<vmem>>, %arg8: memref<1x256xf32, #tpu.memory_space<vmem>>, %arg9: memref<1x256xf32, #tpu.memory_space<vmem>>, %arg10: memref<256x1024xbf16, #tpu.memory_space<vmem>>, %arg11: memref<1x1024xf32, #tpu.memory_space<vmem>>, %arg12: memref<1024x256xbf16, #tpu.memory_space<vmem>>, %arg13: memref<1x256xf32, #tpu.memory_space<vmem>>, %arg14: memref<8x256xf32, #tpu.memory_space<vmem>>) attributes {dimension_semantics = [#tpu.dimension_semantics<parallel>], iteration_bounds = array<i64: 2>, scalar_prefetch = 0 : i64, scratch_operands = 0 : i64, tpu.core_type = #tpu.core_type<tc>, window_params = [{transform_indices = @transform_0, window_bounds = array<i64: 8, 256>}, {pipeline_mode = #tpu.pipeline_mode<synchronous>, transform_indices = @transform_1, window_bounds = array<i64: 1, 256>}, {pipeline_mode = #tpu.pipeline_mode<synchronous>, transform_indices = @transform_2, window_bounds = array<i64: 1, 256>}, {pipeline_mode = #tpu.pipeline_mode<synchronous>, transform_indices = @transform_3, window_bounds = array<i64: 256, 768>}, {pipeline_mode = #tpu.pipeline_mode<synchronous>, transform_indices = @transform_4, window_bounds = array<i64: 1, 768>}, {pipeline_mode = #tpu.pipeline_mode<synchronous>, transform_indices = @transform_5, window_bounds = array<i64: 256, 256>}, {pipeline_mode = #tpu.pipeline_mode<synchronous>, transform_indices = @transform_6, window_bounds = array<i64: 1, 256>}, {pipeline_mode = #tpu.pipeline_mode<synchronous>, transform_indices = @transform_7, window_bounds = array<i64: 1, 256>}, {pipeline_mode = #tpu.pipeline_mode<synchronous>, transform_indices = @transform_8, window_bounds = array<i64: 1, 256>}, {pipeline_mode = #tpu.pipeline_mode<synchronous>, transform_indices = @transform_9, window_bounds = array<i64: 256, 1024>}, {pipeline_mode = #tpu.pipeline_mode<synchronous>, transform_indices = @transform_10, window_bounds = array<i64: 1, 1024>}, {pipeline_mode = #tpu.pipeline_mode<synchronous>, transform_indices = @transform_11, window_bounds = array<i64: 1024, 256>}, {pipeline_mode = #tpu.pipeline_mode<synchronous>, transform_indices = @transform_12, window_bounds = array<i64: 1, 256>}, {transform_indices = @transform_13, window_bounds = array<i64: 8, 256>}]} {
    %c0 = arith.constant 0 : index
    %c0_0 = arith.constant 0 : index
    %0 = vector.load %arg1[%c0, %c0_0] : memref<8x256xf32, #tpu.memory_space<vmem>>, vector<8x256xf32>
    %c0_1 = arith.constant 0 : index
    %c0_2 = arith.constant 0 : index
    %1 = vector.load %arg2[%c0_1, %c0_2] : memref<1x256xf32, #tpu.memory_space<vmem>>, vector<1x256xf32>
    %c0_3 = arith.constant 0 : index
    %c0_4 = arith.constant 0 : index
    %2 = vector.load %arg3[%c0_3, %c0_4] : memref<1x256xf32, #tpu.memory_space<vmem>>, vector<1x256xf32>
    %cst = arith.constant dense<0.000000e+00> : vector<8xf32>
    %3 = vector.multi_reduction <add>, %0, %cst [1] : vector<8x256xf32> to vector<8xf32>
    %4 = vector.shape_cast %3 : vector<8xf32> to vector<8x1xf32>
    %cst_5 = arith.constant 2.560000e+02 : f32
    %5 = vector.broadcast %cst_5 : f32 to vector<8x1xf32>
    %6 = arith.divf %4, %5 : vector<8x1xf32>
    %7 = vector.broadcast %6 : vector<8x1xf32> to vector<8x256xf32>
    %8 = arith.subf %0, %7 : vector<8x256xf32>
    %9 = arith.mulf %8, %8 : vector<8x256xf32>
    %cst_6 = arith.constant dense<0.000000e+00> : vector<8xf32>
    %10 = vector.multi_reduction <add>, %9, %cst_6 [1] : vector<8x256xf32> to vector<8xf32>
    %11 = vector.shape_cast %10 : vector<8xf32> to vector<8x1xf32>
    %cst_7 = arith.constant 2.560000e+02 : f32
    %12 = vector.broadcast %cst_7 : f32 to vector<8x1xf32>
    %13 = arith.divf %11, %12 : vector<8x1xf32>
    %14 = vector.broadcast %6 : vector<8x1xf32> to vector<8x256xf32>
    %15 = arith.subf %0, %14 : vector<8x256xf32>
    %cst_8 = arith.constant 9.99999996E-13 : f32
    %16 = vector.broadcast %cst_8 : f32 to vector<8x1xf32>
    %17 = arith.addf %13, %16 : vector<8x1xf32>
    %18 = math.rsqrt %17 : vector<8x1xf32>
    %19 = vector.broadcast %18 : vector<8x1xf32> to vector<8x256xf32>
    %20 = arith.mulf %15, %19 : vector<8x256xf32>
    %21 = vector.broadcast %1 : vector<1x256xf32> to vector<8x256xf32>
    %22 = arith.mulf %20, %21 : vector<8x256xf32>
    %23 = vector.broadcast %2 : vector<1x256xf32> to vector<8x256xf32>
    %24 = arith.addf %22, %23 : vector<8x256xf32>
    %c0_9 = arith.constant 0 : index
    %c0_10 = arith.constant 0 : index
    %25 = vector.load %arg4[%c0_9, %c0_10] : memref<256x768xbf16, #tpu.memory_space<vmem>>, vector<256x768xbf16>
    %26 = arith.truncf %24 : vector<8x256xf32> to vector<8x256xbf16>
    %cst_11 = arith.constant dense<0.000000e+00> : vector<8x768xf32>
    %27 = tpu.matmul %26, %25, %cst_11 {dimension_numbers = #tpu.dot_dimension_numbers<[1], [0], [0], [1], [0, 0, 1, 1], [], []>} : vector<8x256xbf16>, vector<256x768xbf16>, vector<8x768xf32> -> vector<8x768xf32>
    %c0_12 = arith.constant 0 : index
    %c0_13 = arith.constant 0 : index
    %28 = vector.load %arg5[%c0_12, %c0_13] : memref<1x768xf32, #tpu.memory_space<vmem>>, vector<1x768xf32>
    %29 = vector.broadcast %28 : vector<1x768xf32> to vector<8x768xf32>
    %30 = arith.addf %27, %29 : vector<8x768xf32>
    %31 = tpu.iota {dimensions = array<i32: 1>} : vector<8x8xi32>
    %c5_i32 = arith.constant 5 : i32
    %32 = vector.broadcast %c5_i32 : i32 to vector<8x8xi32>
    %33 = arith.cmpi slt, %31, %32 : vector<8x8xi32>
    %cst_14 = arith.constant 0.000000e+00 : f32
    %cst_15 = arith.constant -1.000000e+09 : f32
    %34 = vector.broadcast %cst_14 : f32 to vector<8x8xf32>
    %35 = vector.broadcast %cst_15 : f32 to vector<8x8xf32>
    %36 = arith.select %33, %34, %35 : vector<8x8xi1>, vector<8x8xf32>
    %c0_16 = arith.constant 0 : index
    %c0_17 = arith.constant 0 : index
    %37 = vector.load %arg6[%c0_16, %c0_17] : memref<256x256xbf16, #tpu.memory_space<vmem>>, vector<256x256xbf16>
    %cst_18 = arith.constant 0.000000e+00 : f32
    %38 = vector.broadcast %cst_18 : f32 to vector<8x256xf32>
    %39 = vector.extract_strided_slice %30 {offsets = [0, 0], sizes = [8, 128], strides = [1, 1]} : vector<8x768xf32> to vector<8x128xf32>
    %40 = vector.extract_strided_slice %30 {offsets = [0, 256], sizes = [8, 128], strides = [1, 1]} : vector<8x768xf32> to vector<8x128xf32>
    %41 = vector.extract_strided_slice %30 {offsets = [0, 512], sizes = [8, 128], strides = [1, 1]} : vector<8x768xf32> to vector<8x128xf32>
    %42 = arith.truncf %39 : vector<8x128xf32> to vector<8x128xbf16>
    %43 = arith.truncf %40 : vector<8x128xf32> to vector<8x128xbf16>
    %cst_19 = arith.constant dense<0.000000e+00> : vector<8x8xf32>
    %44 = tpu.matmul %42, %43, %cst_19 {dimension_numbers = #tpu.dot_dimension_numbers<[1], [1], [0], [0], [0, 0, 1, 0], [], []>} : vector<8x128xbf16>, vector<8x128xbf16>, vector<8x8xf32> -> vector<8x8xf32>
    %cst_20 = arith.constant 0.0883883461 : f32
    %45 = vector.broadcast %cst_20 : f32 to vector<8x8xf32>
    %46 = arith.mulf %44, %45 : vector<8x8xf32>
    %47 = arith.addf %46, %36 : vector<8x8xf32>
    %cst_21 = arith.constant dense<0xFF800000> : vector<8xf32>
    %48 = vector.multi_reduction <maximumf>, %47, %cst_21 [1] : vector<8x8xf32> to vector<8xf32>
    %49 = vector.shape_cast %48 : vector<8xf32> to vector<8x1xf32>
    %50 = vector.broadcast %49 : vector<8x1xf32> to vector<8x8xf32>
    %51 = arith.subf %47, %50 : vector<8x8xf32>
    %52 = math.exp %51 : vector<8x8xf32>
    %cst_22 = arith.constant dense<0.000000e+00> : vector<8xf32>
    %53 = vector.multi_reduction <add>, %52, %cst_22 [1] : vector<8x8xf32> to vector<8xf32>
    %54 = vector.shape_cast %53 : vector<8xf32> to vector<8x1xf32>
    %55 = tpu.reciprocal %54 {approx = true} : vector<8x1xf32> -> vector<8x1xf32>
    %56 = vector.broadcast %55 : vector<8x1xf32> to vector<8x8xf32>
    %57 = arith.mulf %52, %56 : vector<8x8xf32>
    %58 = arith.truncf %57 : vector<8x8xf32> to vector<8x8xbf16>
    %59 = arith.truncf %41 : vector<8x128xf32> to vector<8x128xbf16>
    %cst_23 = arith.constant dense<0.000000e+00> : vector<8x128xf32>
    %60 = tpu.matmul %58, %59, %cst_23 {dimension_numbers = #tpu.dot_dimension_numbers<[1], [0], [0], [1], [0, 0, 1, 1], [], []>} : vector<8x8xbf16>, vector<8x128xbf16>, vector<8x128xf32> -> vector<8x128xf32>
    %61 = vector.extract_strided_slice %37 {offsets = [0, 0], sizes = [128, 256], strides = [1, 1]} : vector<256x256xbf16> to vector<128x256xbf16>
    %62 = arith.truncf %60 : vector<8x128xf32> to vector<8x128xbf16>
    %cst_24 = arith.constant dense<0.000000e+00> : vector<8x256xf32>
    %63 = tpu.matmul %62, %61, %cst_24 {dimension_numbers = #tpu.dot_dimension_numbers<[1], [0], [0], [1], [0, 0, 1, 1], [], []>} : vector<8x128xbf16>, vector<128x256xbf16>, vector<8x256xf32> -> vector<8x256xf32>
    %64 = arith.addf %38, %63 : vector<8x256xf32>
    %65 = vector.extract_strided_slice %30 {offsets = [0, 128], sizes = [8, 128], strides = [1, 1]} : vector<8x768xf32> to vector<8x128xf32>
    %66 = vector.extract_strided_slice %30 {offsets = [0, 384], sizes = [8, 128], strides = [1, 1]} : vector<8x768xf32> to vector<8x128xf32>
    %67 = vector.extract_strided_slice %30 {offsets = [0, 640], sizes = [8, 128], strides = [1, 1]} : vector<8x768xf32> to vector<8x128xf32>
    %68 = arith.truncf %65 : vector<8x128xf32> to vector<8x128xbf16>
    %69 = arith.truncf %66 : vector<8x128xf32> to vector<8x128xbf16>
    %cst_25 = arith.constant dense<0.000000e+00> : vector<8x8xf32>
    %70 = tpu.matmul %68, %69, %cst_25 {dimension_numbers = #tpu.dot_dimension_numbers<[1], [1], [0], [0], [0, 0, 1, 0], [], []>} : vector<8x128xbf16>, vector<8x128xbf16>, vector<8x8xf32> -> vector<8x8xf32>
    %cst_26 = arith.constant 0.0883883461 : f32
    %71 = vector.broadcast %cst_26 : f32 to vector<8x8xf32>
    %72 = arith.mulf %70, %71 : vector<8x8xf32>
    %73 = arith.addf %72, %36 : vector<8x8xf32>
    %cst_27 = arith.constant dense<0xFF800000> : vector<8xf32>
    %74 = vector.multi_reduction <maximumf>, %73, %cst_27 [1] : vector<8x8xf32> to vector<8xf32>
    %75 = vector.shape_cast %74 : vector<8xf32> to vector<8x1xf32>
    %76 = vector.broadcast %75 : vector<8x1xf32> to vector<8x8xf32>
    %77 = arith.subf %73, %76 : vector<8x8xf32>
    %78 = math.exp %77 : vector<8x8xf32>
    %cst_28 = arith.constant dense<0.000000e+00> : vector<8xf32>
    %79 = vector.multi_reduction <add>, %78, %cst_28 [1] : vector<8x8xf32> to vector<8xf32>
    %80 = vector.shape_cast %79 : vector<8xf32> to vector<8x1xf32>
    %81 = tpu.reciprocal %80 {approx = true} : vector<8x1xf32> -> vector<8x1xf32>
    %82 = vector.broadcast %81 : vector<8x1xf32> to vector<8x8xf32>
    %83 = arith.mulf %78, %82 : vector<8x8xf32>
    %84 = arith.truncf %83 : vector<8x8xf32> to vector<8x8xbf16>
    %85 = arith.truncf %67 : vector<8x128xf32> to vector<8x128xbf16>
    %cst_29 = arith.constant dense<0.000000e+00> : vector<8x128xf32>
    %86 = tpu.matmul %84, %85, %cst_29 {dimension_numbers = #tpu.dot_dimension_numbers<[1], [0], [0], [1], [0, 0, 1, 1], [], []>} : vector<8x8xbf16>, vector<8x128xbf16>, vector<8x128xf32> -> vector<8x128xf32>
    %87 = vector.extract_strided_slice %37 {offsets = [128, 0], sizes = [128, 256], strides = [1, 1]} : vector<256x256xbf16> to vector<128x256xbf16>
    %88 = arith.truncf %86 : vector<8x128xf32> to vector<8x128xbf16>
    %cst_30 = arith.constant dense<0.000000e+00> : vector<8x256xf32>
    %89 = tpu.matmul %88, %87, %cst_30 {dimension_numbers = #tpu.dot_dimension_numbers<[1], [0], [0], [1], [0, 0, 1, 1], [], []>} : vector<8x128xbf16>, vector<128x256xbf16>, vector<8x256xf32> -> vector<8x256xf32>
    %90 = arith.addf %64, %89 : vector<8x256xf32>
    %91 = arith.addf %0, %90 : vector<8x256xf32>
    %c0_31 = arith.constant 0 : index
    %c0_32 = arith.constant 0 : index
    %92 = vector.load %arg7[%c0_31, %c0_32] : memref<1x256xf32, #tpu.memory_space<vmem>>, vector<1x256xf32>
    %93 = vector.broadcast %92 : vector<1x256xf32> to vector<8x256xf32>
    %94 = arith.addf %91, %93 : vector<8x256xf32>
    %c0_33 = arith.constant 0 : index
    %c0_34 = arith.constant 0 : index
    %95 = vector.load %arg8[%c0_33, %c0_34] : memref<1x256xf32, #tpu.memory_space<vmem>>, vector<1x256xf32>
    %c0_35 = arith.constant 0 : index
    %c0_36 = arith.constant 0 : index
    %96 = vector.load %arg9[%c0_35, %c0_36] : memref<1x256xf32, #tpu.memory_space<vmem>>, vector<1x256xf32>
    %cst_37 = arith.constant dense<0.000000e+00> : vector<8xf32>
    %97 = vector.multi_reduction <add>, %94, %cst_37 [1] : vector<8x256xf32> to vector<8xf32>
    %98 = vector.shape_cast %97 : vector<8xf32> to vector<8x1xf32>
    %cst_38 = arith.constant 2.560000e+02 : f32
    %99 = vector.broadcast %cst_38 : f32 to vector<8x1xf32>
    %100 = arith.divf %98, %99 : vector<8x1xf32>
    %101 = vector.broadcast %100 : vector<8x1xf32> to vector<8x256xf32>
    %102 = arith.subf %94, %101 : vector<8x256xf32>
    %103 = arith.mulf %102, %102 : vector<8x256xf32>
    %cst_39 = arith.constant dense<0.000000e+00> : vector<8xf32>
    %104 = vector.multi_reduction <add>, %103, %cst_39 [1] : vector<8x256xf32> to vector<8xf32>
    %105 = vector.shape_cast %104 : vector<8xf32> to vector<8x1xf32>
    %cst_40 = arith.constant 2.560000e+02 : f32
    %106 = vector.broadcast %cst_40 : f32 to vector<8x1xf32>
    %107 = arith.divf %105, %106 : vector<8x1xf32>
    %108 = vector.broadcast %100 : vector<8x1xf32> to vector<8x256xf32>
    %109 = arith.subf %94, %108 : vector<8x256xf32>
    %cst_41 = arith.constant 9.99999996E-13 : f32
    %110 = vector.broadcast %cst_41 : f32 to vector<8x1xf32>
    %111 = arith.addf %107, %110 : vector<8x1xf32>
    %112 = math.rsqrt %111 : vector<8x1xf32>
    %113 = vector.broadcast %112 : vector<8x1xf32> to vector<8x256xf32>
    %114 = arith.mulf %109, %113 : vector<8x256xf32>
    %115 = vector.broadcast %95 : vector<1x256xf32> to vector<8x256xf32>
    %116 = arith.mulf %114, %115 : vector<8x256xf32>
    %117 = vector.broadcast %96 : vector<1x256xf32> to vector<8x256xf32>
    %118 = arith.addf %116, %117 : vector<8x256xf32>
    %c0_42 = arith.constant 0 : index
    %c0_43 = arith.constant 0 : index
    %119 = vector.load %arg10[%c0_42, %c0_43] : memref<256x1024xbf16, #tpu.memory_space<vmem>>, vector<256x1024xbf16>
    %120 = arith.truncf %118 : vector<8x256xf32> to vector<8x256xbf16>
    %cst_44 = arith.constant dense<0.000000e+00> : vector<8x1024xf32>
    %121 = tpu.matmul %120, %119, %cst_44 {dimension_numbers = #tpu.dot_dimension_numbers<[1], [0], [0], [1], [0, 0, 1, 1], [], []>} : vector<8x256xbf16>, vector<256x1024xbf16>, vector<8x1024xf32> -> vector<8x1024xf32>
    %c0_45 = arith.constant 0 : index
    %c0_46 = arith.constant 0 : index
    %122 = vector.load %arg11[%c0_45, %c0_46] : memref<1x1024xf32, #tpu.memory_space<vmem>>, vector<1x1024xf32>
    %123 = vector.broadcast %122 : vector<1x1024xf32> to vector<8x1024xf32>
    %124 = arith.addf %121, %123 : vector<8x1024xf32>
    %125 = arith.mulf %124, %124 : vector<8x1024xf32>
    %126 = arith.mulf %124, %125 : vector<8x1024xf32>
    %cst_47 = arith.constant 4.471500e-02 : f32
    %127 = vector.broadcast %cst_47 : f32 to vector<8x1024xf32>
    %128 = arith.mulf %127, %126 : vector<8x1024xf32>
    %129 = arith.addf %124, %128 : vector<8x1024xf32>
    %cst_48 = arith.constant 0.797884583 : f32
    %130 = vector.broadcast %cst_48 : f32 to vector<8x1024xf32>
    %131 = arith.mulf %130, %129 : vector<8x1024xf32>
    %132 = math.tanh %131 : vector<8x1024xf32>
    %cst_49 = arith.constant 1.000000e+00 : f32
    %133 = vector.broadcast %cst_49 : f32 to vector<8x1024xf32>
    %134 = arith.addf %133, %132 : vector<8x1024xf32>
    %cst_50 = arith.constant 5.000000e-01 : f32
    %135 = vector.broadcast %cst_50 : f32 to vector<8x1024xf32>
    %136 = arith.mulf %135, %134 : vector<8x1024xf32>
    %137 = arith.mulf %124, %136 : vector<8x1024xf32>
    %c0_51 = arith.constant 0 : index
    %c0_52 = arith.constant 0 : index
    %138 = vector.load %arg12[%c0_51, %c0_52] : memref<1024x256xbf16, #tpu.memory_space<vmem>>, vector<1024x256xbf16>
    %139 = arith.truncf %137 : vector<8x1024xf32> to vector<8x1024xbf16>
    %cst_53 = arith.constant dense<0.000000e+00> : vector<8x256xf32>
    %140 = tpu.matmul %139, %138, %cst_53 {dimension_numbers = #tpu.dot_dimension_numbers<[1], [0], [0], [1], [0, 0, 1, 1], [], []>} : vector<8x1024xbf16>, vector<1024x256xbf16>, vector<8x256xf32> -> vector<8x256xf32>
    %c0_54 = arith.constant 0 : index
    %c0_55 = arith.constant 0 : index
    %141 = vector.load %arg13[%c0_54, %c0_55] : memref<1x256xf32, #tpu.memory_space<vmem>>, vector<1x256xf32>
    %142 = vector.broadcast %141 : vector<1x256xf32> to vector<8x256xf32>
    %143 = arith.addf %140, %142 : vector<8x256xf32>
    %144 = arith.addf %94, %143 : vector<8x256xf32>
    %c0_56 = arith.constant 0 : index
    %c0_57 = arith.constant 0 : index
    %145 = vector.load %arg14[%c0_56, %c0_57] : memref<8x256xf32, #tpu.memory_space<vmem>>, vector<8x256xf32>
    tpu.vector_store %arg14[%c0_56, %c0_57], %144 {strides = array<i32>} : memref<8x256xf32, #tpu.memory_space<vmem>>, vector<8x256xf32>,
    return
  }
  func.func @transform_0(%arg0: i32) -> (i32, i32) {
    %c0_i32 = arith.constant 0 : i32
    %c0_i32_0 = arith.constant 0 : i32
    return %arg0, %c0_i32 : i32, i32
  }
  func.func @transform_1(%arg0: i32) -> (i32, i32) {
    %c0_i32 = arith.constant 0 : i32
    %c0_i32_0 = arith.constant 0 : i32
    %c0_i32_1 = arith.constant 0 : i32
    return %c0_i32, %c0_i32_0 : i32, i32
  }
  func.func @transform_2(%arg0: i32) -> (i32, i32) {
    %c0_i32 = arith.constant 0 : i32
    %c0_i32_0 = arith.constant 0 : i32
    %c0_i32_1 = arith.constant 0 : i32
    return %c0_i32, %c0_i32_0 : i32, i32
  }
  func.func @transform_3(%arg0: i32) -> (i32, i32) {
    %c0_i32 = arith.constant 0 : i32
    %c0_i32_0 = arith.constant 0 : i32
    %c0_i32_1 = arith.constant 0 : i32
    return %c0_i32, %c0_i32_0 : i32, i32
  }
  func.func @transform_4(%arg0: i32) -> (i32, i32) {
    %c0_i32 = arith.constant 0 : i32
    %c0_i32_0 = arith.constant 0 : i32
    %c0_i32_1 = arith.constant 0 : i32
    return %c0_i32, %c0_i32_0 : i32, i32
  }
  func.func @transform_5(%arg0: i32) -> (i32, i32) {
    %c0_i32 = arith.constant 0 : i32
    %c0_i32_0 = arith.constant 0 : i32
    %c0_i32_1 = arith.constant 0 : i32
    return %c0_i32, %c0_i32_0 : i32, i32
  }
  func.func @transform_6(%arg0: i32) -> (i32, i32) {
    %c0_i32 = arith.constant 0 : i32
    %c0_i32_0 = arith.constant 0 : i32
    %c0_i32_1 = arith.constant 0 : i32
    return %c0_i32, %c0_i32_0 : i32, i32
  }
  func.func @transform_7(%arg0: i32) -> (i32, i32) {
    %c0_i32 = arith.constant 0 : i32
    %c0_i32_0 = arith.constant 0 : i32
    %c0_i32_1 = arith.constant 0 : i32
    return %c0_i32, %c0_i32_0 : i32, i32
  }
  func.func @transform_8(%arg0: i32) -> (i32, i32) {
    %c0_i32 = arith.constant 0 : i32
    %c0_i32_0 = arith.constant 0 : i32
    %c0_i32_1 = arith.constant 0 : i32
    return %c0_i32, %c0_i32_0 : i32, i32
  }
  func.func @transform_9(%arg0: i32) -> (i32, i32) {
    %c0_i32 = arith.constant 0 : i32
    %c0_i32_0 = arith.constant 0 : i32
    %c0_i32_1 = arith.constant 0 : i32
    return %c0_i32, %c0_i32_0 : i32, i32
  }
  func.func @transform_10(%arg0: i32) -> (i32, i32) {
    %c0_i32 = arith.constant 0 : i32
    %c0_i32_0 = arith.constant 0 : i32
    %c0_i32_1 = arith.constant 0 : i32
    return %c0_i32, %c0_i32_0 : i32, i32
  }
  func.func @transform_11(%arg0: i32) -> (i32, i32) {
    %c0_i32 = arith.constant 0 : i32
    %c0_i32_0 = arith.constant 0 : i32
    %c0_i32_1 = arith.constant 0 : i32
    return %c0_i32, %c0_i32_0 : i32, i32
  }
  func.func @transform_12(%arg0: i32) -> (i32, i32) {
    %c0_i32 = arith.constant 0 : i32
    %c0_i32_0 = arith.constant 0 : i32
    %c0_i32_1 = arith.constant 0 : i32
    return %c0_i32, %c0_i32_0 : i32, i32
  }
  func.func @transform_13(%arg0: i32) -> (i32, i32) {
    %c0_i32 = arith.constant 0 : i32
    %c0_i32_0 = arith.constant 0 : i32
    return %arg0, %c0_i32 : i32, i32
  }
}

module attributes {stable_mosaic.version = 11 : i64} {
  func.func @_head_kernel(%arg0: i32, %arg1: memref<2x256xf32, #tpu.memory_space<vmem>>, %arg2: memref<1x256xf32, #tpu.memory_space<vmem>>, %arg3: memref<1x256xf32, #tpu.memory_space<vmem>>, %arg4: memref<256x128xbf16, #tpu.memory_space<vmem>>, %arg5: memref<1x128xf32, #tpu.memory_space<vmem>>, %arg6: memref<2x128xf32, #tpu.memory_space<vmem>>) attributes {dimension_semantics = [#tpu.dimension_semantics<arbitrary>], iteration_bounds = array<i64: 1>, scalar_prefetch = 0 : i64, scratch_operands = 0 : i64, tpu.core_type = #tpu.core_type<tc>, window_params = [{pipeline_mode = #tpu.pipeline_mode<synchronous>, transform_indices = @transform_0, window_bounds = array<i64: 2, 256>}, {pipeline_mode = #tpu.pipeline_mode<synchronous>, transform_indices = @transform_1, window_bounds = array<i64: 1, 256>}, {pipeline_mode = #tpu.pipeline_mode<synchronous>, transform_indices = @transform_2, window_bounds = array<i64: 1, 256>}, {pipeline_mode = #tpu.pipeline_mode<synchronous>, transform_indices = @transform_3, window_bounds = array<i64: 256, 128>}, {pipeline_mode = #tpu.pipeline_mode<synchronous>, transform_indices = @transform_4, window_bounds = array<i64: 1, 128>}, {pipeline_mode = #tpu.pipeline_mode<synchronous>, transform_indices = @transform_5, window_bounds = array<i64: 2, 128>}]} {
    %c0 = arith.constant 0 : index
    %c0_0 = arith.constant 0 : index
    %0 = vector.load %arg1[%c0, %c0_0] : memref<2x256xf32, #tpu.memory_space<vmem>>, vector<2x256xf32>
    %c0_1 = arith.constant 0 : index
    %c0_2 = arith.constant 0 : index
    %1 = vector.load %arg2[%c0_1, %c0_2] : memref<1x256xf32, #tpu.memory_space<vmem>>, vector<1x256xf32>
    %c0_3 = arith.constant 0 : index
    %c0_4 = arith.constant 0 : index
    %2 = vector.load %arg3[%c0_3, %c0_4] : memref<1x256xf32, #tpu.memory_space<vmem>>, vector<1x256xf32>
    %cst = arith.constant dense<0.000000e+00> : vector<2xf32>
    %3 = vector.multi_reduction <add>, %0, %cst [1] : vector<2x256xf32> to vector<2xf32>
    %4 = vector.shape_cast %3 : vector<2xf32> to vector<2x1xf32>
    %cst_5 = arith.constant 2.560000e+02 : f32
    %5 = vector.broadcast %cst_5 : f32 to vector<2x1xf32>
    %6 = arith.divf %4, %5 : vector<2x1xf32>
    %7 = vector.broadcast %6 : vector<2x1xf32> to vector<2x256xf32>
    %8 = arith.subf %0, %7 : vector<2x256xf32>
    %9 = arith.mulf %8, %8 : vector<2x256xf32>
    %cst_6 = arith.constant dense<0.000000e+00> : vector<2xf32>
    %10 = vector.multi_reduction <add>, %9, %cst_6 [1] : vector<2x256xf32> to vector<2xf32>
    %11 = vector.shape_cast %10 : vector<2xf32> to vector<2x1xf32>
    %cst_7 = arith.constant 2.560000e+02 : f32
    %12 = vector.broadcast %cst_7 : f32 to vector<2x1xf32>
    %13 = arith.divf %11, %12 : vector<2x1xf32>
    %14 = vector.broadcast %6 : vector<2x1xf32> to vector<2x256xf32>
    %15 = arith.subf %0, %14 : vector<2x256xf32>
    %cst_8 = arith.constant 9.99999996E-13 : f32
    %16 = vector.broadcast %cst_8 : f32 to vector<2x1xf32>
    %17 = arith.addf %13, %16 : vector<2x1xf32>
    %18 = math.rsqrt %17 : vector<2x1xf32>
    %19 = vector.broadcast %18 : vector<2x1xf32> to vector<2x256xf32>
    %20 = arith.mulf %15, %19 : vector<2x256xf32>
    %21 = vector.broadcast %1 : vector<1x256xf32> to vector<2x256xf32>
    %22 = arith.mulf %20, %21 : vector<2x256xf32>
    %23 = vector.broadcast %2 : vector<1x256xf32> to vector<2x256xf32>
    %24 = arith.addf %22, %23 : vector<2x256xf32>
    %c0_9 = arith.constant 0 : index
    %c0_10 = arith.constant 0 : index
    %25 = vector.load %arg4[%c0_9, %c0_10] : memref<256x128xbf16, #tpu.memory_space<vmem>>, vector<256x128xbf16>
    %26 = arith.truncf %24 : vector<2x256xf32> to vector<2x256xbf16>
    %cst_11 = arith.constant dense<0.000000e+00> : vector<2x128xf32>
    %27 = tpu.matmul %26, %25, %cst_11 {dimension_numbers = #tpu.dot_dimension_numbers<[1], [0], [0], [1], [0, 0, 1, 1], [], []>} : vector<2x256xbf16>, vector<256x128xbf16>, vector<2x128xf32> -> vector<2x128xf32>
    %c0_12 = arith.constant 0 : index
    %c0_13 = arith.constant 0 : index
    %28 = vector.load %arg5[%c0_12, %c0_13] : memref<1x128xf32, #tpu.memory_space<vmem>>, vector<1x128xf32>
    %29 = vector.broadcast %28 : vector<1x128xf32> to vector<2x128xf32>
    %30 = arith.addf %27, %29 : vector<2x128xf32>
    %c0_14 = arith.constant 0 : index
    %c0_15 = arith.constant 0 : index
    %31 = vector.load %arg6[%c0_14, %c0_15] : memref<2x128xf32, #tpu.memory_space<vmem>>, vector<2x128xf32>
    tpu.vector_store %arg6[%c0_14, %c0_15], %30 {strides = array<i32>} : memref<2x128xf32, #tpu.memory_space<vmem>>, vector<2x128xf32>,
    return
  }
  func.func @transform_0(%arg0: i32) -> (i32, i32) {
    %c0_i32 = arith.constant 0 : i32
    %c0_i32_0 = arith.constant 0 : i32
    %c0_i32_1 = arith.constant 0 : i32
    return %c0_i32, %c0_i32_0 : i32, i32
  }
  func.func @transform_1(%arg0: i32) -> (i32, i32) {
    %c0_i32 = arith.constant 0 : i32
    %c0_i32_0 = arith.constant 0 : i32
    %c0_i32_1 = arith.constant 0 : i32
    return %c0_i32, %c0_i32_0 : i32, i32
  }
  func.func @transform_2(%arg0: i32) -> (i32, i32) {
    %c0_i32 = arith.constant 0 : i32
    %c0_i32_0 = arith.constant 0 : i32
    %c0_i32_1 = arith.constant 0 : i32
    return %c0_i32, %c0_i32_0 : i32, i32
  }
  func.func @transform_3(%arg0: i32) -> (i32, i32) {
    %c0_i32 = arith.constant 0 : i32
    %c0_i32_0 = arith.constant 0 : i32
    %c0_i32_1 = arith.constant 0 : i32
    return %c0_i32, %c0_i32_0 : i32, i32
  }
  func.func @transform_4(%arg0: i32) -> (i32, i32) {
    %c0_i32 = arith.constant 0 : i32
    %c0_i32_0 = arith.constant 0 : i32
    %c0_i32_1 = arith.constant 0 : i32
    return %c0_i32, %c0_i32_0 : i32, i32
  }
  func.func @transform_5(%arg0: i32) -> (i32, i32) {
    %c0_i32 = arith.constant 0 : i32
    %c0_i32_0 = arith.constant 0 : i32
    %c0_i32_1 = arith.constant 0 : i32
    return %c0_i32, %c0_i32_0 : i32, i32
  }
}

</mosaic_0001>

<bundles_post_ra>
// kernel: vit_forward.4
= control target key start
LH: loop header
LB: loop body
LE: loop exit
PB: predicated region body
PF: predicated region fallthrough
CT: control target
= control target key end

     0   :  { %s1326_s1 = inlined_call_operand.vmem [shape: bf16[768,256], index: 1, kind: input, shape index: {}]   ;;  %s1327_s0 = inlined_call_operand.vmem [shape: f32[8,768], index: 0, kind: input, shape index: {}]   ;;  %s1328_s2 = inlined_call_operand.vmem [shape: f32[1,256], index: 2, kind: input, shape index: {}]   ;;  %s1329_s3 = inlined_call_operand.vmem [shape: f32[8,256], index: 3, kind: output, shape index: {}]  }
   0x1   :  { %v847_v0 = vld [vmem:[%s1326_s1 + $0x104] ss:$8 sps:$4 sm:$0xff]   ;;  %v849_v1 = vld [vmem:[%s1326_s1 + $0x100] ss:$8 sps:$4 sm:$0xff]   ;;  %v850_v2 = vld [vmem:[%s1326_s1 + $0x114] ss:$8 sps:$4 sm:$0xff]  }
   0x2   :  { %655 = vmatprep.subr.bf16.mxu0 %v847_v0  ;;  %v852_v3 = vld [vmem:[%s1326_s1 + $0x110] ss:$8 sps:$4 sm:$0xff]   ;;  %v853_v4 = vld [vmem:[%s1326_s1 + $0x124] ss:$8 sps:$4 sm:$0xff]   ;;  %v855_v5 = vld [vmem:[%s1326_s1 + $0x120] ss:$8 sps:$4 sm:$0xff]  }
   0x3   :  { %656 = vmatpush1.bf16.msra.mxu0 %v849_v1  ;;  %v856_v6 = vld [vmem:[%s1326_s1 + $0x134] ss:$8 sps:$4 sm:$0xff]   ;;  %v858_v7 = vld [vmem:[%s1326_s1 + $0x130] ss:$8 sps:$4 sm:$0xff]   ;;  %v859_v8 = vld [vmem:[%s1326_s1 + $0x144] ss:$8 sps:$4 sm:$0xff]  }
   0x4   :  { %657 = vmatprep.subr.bf16.mxu0 %v850_v2  ;;  %v861_v9 = vld [vmem:[%s1326_s1 + $0x140] ss:$8 sps:$4 sm:$0xff]   ;;  %v862_v10 = vld [vmem:[%s1326_s1 + $0x154] ss:$8 sps:$4 sm:$0xff]   ;;  %v864_v11 = vld [vmem:[%s1326_s1 + $0x150] ss:$8 sps:$4 sm:$0xff]  }
   0x5   :  { %v865_v12 = vld [vmem:[%s1326_s1 + $0x164] ss:$8 sps:$4 sm:$0xff]   ;;  %v894_v14 = vld [vmem:[%s1326_s1] ss:$8 sps:$4 sm:$0xff]   ;;  %v868_v16 = vld [vmem:[%s1326_s1 + $0x174] ss:$8 sps:$4 sm:$0xff]  }
   0x6   :  { %v892_v13 = vld [vmem:[%s1326_s1 + $0x4] ss:$8 sps:$4 sm:$0xff]   ;;  %v867_v15 = vld [vmem:[%s1326_s1 + $0x160] ss:$8 sps:$4 sm:$0xff]   ;;  %v898_v17 = vld [vmem:[%s1326_s1 + $0x14] ss:$8 sps:$4 sm:$0xff]  }
   0x7   :  { %658 = vmatpush1.bf16.msra.mxu0 %v852_v3  ;;  %614 = vmatprep.subr.bf16.mxu1 %v892_v13  ;;  %v900_v18 = vld [vmem:[%s1326_s1 + $0x10] ss:$8 sps:$4 sm:$0xff]   ;;  %v904_v22 = vld [vmem:[%s1326_s1 + $0x24] ss:$8 sps:$4 sm:$0xff]   ;;  %v906_v23 = vld [vmem:[%s1326_s1 + $0x20] ss:$8 sps:$4 sm:$0xff]  }
   0x8   :  { %659 = vmatprep.subr.bf16.mxu0 %v853_v4  ;;  %615 = vmatpush1.bf16.msra.mxu1 %v894_v14  ;;  %v17_v19 = vld [vmem:[%s1327_s0 + $0x18] sm:$0xff]  ;;  %v871_v24 = vld [vmem:[%s1326_s1 + $0x184] ss:$8 sps:$4 sm:$0xff]   ;;  %v873_v26 = vld [vmem:[%s1326_s1 + $0x180] ss:$8 sps:$4 sm:$0xff]  }
   0x9   :  { %v870_v20 = vld [vmem:[%s1326_s1 + $0x170] ss:$8 sps:$4 sm:$0xff]   ;;  %616 = vmatprep.subr.bf16.mxu1 %v898_v17  ;;  %v119_v21 = vpack.c.bf16 %v17_v19, %v17_v19  ;;  %v910_v25 = vld [vmem:[%s1326_s1 + $0x34] ss:$8 sps:$4 sm:$0xff]   ;;  %v916_v29 = vld [vmem:[%s1326_s1 + $0x44] ss:$8 sps:$4 sm:$0xff]  }
   0xa   :  { %v912_v27 = vld [vmem:[%s1326_s1 + $0x30] ss:$8 sps:$4 sm:$0xff]   ;;  %v874_v28 = vld [vmem:[%s1326_s1 + $0x194] ss:$8 sps:$4 sm:$0xff]   ;;  %v918_v31 = vld [vmem:[%s1326_s1 + $0x40] ss:$8 sps:$4 sm:$0xff]  }
   0xb   :  { %660 = vmatpush1.bf16.msra.mxu0 %v855_v5  ;;  %687 = vmatprep.mubr.bf16.mxu0 %v119_v21  ;;  %v876_v30 = vld [vmem:[%s1326_s1 + $0x190] ss:$8 sps:$4 sm:$0xff]   ;;  %v877_v32 = vld [vmem:[%s1326_s1 + $0x1a4] ss:$8 sps:$4 sm:$0xff]   ;;  %v922_v33 = vld [vmem:[%s1326_s1 + $0x54] ss:$8 sps:$4 sm:$0xff]  }
   0xc   :  { %661 = vmatprep.subr.bf16.mxu0 %v856_v6  ;;  %617 = vmatpush1.bf16.msra.mxu1 %v900_v18  ;;  %v879_v34 = vld [vmem:[%s1326_s1 + $0x1a0] ss:$8 sps:$4 sm:$0xff]   ;;  %v924_v35 = vld [vmem:[%s1326_s1 + $0x50] ss:$8 sps:$4 sm:$0xff]   ;;  %v880_v36 = vld [vmem:[%s1326_s1 + $0x1b4] ss:$8 sps:$4 sm:$0xff]  }
   0xd   :  { %618 = vmatprep.subr.bf16.mxu1 %v904_v22  ;;  %v928_v37 = vld [vmem:[%s1326_s1 + $0x64] ss:$8 sps:$4 sm:$0xff]   ;;  %v882_v38 = vld [vmem:[%s1326_s1 + $0x1b0] ss:$8 sps:$4 sm:$0xff]   ;;  %v930_v39 = vld [vmem:[%s1326_s1 + $0x60] ss:$8 sps:$4 sm:$0xff]  }
   0xe   :  { %v883_v40 = vld [vmem:[%s1326_s1 + $0x1c4] ss:$8 sps:$4 sm:$0xff]   ;;  %v934_v41 = vld [vmem:[%s1326_s1 + $0x74] ss:$8 sps:$4 sm:$0xff]   ;;  %v885_v42 = vld [vmem:[%s1326_s1 + $0x1c0] ss:$8 sps:$4 sm:$0xff]  }
   0xf   :  { %662 = vmatpush1.bf16.msra.mxu0 %v858_v7  ;;  %v936_v43 = vld [vmem:[%s1326_s1 + $0x70] ss:$8 sps:$4 sm:$0xff]   ;;  %v886_v44 = vld [vmem:[%s1326_s1 + $0x1d4] ss:$8 sps:$4 sm:$0xff]   ;;  %v940_v45 = vld [vmem:[%s1326_s1 + $0x84] ss:$8 sps:$4 sm:$0xff]  }
  0x10   :  { %663 = vmatprep.subr.bf16.mxu0 %v859_v8  ;;  %619 = vmatpush1.bf16.msra.mxu1 %v906_v23  ;;  %v888_v46 = vld [vmem:[%s1326_s1 + $0x1d0] ss:$8 sps:$4 sm:$0xff]   ;;  %v942_v47 = vld [vmem:[%s1326_s1 + $0x80] ss:$8 sps:$4 sm:$0xff]   ;;  %v889_v48 = vld [vmem:[%s1326_s1 + $0x1e4] ss:$8 sps:$4 sm:$0xff]  }
  0x11   :  { %620 = vmatprep.subr.bf16.mxu1 %v910_v25  ;;  %v946_v49 = vld [vmem:[%s1326_s1 + $0x94] ss:$8 sps:$4 sm:$0xff]   ;;  %v891_v50 = vld [vmem:[%s1326_s1 + $0x1e0] ss:$8 sps:$4 sm:$0xff]   ;;  %v948_v51 = vld [vmem:[%s1326_s1 + $0x90] ss:$8 sps:$4 sm:$0xff]  }
  0x12   :  { %v895_v52 = vld [vmem:[%s1326_s1 + $0x1f4] ss:$8 sps:$4 sm:$0xff]   ;;  %v952_v53 = vld [vmem:[%s1326_s1 + $0xa4] ss:$8 sps:$4 sm:$0xff]   ;;  %v897_v54 = vld [vmem:[%s1326_s1 + $0x1f0] ss:$8 sps:$4 sm:$0xff]  }
  0x13   :  { %664 = vmatpush1.bf16.msra.mxu0 %v861_v9  ;;  %v16_v55 = vld [vmem:[%s1327_s0 + $0x10] sm:$0xff]  ;;  %v954_v56 = vld [vmem:[%s1326_s1 + $0xa0] ss:$8 sps:$4 sm:$0xff]   ;;  %v903_v57 = vld [vmem:[%s1326_s1 + $0x204] ss:$8 sps:$4 sm:$0xff]  }
  0x14   :  { %665 = vmatprep.subr.bf16.mxu0 %v862_v10  ;;  %621 = vmatpush1.bf16.msra.mxu1 %v912_v27  ;;  %v958_v58 = vld [vmem:[%s1326_s1 + $0xb4] ss:$8 sps:$4 sm:$0xff]   ;;  %v901_v59 = vld [vmem:[%s1326_s1 + $0x200] ss:$8 sps:$4 sm:$0xff]   ;;  %v118_v60 = vpack.c.bf16 %v16_v55, %v16_v55  ;;  %v960_v62 = vld [vmem:[%s1326_s1 + $0xb0] ss:$8 sps:$4 sm:$0xff]  }
  0x15   :  { %622 = vmatprep.subr.bf16.mxu1 %v916_v29  ;;  %v909_v61 = vld [vmem:[%s1326_s1 + $0x214] ss:$8 sps:$4 sm:$0xff]   ;;  %v15_v63 = vld [vmem:[%s1327_s0 + $0x8] sm:$0xff]  ;;  %v907_v4 = vld [vmem:[%s1326_s1 + $0x210] ss:$8 sps:$4 sm:$0xff]  }
  0x16   :  { %v964_v0 = vld [vmem:[%s1326_s1 + $0xc4] ss:$8 sps:$4 sm:$0xff]   ;;  %v117_v1 = vpack.c.bf16 %v15_v63, %v15_v63  ;;  %v966_v5 = vld [vmem:[%s1326_s1 + $0xc0] ss:$8 sps:$4 sm:$0xff]   ;;  %v970_v7 = vld [vmem:[%s1326_s1 + $0xd4] ss:$8 sps:$4 sm:$0xff]  }
  0x17   :  { %666 = vmatpush1.bf16.msra.mxu0 %v864_v11  ;;  %v19_v2 = vld [vmem:[%s1327_s0 + $0x28] sm:$0xff]  ;;  %v972_v9 = vld [vmem:[%s1326_s1 + $0xd0] ss:$8 sps:$4 sm:$0xff]   ;;  %v921_v10 = vld [vmem:[%s1326_s1 + $0x234] ss:$8 sps:$4 sm:$0xff]  }
  0x18   :  { %667 = vmatprep.subr.bf16.mxu0 %v865_v12  ;;  %623 = vmatpush1.bf16.msra.mxu1 %v918_v31  ;;  %v121_v3 = vpack.c.bf16 %v19_v2, %v19_v2  ;;  %v915_v6 = vld [vmem:[%s1326_s1 + $0x224] ss:$8 sps:$4 sm:$0xff]   ;;  %v913_v8 = vld [vmem:[%s1326_s1 + $0x220] ss:$8 sps:$4 sm:$0xff]   ;;  %v919_v12 = vld [vmem:[%s1326_s1 + $0x230] ss:$8 sps:$4 sm:$0xff]  }
  0x19   :  { %624 = vmatprep.subr.bf16.mxu1 %v922_v33  ;;  %646 = vmatprep.mubr.bf16.mxu1 %v117_v1  ;;  %v976_v11 = vld [vmem:[%s1326_s1 + $0xe4] ss:$8 sps:$4 sm:$0xff]   ;;  %v978_v13 = vld [vmem:[%s1326_s1 + $0xe0] ss:$8 sps:$4 sm:$0xff]   ;;  %v984_v17 = vld [vmem:[%s1326_s1 + $0xf0] ss:$8 sps:$4 sm:$0xff]  }
  0x1a   :  { %v927_v14 = vld [vmem:[%s1326_s1 + $0x244] ss:$8 sps:$4 sm:$0xff]   ;;  %v933_v19 = vld [vmem:[%s1326_s1 + $0x254] ss:$8 sps:$4 sm:$0xff]   ;;  %v931_v21 = vld [vmem:[%s1326_s1 + $0x250] ss:$8 sps:$4 sm:$0xff]  }
  0x1b   :  { %668 = vmatpush1.bf16.msra.mxu0 %v867_v15  ;;  %v982_v15 = vld [vmem:[%s1326_s1 + $0xf4] ss:$8 sps:$4 sm:$0xff]   ;;  %v14_v18 = vld [vmem:[%s1327_s0] sm:$0xff]  ;;  %v943_v25 = vld [vmem:[%s1326_s1 + $0x270] ss:$8 sps:$4 sm:$0xff]  }
  0x1c   :  { %669 = vmatprep.subr.bf16.mxu0 %v868_v16  ;;  %625 = vmatpush1.bf16.msra.mxu1 %v924_v35  ;;  %v925_v16 = vld [vmem:[%s1326_s1 + $0x240] ss:$8 sps:$4 sm:$0xff]   ;;  %v939_v22 = vld [vmem:[%s1326_s1 + $0x264] ss:$8 sps:$4 sm:$0xff]   ;;  %v955_v29 = vld [vmem:[%s1326_s1 + $0x290] ss:$8 sps:$4 sm:$0xff]  }
  0x1d   :  { %626 = vmatprep.subr.bf16.mxu1 %v928_v37  ;;  %v937_v23 = vld [vmem:[%s1326_s1 + $0x260] ss:$8 sps:$4 sm:$0xff]   ;;  %v967_v33 = vld [vmem:[%s1326_s1 + $0x2b0] ss:$8 sps:$4 sm:$0xff]  }
  0x1e   :  { %v949_v27 = vld [vmem:[%s1326_s1 + $0x280] ss:$8 sps:$4 sm:$0xff]   ;;  %v979_v37 = vld [vmem:[%s1326_s1 + $0x2d0] ss:$8 sps:$4 sm:$0xff]  }
  0x1f   :  { %670 = vmatpush1.bf16.msra.mxu0 %v870_v20  ;;  %v116_v20 = vpack.c.bf16 %v14_v18, %v14_v18  ;;  %v961_v31 = vld [vmem:[%s1326_s1 + $0x2a0] ss:$8 sps:$4 sm:$0xff]  }
  0x20   :  { %671 = vmatprep.subr.bf16.mxu0 %v871_v24  ;;  %627 = vmatpush1.bf16.msra.mxu1 %v930_v39  ;;  %v945_v24 = vld [vmem:[%s1326_s1 + $0x274] ss:$8 sps:$4 sm:$0xff]   ;;  %v973_v35 = vld [vmem:[%s1326_s1 + $0x2c0] ss:$8 sps:$4 sm:$0xff]  }
  0x21   :  { %628 = vmatprep.subr.bf16.mxu1 %v934_v41  ;;  %v985_v39 = vld [vmem:[%s1326_s1 + $0x2e0] ss:$8 sps:$4 sm:$0xff]   ;;  %v988_v41 = vld [vmem:[%s1326_s1 + $0x2f0] ss:$8 sps:$4 sm:$0xff]  }
  0x23   :  { %672 = vmatpush1.bf16.msra.mxu0 %v873_v26  ;;  %v951_v26 = vld [vmem:[%s1326_s1 + $0x284] ss:$8 sps:$4 sm:$0xff]  }
  0x24   :  { %673 = vmatprep.subr.bf16.mxu0 %v874_v28  ;;  %629 = vmatpush1.bf16.msra.mxu1 %v936_v43  ;;  %v957_v28 = vld [vmem:[%s1326_s1 + $0x294] ss:$8 sps:$4 sm:$0xff]  }
  0x25   :  { %630 = vmatprep.subr.bf16.mxu1 %v940_v45 }
  0x27   :  { %674 = vmatpush1.bf16.msra.mxu0 %v876_v30  ;;  %v963_v30 = vld [vmem:[%s1326_s1 + $0x2a4] ss:$8 sps:$4 sm:$0xff]  }
  0x28   :  { %675 = vmatprep.subr.bf16.mxu0 %v877_v32  ;;  %631 = vmatpush1.bf16.msra.mxu1 %v942_v47  ;;  %v969_v32 = vld [vmem:[%s1326_s1 + $0x2b4] ss:$8 sps:$4 sm:$0xff]  }
  0x29   :  { %632 = vmatprep.subr.bf16.mxu1 %v946_v49 }
  0x2b   :  { %676 = vmatpush1.bf16.msra.mxu0 %v879_v34  ;;  %v975_v34 = vld [vmem:[%s1326_s1 + $0x2c4] ss:$8 sps:$4 sm:$0xff]  }
  0x2c   :  { %677 = vmatprep.subr.bf16.mxu0 %v880_v36  ;;  %633 = vmatpush1.bf16.msra.mxu1 %v948_v51  ;;  %v981_v36 = vld [vmem:[%s1326_s1 + $0x2d4] ss:$8 sps:$4 sm:$0xff]   ;;  %v122_v51 = vld [vmem:[%s1328_s2] sm:$0x3] }
  0x2d   :  { %634 = vmatprep.subr.bf16.mxu1 %v952_v53 }
  0x2f   :  { %678 = vmatpush1.bf16.msra.mxu0 %v882_v38  ;;  %v987_v38 = vld [vmem:[%s1326_s1 + $0x2e4] ss:$8 sps:$4 sm:$0xff]  }
  0x30   :  { %679 = vmatprep.subr.bf16.mxu0 %v883_v40  ;;  %635 = vmatpush1.bf16.msra.mxu1 %v954_v56  ;;  %v990_v40 = vld [vmem:[%s1326_s1 + $0x2f4] ss:$8 sps:$4 sm:$0xff]  }
  0x31   :  { %636 = vmatprep.subr.bf16.mxu1 %v958_v58 }
  0x33   :  { %680 = vmatpush1.bf16.msra.mxu0 %v885_v42  ;;  %v18_v42 = vld [vmem:[%s1327_s0 + $0x20] sm:$0xff] }
  0x34   :  { %681 = vmatprep.subr.bf16.mxu0 %v886_v44  ;;  %637 = vmatpush1.bf16.msra.mxu1 %v960_v62  ;;  %v120_v43 = vpack.c.bf16 %v18_v42, %v18_v42 }
  0x35   :  { %638 = vmatprep.subr.bf16.mxu1 %v964_v0 }
  0x37   :  { %682 = vmatpush1.bf16.msra.mxu0 %v888_v46 }
  0x38   :  { %683 = vmatprep.subr.bf16.mxu0 %v889_v48  ;;  %639 = vmatpush1.bf16.msra.mxu1 %v966_v5  ;;  %v124_v48 = vlaneseq }
  0x39   :  { %640 = vmatprep.subr.bf16.mxu1 %v970_v7 }
  0x3a   :  { %v125_v49 = vshrl.u32 %v124_v48, 7 }
  0x3b   :  { %684 = vmatpush1.bf16.msra.mxu0 %v891_v50 }
  0x3c   :  { %685 = vmatprep.subr.bf16.mxu0 %v895_v52  ;;  %641 = vmatpush1.bf16.msra.mxu1 %v972_v9  ;;  %v126_v50 = vsub.s32 0, %v125_v49  ;;  %v130_v52 = vsub.s32 1, %v125_v49 }
  0x3d   :  { %642 = vmatprep.subr.bf16.mxu1 %v976_v11 }
  0x3e   :  { %v127_v53 = vrot.slane %v122_v51, %v126_v50 }
  0x3f   :  { %686 = vmatpush1.bf16.msra.mxu0 %v897_v54  ;;  %v131_v54 = vrot.slane %v122_v51, %v130_v52 }
  0x40   :  { %696 = vmatprep.subr.bf16.mxu0 %v903_v57  ;;  %643 = vmatpush1.bf16.msra.mxu1 %v978_v13 }
  0x41   :  { %644 = vmatprep.subr.bf16.mxu1 %v982_v15 }
  0x42   :  { %688 = vmatmul.mubr.bf16.vlgmr.msra.gmra.mrb[0].mxu0 %v118_v60 }
  0x43   :  { %697 = vmatpush1.bf16.msra.mxu0 %v901_v59  ;;  %728 = vmatprep.mubr.bf16.mxu0 %v121_v3 }
  0x44   :  { %698 = vmatprep.subr.bf16.mxu0 %v909_v61  ;;  %645 = vmatpush1.bf16.msra.mxu1 %v984_v17 }
  0x47   :  { %699 = vmatpush1.bf16.msra.mxu0 %v907_v4  ;;  %647 = vmatmul.mubr.bf16.vlgmr.msra.gmra.mrb[0].mxu1 %v116_v20 }
  0x48   :  { %700 = vmatprep.subr.bf16.mxu0 %v915_v6 }
  0x4b   :  { %701 = vmatpush1.bf16.msra.mxu0 %v913_v8 }
  0x4c   :  { %702 = vmatprep.subr.bf16.mxu0 %v921_v10 }
  0x4f   :  { %703 = vmatpush1.bf16.msra.mxu0 %v919_v12 }
  0x50   :  { %704 = vmatprep.subr.bf16.mxu0 %v927_v14 }
  0x53   :  { %705 = vmatpush1.bf16.msra.mxu0 %v925_v16 }
  0x54   :  { %706 = vmatprep.subr.bf16.mxu0 %v933_v19 }
  0x57   :  { %707 = vmatpush1.bf16.msra.mxu0 %v931_v21 }
  0x58   :  { %708 = vmatprep.subr.bf16.mxu0 %v939_v22 }
  0x5b   :  { %709 = vmatpush1.bf16.msra.mxu0 %v937_v23 }
  0x5c   :  { %710 = vmatprep.subr.bf16.mxu0 %v945_v24 }
  0x5f   :  { %711 = vmatpush1.bf16.msra.mxu0 %v943_v25 }
  0x60   :  { %712 = vmatprep.subr.bf16.mxu0 %v951_v26 }
  0x63   :  { %713 = vmatpush1.bf16.msra.mxu0 %v949_v27 }
  0x64   :  { %714 = vmatprep.subr.bf16.mxu0 %v957_v28 }
  0x67   :  { %715 = vmatpush1.bf16.msra.mxu0 %v955_v29 }
  0x68   :  { %716 = vmatprep.subr.bf16.mxu0 %v963_v30 }
  0x6b   :  { %717 = vmatpush1.bf16.msra.mxu0 %v961_v31 }
  0x6c   :  { %718 = vmatprep.subr.bf16.mxu0 %v969_v32 }
  0x6f   :  { %719 = vmatpush1.bf16.msra.mxu0 %v967_v33 }
  0x70   :  { %720 = vmatprep.subr.bf16.mxu0 %v975_v34 }
  0x73   :  { %721 = vmatpush1.bf16.msra.mxu0 %v973_v35 }
  0x74   :  { %722 = vmatprep.subr.bf16.mxu0 %v981_v36 }
  0x77   :  { %723 = vmatpush1.bf16.msra.mxu0 %v979_v37 }
  0x78   :  { %724 = vmatprep.subr.bf16.mxu0 %v987_v38 }
  0x7b   :  { %725 = vmatpush1.bf16.msra.mxu0 %v985_v39 }
  0x7c   :  { %726 = vmatprep.subr.bf16.mxu0 %v990_v40 }
  0x7f   :  { %727 = vmatpush1.bf16.msra.mxu0 %v988_v41 }
  0x82   :  { %729 = vmatmul.mubr.bf16.vlgmr.msra.gmra.mrb[0].mxu0 %v120_v43 }
 0x11a   :  { %v648_v44 = vpop.f32.mrb[0].mxu1 }
 0x11b   :  { %v650_v45 = vpop.f32.mrb[1].mxu1  ;;  %v649_v55 = vadd.f32 %v648_v44, %v127_v53 }
 0x11c   :  { %v652_v46 = vpop.f32.mrb[2].mxu1  ;;  %v651_v56 = vadd.f32 %v650_v45, %v131_v54 }
 0x11d   :  { %v653_v47 = vpop.f32.mrb[3].mxu1 }
 0x155   :  { %v730_v57 = vpop.f32.mrb[0].mxu0 }
 0x156   :  { %v840_v58 = vadd.f32 %v730_v57, %v649_v55  ;;  %v732_v59 = vpop.f32.mrb[1].mxu0 }
 0x157   :  { %v842_v60 = vadd.f32 %v732_v59, %v651_v56  ;;  %v734_v61 = vpop.f32.mrb[2].mxu0 }
 0x158   :  { %737 = vst [vmem:[%s1329_s3] sm:$0xff] %v840_v58  ;;  %v735_v62 = vpop.f32.mrb[3].mxu0 }
 0x159   :  { %738 = vst [vmem:[%s1329_s3 + $0x8] sm:$0xff] %v842_v60 }

// kernel: vit_forward.7
= control target key start
LH: loop header
LB: loop body
LE: loop exit
PB: predicated region body
PF: predicated region fallthrough
CT: control target
= control target key end

     0   :  { %v29_v0 = vlaneseq  ;;  %v409_v1 = vmov 1983009808   ;;  %vm36_vm0 = vcmask 1041408   ;;  %s531_s0 = inlined_call_operand.vmem [shape: f32[2,256], index: 0, kind: input, shape index: {}]   ;;  %s532_s1 = inlined_call_operand.vmem [shape: f32[1,256], index: 1, kind: input, shape index: {}]   ;;  %s533_s2 = inlined_call_operand.vmem [shape: f32[1,256], index: 2, kind: input, shape index: {}]   ;;  %s534_s3 = inlined_call_operand.vmem [shape: bf16[256,128], index: 3, kind: input, shape index: {}]   ;;  %s535_s4 = inlined_call_operand.vmem [shape: f32[1,128], index: 4, kind: input, shape index: {}]   ;;  %s536_s5 = inlined_call_operand.hbm [shape: f32[2,128], index: 5, kind: output, shape index: {}]  }
   0x1   :  { %v27_v2 = vunpack.c.l.s4 %v409_v1  ;;  %v22_v3 = vld [vmem:[%s531_s0] sm:$0xf] }
   0x2   :  { %v445_v4 = vshrl.u32 %v29_v0, 7 }
   0x3   :  { %v28_v5 = vunpack.c.0.s8 %v27_v2 }
   0x5   :  { %v448_v6 = vsub.s32 %v28_v5, %v445_v4 }
   0x7   :  { %v32_v7 = vrot.slane %v22_v3, %v448_v6 }
   0x9   :  { %v33_v8 = vcombine.high %v32_v7, %v32_v7  ;;  %v37_v9 = vsel %vm36_vm0, %v32_v7, 0.0 }
   0xb   :  { %v38_v10 = vsel %vm36_vm0, %v33_v8, 0.0 }
   0xc   :  { %v39_v11 = vadd.f32 %v38_v10, %v37_v9 }
   0xd   :  { %10 = vsyncpa [#allocation3], 0  ;;  %v367_v12 = vld [vmem:[%s534_s3 + $0x40] sm:$0xff]   ;;  %v410_v14 = vmov 269488144   ;;  %v369_v28 = vld [vmem:[%s534_s3 + $0x48] sm:$0xff]  }
   0xe   :  { %40 = vadd.xlane.f32.xlu0 %v39_v11  ;;  %v368_v13 = vld [vmem:[%s534_s3] sm:$0xff]   ;;  %342 = vmatprep.subr.bf16.mxu0 %v367_v12  ;;  %v46_v15 = vunpack.c.l.s4 %v410_v14  ;;  %v370_v29 = vld [vmem:[%s534_s3 + $0x8] sm:$0xff]   ;;  %v371_v30 = vld [vmem:[%s534_s3 + $0x50] sm:$0xff]   ;;  %v87_v45 = vsub.s32 0, %v445_v4  ;;  %v91_v46 = vsub.s32 1, %v445_v4 }
   0xf   :  { %343 = vmatpush3.bf16.msra.mxu0 %v368_v13  ;;  %v372_v31 = vld [vmem:[%s534_s3 + $0x10] sm:$0xff]   ;;  %v373_v32 = vld [vmem:[%s534_s3 + $0x58] sm:$0xff]   ;;  %v375_v34 = vld [vmem:[%s534_s3 + $0x60] sm:$0xff]  }
  0x10   :  { %v47_v16 = vunpack.c.0.s8 %v46_v15  ;;  %344 = vmatprep.subr.bf16.mxu0 %v369_v28  ;;  %v374_v33 = vld [vmem:[%s534_s3 + $0x18] sm:$0xff]   ;;  %v376_v35 = vld [vmem:[%s534_s3 + $0x20] sm:$0xff]   ;;  %v377_v36 = vld [vmem:[%s534_s3 + $0x68] sm:$0xff]  }
  0x11   :  { %v378_v37 = vld [vmem:[%s534_s3 + $0x28] sm:$0xff]   ;;  %v379_v38 = vld [vmem:[%s534_s3 + $0x70] sm:$0xff]   ;;  %v381_v40 = vld [vmem:[%s534_s3 + $0x78] sm:$0xff]  }
  0x12   :  { %v50_v17 = vsub.s32 %v47_v16, %v445_v4  ;;  %v380_v39 = vld [vmem:[%s534_s3 + $0x30] sm:$0xff]   ;;  %v382_v41 = vld [vmem:[%s534_s3 + $0x38] sm:$0xff]   ;;  %v23_v47 = vld [vmem:[%s532_s1] sm:$0x3]  ;;  %s411_s3 = smov [#allocation2]  }
  0x13   :  { %345 = vmatpush3.bf16.msra.mxu0 %v370_v29  ;;  %v24_v48 = vld [vmem:[%s533_s2] sm:$0x3]  ;;  %v88_v49 = vrot.slane %v23_v47, %v87_v45  ;;  %v92_v50 = vrot.slane %v23_v47, %v91_v46  ;;  %s317_s29 = sshll.u32 %s411_s3, 4  ;;  %s318_s29 = int_to_ptr.vmem [resolvable:$true] %s317_s29 }
  0x14   :  { %346 = vmatprep.subr.bf16.mxu0 %v371_v30  ;;  %v107_v51 = vrot.slane %v24_v48, %v87_v45  ;;  %v111_v52 = vrot.slane %v24_v48, %v91_v46  ;;  %v325_v4 = vld [vmem:[%s535_s4] ss:$0 sm:$0xff]  ;;  %s385_s30 = scalar_lea.vmem %s318_s29, 32  ;;  %p390_p1 = scmp.lt.s32.totalorder %s318_s29, %s318_s29 }
  0x15   :  { %v93_v53 = vcombine.low %v88_v49, %v92_v50  ;;  %p386_p0 = scmp.ne.s32.totalorder %s318_s29, %s385_s30  ;;  %p391_p2 = scmp.lt.s32.totalorder %s385_s30, %s385_s30 }
  0x16   :  { %v112_v54 = vcombine.low %v107_v51, %v111_v52 }
  0x17   :  { %347 = vmatpush3.bf16.msra.mxu0 %v372_v31  ;;  %v100_v57 = vrot.slane %v93_v53, %v448_v6  ;;  %p392_p3 = por %p391_p2, %p390_p1 }
  0x18   :  { %348 = vmatprep.subr.bf16.mxu0 %v373_v32  ;;  %v119_v59 = vrot.slane %v112_v54, %v448_v6 }
  0x19   :  { %p393_p4 = pnand %p392_p3, %p386_p0 }
  0x1b   :  { %349 = vmatpush3.bf16.msra.mxu0 %v374_v33 }
  0x1c   :  { %350 = vmatprep.subr.bf16.mxu0 %v375_v34 }
  0x1f   :  { %351 = vmatpush3.bf16.msra.mxu0 %v376_v35 }
  0x20   :  { %352 = vmatprep.subr.bf16.mxu0 %v377_v36 }
  0x23   :  { %353 = vmatpush3.bf16.msra.mxu0 %v378_v37 }
  0x24   :  { %354 = vmatprep.subr.bf16.mxu0 %v379_v38 }
  0x27   :  { %355 = vmatpush3.bf16.msra.mxu0 %v380_v39 }
  0x28   :  { %356 = vmatprep.subr.bf16.mxu0 %v381_v40 }
  0x2b   :  { %357 = vmatpush3.bf16.msra.mxu0 %v382_v41 }
  0x9b   :  { %v41_v18 = vpop.xlane.xlu0 %40 }
  0x9c   :  { %v43_v19 = vmul.f32 0.00390625, %v41_v18 }
  0x9e   :  { %v51_v20 = vrot.slane %v43_v19, %v50_v17 }
  0xa0   :  { %v53_v21 = vsub.f32 %v22_v3, %v51_v20 }
  0xa2   :  { %v54_v22 = vmul.f32 %v53_v21, %v53_v21 }
  0xa4   :  { %v62_v23 = vrot.slane %v54_v22, %v448_v6 }
  0xa6   :  { %v63_v24 = vcombine.high %v62_v23, %v62_v23  ;;  %v66_v25 = vsel %vm36_vm0, %v62_v23, 0.0 }
  0xa8   :  { %v67_v26 = vsel %vm36_vm0, %v63_v24, 0.0 }
  0xa9   :  { %v68_v27 = vadd.f32 %v67_v26, %v66_v25 }
  0xab   :  { %69 = vadd.xlane.f32.xlu0 %v68_v27 }
 0x138   :  { %v70_v42 = vpop.xlane.xlu0 %69 }
 0x139   :  { %v71_v43 = vmul.f32 0.00390625, %v70_v42 }
 0x13b   :  { %v72_v44 = vadd.f32 1e-12, %v71_v43 }
 0x13d   :  { %383 = vrsqrt.f32 %v72_v44 }
 0x147   :  { %v384_v55 = vpop.eup %383 }
 0x148   :  { %v81_v56 = vrot.slane %v384_v55, %v50_v17 }
 0x14a   :  { %v83_v58 = vmul.f32 %v81_v56, %v53_v21 }
 0x14c   :  { %v102_v60 = vmul.f32 %v100_v57, %v83_v58 }
 0x14e   :  { %v121_v61 = vadd.f32 %v119_v59, %v102_v60 }
 0x150   :  { %v161_v62 = vrot.slane %v121_v61, %v448_v6 }
 0x152   :  { %v162_v63 = vcombine.high %v161_v62, %v161_v62  ;;  %v165_v1 = vpack.c.bf16 %v161_v62, %v161_v62 }
 0x154   :  { %v166_v0 = vpack.c.bf16 %v162_v63, %v162_v63 }
 0x156   :  { %302 = vmatprep.mubr.bf16.mxu0 %v166_v0 }
 0x157   :  { %303 = vmatmul.mubr.bf16.vlgmr.msra.gmra.mrb[0].mxu0 %v165_v1 }
 0x22a   :  { %v358_v2 = vpop.f32.mrb[0].mxu0 }
 0x22b   :  { %v359_v3 = vpop.f32.mrb[1].mxu0 }
 0x22c   :  { %v360_v5 = vadd.f32 %v359_v3, %v358_v2  ;;  %v361_v7 = vpop.f32.mrb[2].mxu0 }
 0x22d   :  { %v362_v8 = vpop.f32.mrb[3].mxu0 }
 0x22e   :  { %v305_v9 = vadd.f32 %v360_v5, %v325_v4 }
 0x230   :  { %310 = vst [vmem:[#allocation2] sm:$0x3] %v305_v9 }
 0x231   :  { %396 = shalt.err (!%p393_p4)
}
 0x232   :  { %s397_s8 = scalar_lea.hbm %s536_s5, 32 }
 0x233   :  { %p398_p5 = scmp.ne.s32.totalorder %s536_s5, %s397_s8  ;;  %p401_p6 = scmp.lt.u32.totalorder %s397_s8, %s536_s5 }
 0x235   :  { %p403_p7 = pnand %p401_p6, %p398_p5 }
 0x237   :  { %406 = shalt.err (!%p403_p7)
}
 0x238   :  { %320 = dma.vmem_to_hbm [thread:$0]  %s318_s29, 32, %s536_s5, [#allocation3]  }
 0x239   :  { %407 = dma.done.wait [#allocation3], 32  }
 0x23a   :  { %408 = vsyncadd [#allocation3], 4294967264 }
 0x23b   :  { %324 = vsyncpa [#allocation3], 1 }

// kernel: vit_forward.5
= control target key start
LH: loop header
LB: loop body
LE: loop exit
PB: predicated region body
PF: predicated region fallthrough
CT: control target
= control target key end

     0   :  { %18 = vsyncpa [#allocation3], 0  ;;  %s5991_s0 = inlined_call_operand.vmem [shape: f32[16,256], index: 0, kind: input, shape index: {}]   ;;  %s5992_s1 = inlined_call_operand.vmem [shape: f32[1,256], index: 1, kind: input, shape index: {}]   ;;  %s5993_s2 = inlined_call_operand.vmem [shape: f32[1,256], index: 2, kind: input, shape index: {}]   ;;  %s5994_s3 = inlined_call_operand.hbm [shape: bf16[256,768], index: 3, kind: input, shape index: {}]   ;;  %s5995_s4 = inlined_call_operand.vmem [shape: f32[1,768], index: 4, kind: input, shape index: {}]   ;;  %s5996_s5 = inlined_call_operand.hbm [shape: bf16[256,256], index: 5, kind: input, shape index: {}]   ;;  %s5997_s6 = inlined_call_operand.vmem [shape: f32[1,256], index: 6, kind: input, shape index: {}]   ;;  %s5998_s7 = inlined_call_operand.vmem [shape: f32[1,256], index: 7, kind: input, shape index: {}]   ;;  %s5999_s8 = inlined_call_operand.vmem [shape: f32[1,256], index: 8, kind: input, shape index: {}]   ;;  %s6000_s9 = inlined_call_operand.vmem [shape: bf16[256,1024], index: 9, kind: input, shape index: {}]   ;;  %s6001_s10 = inlined_call_operand.vmem [shape: f32[1,1024], index: 10, kind: input, shape index: {}]   ;;  %s6002_s11 = inlined_call_operand.vmem [shape: bf16[1024,256], index: 11, kind: input, shape index: {}]   ;;  %s6003_s12 = inlined_call_operand.vmem [shape: f32[1,256], index: 12, kind: input, shape index: {}]   ;;  %s6004_s13 = inlined_call_operand.vmem [shape: f32[16,256], index: 13, kind: output, shape index: {}]  }
   0x1   :  { %19 = vsyncpa [#allocation5], 0  ;;  %s4919_s25 = smov 0  }
   0x2 LB: > { %s4839_s26 = smov [#allocation2]   ;;  %s4925_s28 = sadd.s32 4294967295, %s4837_s25   ;;  %s4837_s25 = sphi %s4919_s25, %s25_s25  }
   0x3   : > { %s352_s27 = sshll.u32 %s4839_s26, 4  ;;  %p3883_p0 = scmp.ge.s32.totalorder %s4837_s25, 1  ;;  %s353_s27 = int_to_ptr.vmem [resolvable:$true] %s352_s27 }
   0x4   : > { %p334_p1 = scmp.lt.s32.totalorder %s4837_s25, 3  ;;  %p6005_p3 = scmp.eq.s32.totalorder %s4925_s28, 0 }
   0x5   : > { %s4840_s30 = smov [#allocation4]   ;;  %s4767_s18 = scalar_lea.hbm %s5994_s3, 12288 }
   0x6   : > { %p4929_p2 = pnand %p3883_p0, %p334_p1  ;;  %s368_s14 = sshll.u32 %s4840_s30, 4  ;;  %s4942_s14 = int_to_ptr.vmem [resolvable:$true] %s368_s14 }
   0x7   : > { %p4768_p6 = scmp.ne.s32.totalorder %s5994_s3, %s4767_s18  ;;  %p4774_p10 = scmp.lt.u32.totalorder %s4767_s18, %s5994_s3 }
   0x8   : > { %s6007_s29 = scalar_select %p4929_p2, 1, 0 }
   0x9   : > { %p4324_p4 = pneg %p4929_p2 }
   0xb   : > { %p4938_p5 = pnand %p6005_p3, %p4324_p4 }
   0xd   : > { %p4769_p7 = pneg %p4938_p5 }
   0xf   : > { %p4770_p8 = pnand %p4769_p7, %p4768_p6 }
  0x11   : > { %p4771_p9 = pneg %p4770_p8 }
  0x13   : > { %p4776_p11 = pnand %p4774_p10, %p4771_p9 }
  0x15   : > { %4779 = shalt.err (!%p4776_p11)
}
  0x16   : > { %s4780_s23 = scalar_lea.vmem %s353_s27, 12288  ;;  %p4788_p1 = scmp.lt.s32.totalorder %s353_s27, %s353_s27 }
  0x17   : > { %p4781_p12 = scmp.ne.s32.totalorder %s353_s27, %s4780_s23  ;;  %p4789_p4 = scmp.lt.s32.totalorder %s4780_s23, %s4780_s23 }
  0x19   : > { %p4783_p13 = pnand %p4781_p12, %p4769_p7  ;;  %p4790_p3 = por %p4789_p4, %p4788_p1 }
  0x1b   : > { %p4784_p0 = pneg %p4783_p13 }
  0x1d   : > { %p4791_p2 = pnand %p4790_p3, %p4784_p0 }
  0x1f   : > { %4794 = shalt.err (!%p4791_p2)
}
  0x20   : > { %s4841_s24 = smov 384   ;;  %s4842_s26 = smov 24  }
  0x21   : > { %4327 = dma.hbm_to_vmem [thread:$0]  (!%p4938_p5), %s5994_s3, 12288, %s353_s27, [#allocation3], %s4841_s24, %s4841_s24, %s4842_s26  }
  0x22   : > { %s4795_s19 = scalar_lea.hbm %s5996_s5, 4096 }
  0x23   : > { %p4796_p6 = scmp.ne.s32.totalorder %s5996_s5, %s4795_s19  ;;  %p4802_p8 = scmp.lt.u32.totalorder %s4795_s19, %s5996_s5 }
  0x25   : > { %p4798_p2 = pnand %p4796_p6, %p4769_p7 }
  0x27   : > { %p4799_p3 = pneg %p4798_p2 }
  0x29   : > { %p4804_p9 = pnand %p4802_p8, %p4799_p3 }
  0x2b   : > { %4807 = shalt.err (!%p4804_p9)
}
  0x2c   : > { %s4808_s27 = scalar_lea.vmem %s4942_s14, 4096  ;;  %p4816_p13 = scmp.lt.s32.totalorder %s4942_s14, %s4942_s14 }
  0x2d   : > { %p4809_p10 = scmp.ne.s32.totalorder %s4942_s14, %s4808_s27  ;;  %p4817_p0 = scmp.lt.s32.totalorder %s4808_s27, %s4808_s27 }
  0x2f   : > { %p4811_p11 = pnand %p4809_p10, %p4769_p7  ;;  %p4818_p1 = por %p4817_p0, %p4816_p13 }
  0x31   : > { %p4812_p12 = pneg %p4811_p11 }
  0x33   : > { %p4819_p4 = pnand %p4818_p1, %p4812_p12 }
  0x35   : > { %4822 = shalt.err (!%p4819_p4)
}
  0x36   : > { %s4843_s24 = smov 128   ;;  %s4844_s26 = smov 8  }
  0x37   : > { %4330 = dma.hbm_to_vmem [thread:$0]  (!%p4938_p5), %s5996_s5, 4096, %s4942_s14, [#allocation5], %s4843_s24, %s4843_s24, %s4844_s26  }
  0x38   : > { %p6009_p6 = scmp.ne.s32.totalorder %s6007_s29, 0 }
  0x39   : > { %p6010_p7 = scmp.eq.s32.totalorder (!%p6009_p6), %s4925_s28, 0 }
  0x3a   : > { %413 = sbr.rel (%p6009_p6) target bundleno = 2970 (0xb9a), region = 72 }
  0x41   : > { %4828 = dma.done.wait (%p6010_p7), [#allocation3], 12288   ;;  %p6011_p2 = pmov %p6010_p7 }
  0x43   : > { %4830 = vsyncadd (%p6011_p2), [#allocation3], 4294955008  ;;  %p6012_p3 = pmov %p6011_p2 }
  0x44   : > { %p6013_p8 = pmov %p6011_p2 }
  0x45   : > { %4832 = dma.done.wait (%p6012_p3), [#allocation5], 4096  }
  0x46   : > { %4834 = vsyncadd (%p6013_p8), [#allocation5], 4294963200  ;;  %p461_p9 = scmp.lt.s32.totalorder %s4925_s28, 1  ;;  %v4353_v3 = vld [vmem:[#allocation2 + $0x4] ss:$24 sps:$4 sm:$0xff]   ;;  %vm4846_vm0 = vmmov 0  }
  0x47   : > { %v4355_v4 = vld [vmem:[#allocation2] ss:$24 sps:$4 sm:$0xff]   ;;  %v4356_v5 = vld [vmem:[#allocation2 + $0xc] ss:$24 sps:$4 sm:$0xff]   ;;  %1129 = vmatprep.subr.bf16.mxu0 %v4353_v3  ;;  %v4362_v8 = vld [vmem:[#allocation2 + $0x3c] ss:$24 sps:$4 sm:$0xff]  }
  0x48   : > { %s6015_s28 = smov (!%p461_p9, %s4925_s28), 1  ;;  %v4358_v6 = vld [vmem:[#allocation2 + $0x8] ss:$24 sps:$4 sm:$0xff]   ;;  %v4359_v7 = vld [vmem:[#allocation2 + $0x34] ss:$24 sps:$4 sm:$0xff]   ;;  %1170 = vmatprep.subr.bf16.mxu1 %v4356_v5  ;;  %1130 = vmatpush1.bf16.msra.mxu0 %v4355_v4  ;;  %vm1349_vm1 = vcmask 1043456  }
  0x49   : > { %s4282_s29 = sshll.u32 %s6015_s28, 4  ;;  %1171 = vmatpush1.bf16.msra.mxu1 %v4358_v6  ;;  %v4361_v9 = vld [vmem:[#allocation2 + $0x30] ss:$24 sps:$4 sm:$0xff]   ;;  %1131 = vmatprep.subr.bf16.mxu0 %v4359_v7  ;;  %v4365_v11 = vld [vmem:[#allocation2 + $0x64] ss:$24 sps:$4 sm:$0xff]   ;;  %vm1332_vm3 = vcmask 64512  }
  0x4a   : > { %s5011_s17 = scalar_lea.vmem %s5991_s0, %s4282_s29  ;;  %v4364_v10 = vld [vmem:[#allocation2 + $0x38] ss:$24 sps:$4 sm:$0xff]   ;;  %1172 = vmatprep.subr.bf16.mxu1 %v4362_v8  ;;  %v4368_v12 = vld [vmem:[#allocation2 + $0x6c] ss:$24 sps:$4 sm:$0xff]   ;;  %v4370_v14 = vld [vmem:[#allocation2 + $0x68] ss:$24 sps:$4 sm:$0xff]   ;;  %s470_s15 = scalar_lea.vmem %s6004_s13, %s4282_s29 }
  0x4b   : > { %v5014_v0 = vld [vmem:[%s5011_s17] sm:$0xff]  ;;  %v5017_v1 = vld [vmem:[%s5011_s17 + $0x8] sm:$0xff]  ;;  %v4374_v16 = vld [vmem:[#allocation2 + $0x9c] ss:$24 sps:$4 sm:$0xff]  }
  0x4c   : > { %v476_v2 = vadd.f32 %v5017_v1, %v5014_v0  ;;  %1132 = vmatpush1.bf16.msra.mxu0 %v4361_v9  ;;  %v4367_v13 = vld [vmem:[#allocation2 + $0x60] ss:$24 sps:$4 sm:$0xff]   ;;  %v4371_v15 = vld [vmem:[#allocation2 + $0x94] ss:$24 sps:$4 sm:$0xff]   ;;  %v4373_v17 = vld [vmem:[#allocation2 + $0x90] ss:$24 sps:$4 sm:$0xff]  }
  0x4d   : > { %1173 = vmatpush1.bf16.msra.mxu1 %v4364_v10  ;;  %1133 = vmatprep.subr.bf16.mxu0 %v4365_v11  ;;  %v4376_v18 = vld [vmem:[#allocation2 + $0x98] ss:$24 sps:$4 sm:$0xff]   ;;  %v4377_v19 = vld [vmem:[#allocation2 + $0xc4] ss:$24 sps:$4 sm:$0xff]   ;;  %v4382_v22 = vld [vmem:[#allocation2 + $0xc8] ss:$24 sps:$4 sm:$0xff]  }
  0x4e   : > { %477 = vadd.xlane.f32.xlu0 %v476_v2  ;;  %1174 = vmatprep.subr.bf16.mxu1 %v4368_v12  ;;  %v4380_v20 = vld [vmem:[#allocation2 + $0xcc] ss:$24 sps:$4 sm:$0xff]   ;;  %v4379_v21 = vld [vmem:[#allocation2 + $0xc0] ss:$24 sps:$4 sm:$0xff]   ;;  %v4386_v24 = vld [vmem:[#allocation2 + $0xfc] ss:$24 sps:$4 sm:$0xff]  }
  0x4f   : > { %v4383_v23 = vld [vmem:[#allocation2 + $0xf4] ss:$24 sps:$4 sm:$0xff]   ;;  %v4385_v25 = vld [vmem:[#allocation2 + $0xf0] ss:$24 sps:$4 sm:$0xff]   ;;  %v4389_v27 = vld [vmem:[#allocation2 + $0x124] ss:$24 sps:$4 sm:$0xff]  }
  0x50   : > { %1134 = vmatpush1.bf16.msra.mxu0 %v4367_v13  ;;  %v4388_v26 = vld [vmem:[#allocation2 + $0xf8] ss:$24 sps:$4 sm:$0xff]   ;;  %v4392_v28 = vld [vmem:[#allocation2 + $0x12c] ss:$24 sps:$4 sm:$0xff]   ;;  %v4394_v30 = vld [vmem:[#allocation2 + $0x128] ss:$24 sps:$4 sm:$0xff]   ;;  %v494_v13 = vlaneseq }
  0x51   : > { %1175 = vmatpush1.bf16.msra.mxu1 %v4370_v14  ;;  %1135 = vmatprep.subr.bf16.mxu0 %v4371_v15  ;;  %v4391_v29 = vld [vmem:[#allocation2 + $0x120] ss:$24 sps:$4 sm:$0xff]   ;;  %v4395_v31 = vld [vmem:[#allocation2 + $0x154] ss:$24 sps:$4 sm:$0xff]   ;;  %v4397_v33 = vld [vmem:[#allocation2 + $0x150] ss:$24 sps:$4 sm:$0xff]  }
  0x52   : > { %1176 = vmatprep.subr.bf16.mxu1 %v4374_v16  ;;  %v4398_v32 = vld [vmem:[#allocation2 + $0x15c] ss:$24 sps:$4 sm:$0xff]   ;;  %v4400_v34 = vld [vmem:[#allocation2 + $0x158] ss:$24 sps:$4 sm:$0xff]   ;;  %v4404_v36 = vld [vmem:[#allocation2 + $0x18c] ss:$24 sps:$4 sm:$0xff]  }
  0x53   : > { %v4401_v35 = vld [vmem:[#allocation2 + $0x184] ss:$24 sps:$4 sm:$0xff]   ;;  %v4403_v37 = vld [vmem:[#allocation2 + $0x180] ss:$24 sps:$4 sm:$0xff]   ;;  %v4407_v39 = vld [vmem:[#allocation2 + $0x1b4] ss:$24 sps:$4 sm:$0xff]  }
  0x54   : > { %1136 = vmatpush1.bf16.msra.mxu0 %v4373_v17  ;;  %v4406_v38 = vld [vmem:[#allocation2 + $0x188] ss:$24 sps:$4 sm:$0xff]   ;;  %v4410_v40 = vld [vmem:[#allocation2 + $0x1bc] ss:$24 sps:$4 sm:$0xff]   ;;  %v4412_v42 = vld [vmem:[#allocation2 + $0x1b8] ss:$24 sps:$4 sm:$0xff]  }
  0x55   : > { %1177 = vmatpush1.bf16.msra.mxu1 %v4376_v18  ;;  %1137 = vmatprep.subr.bf16.mxu0 %v4377_v19  ;;  %v4409_v41 = vld [vmem:[#allocation2 + $0x1b0] ss:$24 sps:$4 sm:$0xff]   ;;  %v4413_v43 = vld [vmem:[#allocation2 + $0x1e4] ss:$24 sps:$4 sm:$0xff]   ;;  %v4415_v51 = vld [vmem:[#allocation2 + $0x1e0] ss:$24 sps:$4 sm:$0xff]  }
  0x56   : > { %1178 = vmatprep.subr.bf16.mxu1 %v4380_v20  ;;  %v4416_v52 = vld [vmem:[#allocation2 + $0x1ec] ss:$24 sps:$4 sm:$0xff]   ;;  %v4418_v53 = vld [vmem:[#allocation2 + $0x1e8] ss:$24 sps:$4 sm:$0xff]   ;;  %v4422_v56 = vld [vmem:[#allocation2 + $0x21c] ss:$24 sps:$4 sm:$0xff]  }
  0x57   : > { %v4419_v54 = vld [vmem:[#allocation2 + $0x214] ss:$24 sps:$4 sm:$0xff]   ;;  %v4421_v55 = vld [vmem:[#allocation2 + $0x210] ss:$24 sps:$4 sm:$0xff]   ;;  %v4425_v58 = vld [vmem:[#allocation2 + $0x244] ss:$24 sps:$4 sm:$0xff]  }
  0x58   : > { %1138 = vmatpush1.bf16.msra.mxu0 %v4379_v21  ;;  %v4424_v57 = vld [vmem:[#allocation2 + $0x218] ss:$24 sps:$4 sm:$0xff]   ;;  %v4428_v60 = vld [vmem:[#allocation2 + $0x24c] ss:$24 sps:$4 sm:$0xff]   ;;  %v4430_v61 = vld [vmem:[#allocation2 + $0x248] ss:$24 sps:$4 sm:$0xff]  }
  0x59   : > { %1179 = vmatpush1.bf16.msra.mxu1 %v4382_v22  ;;  %1139 = vmatprep.subr.bf16.mxu0 %v4383_v23  ;;  %v4427_v59 = vld [vmem:[#allocation2 + $0x240] ss:$24 sps:$4 sm:$0xff]   ;;  %v4431_v62 = vld [vmem:[#allocation2 + $0x274] ss:$24 sps:$4 sm:$0xff]   ;;  %v4437_v2 = vld [vmem:[#allocation2 + $0x2a4] ss:$24 sps:$4 sm:$0xff]  }
  0x5a   : > { %1180 = vmatprep.subr.bf16.mxu1 %v4386_v24  ;;  %v4434_v63 = vld [vmem:[#allocation2 + $0x27c] ss:$24 sps:$4 sm:$0xff]   ;;  %v4440_v3 = vld [vmem:[#allocation2 + $0x2ac] ss:$24 sps:$4 sm:$0xff]   ;;  %v4439_v4 = vld [vmem:[#allocation2 + $0x2a0] ss:$24 sps:$4 sm:$0xff]  }
  0x5b   : > { %v4442_v5 = vld [vmem:[#allocation2 + $0x2a8] ss:$24 sps:$4 sm:$0xff]   ;;  %v4443_v6 = vld [vmem:[#allocation2 + $0x2d4] ss:$24 sps:$4 sm:$0xff]   ;;  %v4448_v9 = vld [vmem:[#allocation2 + $0x2d8] ss:$24 sps:$4 sm:$0xff]  }
  0x5c   : > { %1140 = vmatpush1.bf16.msra.mxu0 %v4385_v25  ;;  %v4446_v7 = vld [vmem:[#allocation2 + $0x2dc] ss:$24 sps:$4 sm:$0xff]   ;;  %v4445_v8 = vld [vmem:[#allocation2 + $0x2d0] ss:$24 sps:$4 sm:$0xff]   ;;  %v5032_v15 = vshrl.u32 %v494_v13, 7 }
  0x5d   : > { %1181 = vmatpush1.bf16.msra.mxu1 %v4388_v26  ;;  %1141 = vmatprep.subr.bf16.mxu0 %v4389_v27  ;;  %v4451_v10 = vld [vmem:[#allocation2 + $0x14] ss:$24 sps:$4 sm:$0xff]   ;;  %v474_v18 = vld [vmem:[%s5992_s1] sm:$0x3] }
  0x5e   : > { %1182 = vmatprep.subr.bf16.mxu1 %v4392_v28  ;;  %v5035_v16 = vsub.s32 1, %v5032_v15  ;;  %v5038_v17 = vsub.s32 0, %v5032_v15  ;;  %v475_v19 = vld [vmem:[%s5993_s2] sm:$0x3] }
  0x60   : > { %1142 = vmatpush1.bf16.msra.mxu0 %v4391_v29  ;;  %v501_v20 = vrot.slane %v474_v18, %v5035_v16  ;;  %v497_v21 = vrot.slane %v474_v18, %v5038_v17  ;;  %v514_v24 = vrot.slane %v475_v19, %v5035_v16  ;;  %v510_v26 = vrot.slane %v475_v19, %v5038_v17 }
  0x61   : > { %1183 = vmatpush1.bf16.msra.mxu1 %v4394_v30  ;;  %1143 = vmatprep.subr.bf16.mxu0 %v4395_v31 }
  0x62   : > { %1184 = vmatprep.subr.bf16.mxu1 %v4398_v32  ;;  %v4449_v32 = vld [vmem:[#allocation2 + $0x10] ss:$24 sps:$4 sm:$0xff]  }
  0x64   : > { %1144 = vmatpush1.bf16.msra.mxu0 %v4397_v33 }
  0x65   : > { %1185 = vmatpush1.bf16.msra.mxu1 %v4400_v34  ;;  %1145 = vmatprep.subr.bf16.mxu0 %v4401_v35  ;;  %v4454_v34 = vld [vmem:[#allocation2 + $0x44] ss:$24 sps:$4 sm:$0xff]   ;;  %v4452_v35 = vld [vmem:[#allocation2 + $0x40] ss:$24 sps:$4 sm:$0xff]  }
  0x66   : > { %1186 = vmatprep.subr.bf16.mxu1 %v4404_v36  ;;  %v4457_v36 = vld [vmem:[#allocation2 + $0x74] ss:$24 sps:$4 sm:$0xff]  }
  0x68   : > { %1146 = vmatpush1.bf16.msra.mxu0 %v4403_v37  ;;  %v4455_v37 = vld [vmem:[#allocation2 + $0x70] ss:$24 sps:$4 sm:$0xff]  }
  0x69   : > { %1187 = vmatpush1.bf16.msra.mxu1 %v4406_v38  ;;  %1147 = vmatprep.subr.bf16.mxu0 %v4407_v39  ;;  %v4460_v38 = vld [vmem:[#allocation2 + $0xa4] ss:$24 sps:$4 sm:$0xff]   ;;  %v4458_v39 = vld [vmem:[#allocation2 + $0xa0] ss:$24 sps:$4 sm:$0xff]  }
  0x6a   : > { %1188 = vmatprep.subr.bf16.mxu1 %v4410_v40  ;;  %v4463_v40 = vld [vmem:[#allocation2 + $0xd4] ss:$24 sps:$4 sm:$0xff]  }
  0x6c   : > { %1148 = vmatpush1.bf16.msra.mxu0 %v4409_v41  ;;  %v4461_v41 = vld [vmem:[#allocation2 + $0xd0] ss:$24 sps:$4 sm:$0xff]  }
  0x6d   : > { %1189 = vmatpush1.bf16.msra.mxu1 %v4412_v42  ;;  %1149 = vmatprep.subr.bf16.mxu0 %v4413_v43  ;;  %v4466_v42 = vld [vmem:[#allocation2 + $0x104] ss:$24 sps:$4 sm:$0xff]   ;;  %v4464_v43 = vld [vmem:[#allocation2 + $0x100] ss:$24 sps:$4 sm:$0xff]  }
  0x6e   : > { %1190 = vmatprep.subr.bf16.mxu1 %v4416_v52  ;;  %v4481_v52 = vld [vmem:[#allocation2 + $0x1f4] ss:$24 sps:$4 sm:$0xff]  }
  0x70   : > { %1150 = vmatpush1.bf16.msra.mxu0 %v4415_v51  ;;  %v4476_v51 = vld [vmem:[#allocation2 + $0x1c0] ss:$24 sps:$4 sm:$0xff]  }
  0x71   : > { %1191 = vmatpush1.bf16.msra.mxu1 %v4418_v53  ;;  %1151 = vmatprep.subr.bf16.mxu0 %v4419_v54  ;;  %v4479_v53 = vld [vmem:[#allocation2 + $0x1f0] ss:$24 sps:$4 sm:$0xff]   ;;  %v4484_v54 = vld [vmem:[#allocation2 + $0x224] ss:$24 sps:$4 sm:$0xff]  }
  0x72   : > { %1192 = vmatprep.subr.bf16.mxu1 %v4422_v56  ;;  %v4487_v56 = vld [vmem:[#allocation2 + $0x254] ss:$24 sps:$4 sm:$0xff]  }
  0x74   : > { %1152 = vmatpush1.bf16.msra.mxu0 %v4421_v55  ;;  %v4482_v55 = vld [vmem:[#allocation2 + $0x220] ss:$24 sps:$4 sm:$0xff]  }
  0x75   : > { %1193 = vmatpush1.bf16.msra.mxu1 %v4424_v57  ;;  %1153 = vmatprep.subr.bf16.mxu0 %v4425_v58  ;;  %v4485_v57 = vld [vmem:[#allocation2 + $0x250] ss:$24 sps:$4 sm:$0xff]   ;;  %v4490_v58 = vld [vmem:[#allocation2 + $0x284] ss:$24 sps:$4 sm:$0xff]  }
  0x76   : > { %1194 = vmatprep.subr.bf16.mxu1 %v4428_v60  ;;  %v4493_v60 = vld [vmem:[#allocation2 + $0x2b4] ss:$24 sps:$4 sm:$0xff]  }
  0x78   : > { %1154 = vmatpush1.bf16.msra.mxu0 %v4427_v59  ;;  %v4488_v59 = vld [vmem:[#allocation2 + $0x280] ss:$24 sps:$4 sm:$0xff]  }
  0x79   : > { %1195 = vmatpush1.bf16.msra.mxu1 %v4430_v61  ;;  %1155 = vmatprep.subr.bf16.mxu0 %v4431_v62  ;;  %v4491_v61 = vld [vmem:[#allocation2 + $0x2b0] ss:$24 sps:$4 sm:$0xff]   ;;  %v4496_v62 = vld [vmem:[#allocation2 + $0x2e4] ss:$24 sps:$4 sm:$0xff]  }
  0x7a   : > { %1196 = vmatprep.subr.bf16.mxu1 %v4434_v63  ;;  %v4494_v63 = vld [vmem:[#allocation2 + $0x2e0] ss:$24 sps:$4 sm:$0xff]  }
  0xdb   : > { %v478_v44 = vpop.xlane.xlu0 %477 }
  0xdc   : > { %v480_v45 = vmul.f32 0.00390625, %v478_v44  ;;  %v4469_v44 = vld [vmem:[#allocation2 + $0x134] ss:$24 sps:$4 sm:$0xff]  }
  0xde   : > { %v5022_v46 = vsub.f32 %v5014_v0, %v480_v45  ;;  %v5025_v47 = vsub.f32 %v5017_v1, %v480_v45  ;;  %v4433_v0 = vld [vmem:[#allocation2 + $0x270] ss:$24 sps:$4 sm:$0xff]  }
  0xdf   : > { %v4436_v1 = vld [vmem:[#allocation2 + $0x278] ss:$24 sps:$4 sm:$0xff]   ;;  %1156 = vmatpush1.bf16.msra.mxu0 %v4433_v0  ;;  %v4845_v0 = vmov 0.0  }
  0xe0   : > { %v483_v48 = vmul.f32 %v5022_v46, %v5022_v46  ;;  %v484_v49 = vmul.f32 %v5025_v47, %v5025_v47  ;;  %1197 = vmatpush1.bf16.msra.mxu1 %v4436_v1  ;;  %1157 = vmatprep.subr.bf16.mxu0 %v4437_v2  ;;  %v4467_v45 = vld [vmem:[#allocation2 + $0x130] ss:$24 sps:$4 sm:$0xff]   ;;  %v629_v1 = vsub.s32 2, %v5032_v15  ;;  %v5064_v2 = vld [vmem:[%s5995_s4] sm:$0x3f] }
  0xe1   : > { %1198 = vmatprep.subr.bf16.mxu1 %v4440_v3 }
  0xe2   : > { %v485_v50 = vadd.f32 %v484_v49, %v483_v48  ;;  %v4475_v48 = vld [vmem:[#allocation2 + $0x194] ss:$24 sps:$4 sm:$0xff]   ;;  %v4473_v49 = vld [vmem:[#allocation2 + $0x190] ss:$24 sps:$4 sm:$0xff]   ;;  %v630_v3 = vrot.slane %v5064_v2, %v629_v1 }
  0xe3   : > { %1158 = vmatpush1.bf16.msra.mxu0 %v4439_v4 }
  0xe4   : > { %486 = vadd.xlane.f32.xlu0 %v485_v50  ;;  %1199 = vmatpush1.bf16.msra.mxu1 %v4442_v5  ;;  %v4478_v50 = vld [vmem:[#allocation2 + $0x1c4] ss:$24 sps:$4 sm:$0xff]  }
  0xe5   : > { %1159 = vmatprep.subr.bf16.mxu0 %v4443_v6  ;;  %1200 = vmatprep.subr.bf16.mxu1 %v4446_v7 }
  0xe7   : > { %1160 = vmatpush1.bf16.msra.mxu0 %v4445_v8 }
  0xe8   : > { %1201 = vmatpush1.bf16.msra.mxu1 %v4448_v9  ;;  %1211 = vmatprep.subr.bf16.mxu0 %v4451_v10  ;;  %v622_v9 = vrot.slane %v5064_v2, %v5038_v17 }
  0xe9   : > { %4292 = vmatprep.subr.bf16.mxu1 %v4845_v0 }
 0x171   : > { %v487_v11 = vpop.xlane.xlu0 %486 }
 0x172   : > { %v488_v12 = vmul.f32 0.00390625, %v487_v11 }
 0x174   : > { %v489_v14 = vadd.f32 1e-12, %v488_v12 }
 0x176   : > { %4737 = vrsqrt.f32 %v489_v14 }
 0x180   : > { %v4738_v22 = vpop.eup %4737 }
 0x181   : > { %v492_v23 = vmul.f32 %v4738_v22, %v5025_v47  ;;  %v491_v25 = vmul.f32 %v4738_v22, %v5022_v46  ;;  %v4472_v46 = vld [vmem:[#allocation2 + $0x164] ss:$24 sps:$4 sm:$0xff]   ;;  %v4470_v47 = vld [vmem:[#allocation2 + $0x160] ss:$24 sps:$4 sm:$0xff]   ;;  %v641_v22 = vsub.s32 5, %v5032_v15 }
 0x183   : > { %v505_v27 = vmul.f32 %v501_v20, %v492_v23  ;;  %v504_v28 = vmul.f32 %v497_v21, %v491_v25  ;;  %v637_v21 = vsub.s32 4, %v5032_v15 }
 0x185   : > { %v518_v29 = vadd.f32 %v514_v24, %v505_v27  ;;  %v517_v30 = vadd.f32 %v510_v26, %v504_v28  ;;  %v638_v23 = vrot.slane %v5064_v2, %v637_v21  ;;  %v642_v24 = vrot.slane %v5064_v2, %v641_v22 }
 0x187   : > { %v616_v31 = vpack.c.bf16 %v518_v29, %v518_v29  ;;  %v5052_v33 = vpack.c.bf16 %v517_v30, %v517_v30 }
 0x189   : > { %1161 = vmatprep.mubr.bf16.mxu0 %v616_v31  ;;  %1202 = vmatprep.mubr.bf16.mxu1 %v616_v31 }
 0x18a   : > { %1162 = vmatmul.mubr.bf16.vlgmr.msra.gmra.mrb[0].mxu0 %v5052_v33  ;;  %1203 = vmatmul.mubr.bf16.vlgmr.msra.gmra.mrb[0].mxu1 %v5052_v33 }
 0x18b   : > { %1212 = vmatpush1.bf16.msra.mxu0 %v4449_v32  ;;  %1243 = vmatprep.mubr.bf16.mxu0 %v616_v31 }
 0x18c   : > { %1213 = vmatprep.subr.bf16.mxu0 %v4454_v34  ;;  %4294 = vmatprep.mubr.msk.bf16.mxu1 %vm4846_vm0, %v4845_v0 }
 0x18f   : > { %1214 = vmatpush1.bf16.msra.mxu0 %v4452_v35  ;;  %v1253_v35 = vand.u32 127, %v494_v13 }
 0x190   : > { %1215 = vmatprep.subr.bf16.mxu0 %v4457_v36 }
 0x191   : > { %vm1254_vm2 = vcmp.lt.s32.totalorder %v1253_v35, 5 }
 0x193   : > { %1216 = vmatpush1.bf16.msra.mxu0 %v4455_v37  ;;  %v4847_v37 = vmov -1e+09  }
 0x194   : > { %1217 = vmatprep.subr.bf16.mxu0 %v4460_v38  ;;  %v5090_v38 = vsel %vm1254_vm2, 0.0, %v4847_v37  ;;  %v4523_v37 = vld [vmem:[#allocation4 + $0x84] ss:$8 sps:$4 sm:$0xff]  }
 0x197   : > { %1218 = vmatpush1.bf16.msra.mxu0 %v4458_v39 }
 0x198   : > { %1219 = vmatprep.subr.bf16.mxu0 %v4463_v40 }
 0x19b   : > { %1220 = vmatpush1.bf16.msra.mxu0 %v4461_v41 }
 0x19c   : > { %1221 = vmatprep.subr.bf16.mxu0 %v4466_v42 }
 0x19f   : > { %1222 = vmatpush1.bf16.msra.mxu0 %v4464_v43 }
 0x1a0   : > { %1223 = vmatprep.subr.bf16.mxu0 %v4469_v44 }
 0x1a3   : > { %1224 = vmatpush1.bf16.msra.mxu0 %v4467_v45 }
 0x1a4   : > { %1225 = vmatprep.subr.bf16.mxu0 %v4472_v46 }
 0x1a7   : > { %1226 = vmatpush1.bf16.msra.mxu0 %v4470_v47 }
 0x1a8   : > { %1227 = vmatprep.subr.bf16.mxu0 %v4475_v48 }
 0x1ab   : > { %1228 = vmatpush1.bf16.msra.mxu0 %v4473_v49  ;;  %v4497_v49 = vld [vmem:[#allocation4] ss:$8 sps:$4 sm:$0xff]  }
 0x1ac   : > { %1229 = vmatprep.subr.bf16.mxu0 %v4478_v50  ;;  %v4499_v50 = vld [vmem:[#allocation4 + $0x4] ss:$8 sps:$4 sm:$0xff]  }
 0x1af   : > { %1230 = vmatpush1.bf16.msra.mxu0 %v4476_v51  ;;  %v4502_v51 = vld [vmem:[#allocation4 + $0x14] ss:$8 sps:$4 sm:$0xff]  }
 0x1b0   : > { %1231 = vmatprep.subr.bf16.mxu0 %v4481_v52  ;;  %v4500_v52 = vld [vmem:[#allocation4 + $0x10] ss:$8 sps:$4 sm:$0xff]  }
 0x1b3   : > { %1232 = vmatpush1.bf16.msra.mxu0 %v4479_v53  ;;  %v4505_v53 = vld [vmem:[#allocation4 + $0x24] ss:$8 sps:$4 sm:$0xff]  }
 0x1b4   : > { %1233 = vmatprep.subr.bf16.mxu0 %v4484_v54  ;;  %v4503_v54 = vld [vmem:[#allocation4 + $0x20] ss:$8 sps:$4 sm:$0xff]  }
 0x1b7   : > { %1234 = vmatpush1.bf16.msra.mxu0 %v4482_v55  ;;  %v4508_v55 = vld [vmem:[#allocation4 + $0x34] ss:$8 sps:$4 sm:$0xff]  }
 0x1b8   : > { %1235 = vmatprep.subr.bf16.mxu0 %v4487_v56  ;;  %v4506_v56 = vld [vmem:[#allocation4 + $0x30] ss:$8 sps:$4 sm:$0xff]  }
 0x1bb   : > { %1236 = vmatpush1.bf16.msra.mxu0 %v4485_v57  ;;  %v4511_v57 = vld [vmem:[#allocation4 + $0x44] ss:$8 sps:$4 sm:$0xff]  }
 0x1bc   : > { %1237 = vmatprep.subr.bf16.mxu0 %v4490_v58  ;;  %v4509_v58 = vld [vmem:[#allocation4 + $0x40] ss:$8 sps:$4 sm:$0xff]  }
 0x1bf   : > { %1238 = vmatpush1.bf16.msra.mxu0 %v4488_v59  ;;  %v4514_v59 = vld [vmem:[#allocation4 + $0x54] ss:$8 sps:$4 sm:$0xff]  }
 0x1c0   : > { %1239 = vmatprep.subr.bf16.mxu0 %v4493_v60  ;;  %v4512_v60 = vld [vmem:[#allocation4 + $0x50] ss:$8 sps:$4 sm:$0xff]  }
 0x1c3   : > { %1240 = vmatpush1.bf16.msra.mxu0 %v4491_v61  ;;  %v4517_v61 = vld [vmem:[#allocation4 + $0x64] ss:$8 sps:$4 sm:$0xff]  }
 0x1c4   : > { %1241 = vmatprep.subr.bf16.mxu0 %v4496_v62  ;;  %v4515_v62 = vld [vmem:[#allocation4 + $0x60] ss:$8 sps:$4 sm:$0xff]  }
 0x1c7   : > { %1242 = vmatpush1.bf16.msra.mxu0 %v4494_v63  ;;  %v4520_v63 = vld [vmem:[#allocation4 + $0x74] ss:$8 sps:$4 sm:$0xff]  }
 0x1c8   : > { %1699 = vmatprep.subr.bf16.mxu0 %v4499_v50  ;;  %v4532_v50 = vld [vmem:[#allocation4 + $0xb4] ss:$8 sps:$4 sm:$0xff]  }
 0x1ca   : > { %1244 = vmatmul.mubr.bf16.vlgmr.msra.gmra.mrb[4].mxu0 %v5052_v33 }
 0x1cb   : > { %1700 = vmatpush1.bf16.msra.mxu0 %v4497_v49  ;;  %v4527_v49 = vld [vmem:[#allocation4 + $0xa0] ss:$8 sps:$4 sm:$0xff]  }
 0x1cc   : > { %1701 = vmatprep.subr.bf16.mxu0 %v4502_v51  ;;  %v4530_v51 = vld [vmem:[#allocation4 + $0xb0] ss:$8 sps:$4 sm:$0xff]  }
 0x1cf   : > { %1702 = vmatpush1.bf16.msra.mxu0 %v4500_v52  ;;  %v4535_v52 = vld [vmem:[#allocation4 + $0xc4] ss:$8 sps:$4 sm:$0xff]  }
 0x1d0   : > { %1703 = vmatprep.subr.bf16.mxu0 %v4505_v53  ;;  %v4533_v53 = vld [vmem:[#allocation4 + $0xc0] ss:$8 sps:$4 sm:$0xff]  }
 0x1d3   : > { %1704 = vmatpush1.bf16.msra.mxu0 %v4503_v54  ;;  %v4538_v54 = vld [vmem:[#allocation4 + $0xd4] ss:$8 sps:$4 sm:$0xff]  }
 0x1d4   : > { %1705 = vmatprep.subr.bf16.mxu0 %v4508_v55  ;;  %v4536_v55 = vld [vmem:[#allocation4 + $0xd0] ss:$8 sps:$4 sm:$0xff]  }
 0x1d7   : > { %1706 = vmatpush1.bf16.msra.mxu0 %v4506_v56  ;;  %v4541_v56 = vld [vmem:[#allocation4 + $0xe4] ss:$8 sps:$4 sm:$0xff]  }
 0x1d8   : > { %1707 = vmatprep.subr.bf16.mxu0 %v4511_v57  ;;  %v4539_v57 = vld [vmem:[#allocation4 + $0xe0] ss:$8 sps:$4 sm:$0xff]  }
 0x1db   : > { %1708 = vmatpush1.bf16.msra.mxu0 %v4509_v58  ;;  %v4544_v58 = vld [vmem:[#allocation4 + $0xf4] ss:$8 sps:$4 sm:$0xff]  }
 0x1dc   : > { %1709 = vmatprep.subr.bf16.mxu0 %v4514_v59  ;;  %v4542_v59 = vld [vmem:[#allocation4 + $0xf0] ss:$8 sps:$4 sm:$0xff]  }
 0x1df   : > { %1710 = vmatpush1.bf16.msra.mxu0 %v4512_v60 }
 0x1e0   : > { %1711 = vmatprep.subr.bf16.mxu0 %v4517_v61 }
 0x1e3   : > { %1712 = vmatpush1.bf16.msra.mxu0 %v4515_v62 }
 0x1e4   : > { %1713 = vmatprep.subr.bf16.mxu0 %v4520_v63 }
 0x25d   : > { %v1163_v4 = vpop.f32.mrb[0].mxu0  ;;  %v1204_v5 = vpop.f32.mrb[0].mxu1 }
 0x25e   : > { %v1205_v6 = vadd.f32 %v1204_v5, %v630_v3  ;;  %v5069_v7 = vpop.f32.mrb[1].mxu0  ;;  %v5071_v8 = vpop.f32.mrb[1].mxu1  ;;  %v1164_v19 = vadd.f32 %v1163_v4, %v622_v9  ;;  %v4518_v3 = vld [vmem:[#allocation4 + $0x70] ss:$8 sps:$4 sm:$0xff]   ;;  %v633_v5 = vsub.s32 3, %v5032_v15 }
 0x25f   : > { %v1167_v10 = vpop.f32.mrb[2].mxu0  ;;  %v1208_v11 = vpop.f32.mrb[2].mxu1  ;;  %1714 = vmatpush1.bf16.msra.mxu0 %v4518_v3 }
 0x260   : > { %v1289_v12 = vpack.c.bf16 %v1205_v6, %v1205_v6  ;;  %v1168_v14 = vpop.f32.mrb[3].mxu0  ;;  %v1209_v18 = vpop.f32.mrb[3].mxu1  ;;  %v1288_v20 = vpack.c.bf16 %v1164_v19, %v1164_v19  ;;  %v634_v6 = vrot.slane %v5064_v2, %v633_v5 }
 0x262   : > { %4293 = vmatpush3.bf16.xpose.msra.mxu1 %v1289_v12  ;;  %v1207_v10 = vadd.f32 %v5071_v8, %v634_v6  ;;  %v626_v12 = vrot.slane %v5064_v2, %v5035_v16  ;;  %v4848_v2 = vmov 0  }
 0x263   : > { %4298 = vmatprep.subr.bf16.mxu1 %v4845_v0  ;;  %1731 = vmatprep.mubr.bf16.mxu0 %v4848_v2 }
 0x264   : > { %v1395_v18 = vpack.c.bf16 %v1207_v10, %v1207_v10  ;;  %v1166_v19 = vadd.f32 %v5069_v7, %v626_v12 }
 0x269   : > { %4295 = vmatmul.mubr.bf16.vlgmr.msra.gmra.mrb[4].mxu1 %v1288_v20  ;;  %v1394_v20 = vpack.c.bf16 %v1166_v19, %v1166_v19  ;;  %v4765_v19 = vld [vmem:[%s5011_s17] sm:$0xff] }
 0x26a   : > { %4300 = vmatprep.mubr.msk.bf16.mxu1 %vm4846_vm0, %v4845_v0 }
 0x29d   : > { %v1245_v25 = vpop.f32.mrb[4].mxu0 }
 0x29e   : > { %v1246_v26 = vadd.f32 %v1245_v25, %v638_v23  ;;  %v1247_v27 = vpop.f32.mrb[5].mxu0 }
 0x29f   : > { %v1248_v28 = vadd.f32 %v1247_v27, %v642_v24  ;;  %v1249_v29 = vpop.f32.mrb[6].mxu0 }
 0x2a0   : > { %v1345_v30 = vpack.c.bf16 %v1246_v26, %v1246_v26  ;;  %v1250_v31 = vpop.f32.mrb[7].mxu0 }
 0x2a1   : > { %v1450_v32 = vpack.c.bf16 %v1248_v28, %v1248_v28 }
 0x2a2   : > { %v1351_v33 = vsel %vm1349_vm1, %v1345_v30, 0 }
 0x2a3   : > { %v5086_v34 = vsel %vm1349_vm1, %v1450_v32, 0  ;;  %4299 = vmatpush3.bf16.msra.mxu1 %v1351_v33 }
 0x2a4   : > { %4304 = vmatprep.subr.bf16.mxu1 %v4845_v0 }
 0x33c   : > { %v1324_v36 = vpop.f32.mrb[4].mxu1 }
 0x33d   : > { %v1330_v39 = vmul.f32 0.088388346, %v1324_v36  ;;  %v4296_v40 = vpop.f32.mrb[5].mxu1 }
 0x33e   : > { %v1327_v41 = vpop.f32.mrb[6].mxu1 }
 0x33f   : > { %v4297_v42 = vpop.f32.mrb[7].mxu1  ;;  %v1331_v43 = vadd.f32 %v1330_v39, %v5090_v38 }
 0x341   : > { %v1333_v44 = vsel %vm1332_vm3, %v1331_v43, -inf }
 0x342   : > { %1334 = vmax.xlane.f32.xlu1 %v1333_v44 }
 0x3cf   : > { %v1335_v45 = vpop.xlane.xlu1 %1334 }
 0x3d0   : > { %v1336_v46 = vsub.f32 %v1331_v43, %v1335_v45  ;;  %v4521_v45 = vld [vmem:[#allocation4 + $0x80] ss:$8 sps:$4 sm:$0xff]  }
 0x3d2   : > { %v1337_v47 = vmul.f32 1.442695, %v1336_v46 }
 0x3d4   : > { %4739 = vpow2.f32 %v1337_v47  ;;  %v4526_v47 = vld [vmem:[#allocation4 + $0x94] ss:$8 sps:$4 sm:$0xff]  }
 0x3de   : > { %v4740_v13 = vpop.eup %4739 }
 0x3df   : > { %v1339_v48 = vsel %vm1332_vm3, %v4740_v13, 0.0 }
 0x3e0   : > { %1340 = vadd.xlane.f32.xlu1 %v1339_v48  ;;  %v4529_v48 = vld [vmem:[#allocation4 + $0xa4] ss:$8 sps:$4 sm:$0xff]  }
 0x46d   : > { %v1341_v4 = vpop.xlane.xlu1 %1340 }
 0x46e   : > { %4741 = vrcp.f32 %v1341_v4  ;;  %v1742_v4 = vld [vmem:[%s5997_s6] sm:$0x3] }
 0x46f   : > { %v1747_v10 = vrot.slane %v1742_v4, %v5038_v17 }
 0x478   : > { %v4742_v9 = vpop.eup %4741 }
 0x479   : > { %v1343_v11 = vmul.f32 %v4742_v9, %v4740_v13  ;;  %v4524_v13 = vld [vmem:[#allocation4 + $0x90] ss:$8 sps:$4 sm:$0xff]  }
 0x47b   : > { %v1344_v14 = vpack.c.bf16 %v1343_v11, %v1343_v11 }
 0x47d   : > { %4301 = vmatmul.mubr.msk.bf16.vlgmr.msra.gmra.mrb[8].mxu1 %vm1332_vm3, %v1344_v14  ;;  %v1751_v14 = vrot.slane %v1742_v4, %v5035_v16  ;;  %v1845_v4 = vld [vmem:[%s6000_s9 + $0x168] sm:$0xff] }
 0x47e   : > { %4305 = vmatpush3.bf16.xpose.msra.mxu1 %v1395_v18  ;;  %4306 = vmatprep.mubr.msk.bf16.mxu1 %vm4846_vm0, %v4845_v0 }
 0x47f   : > { %4310 = vmatprep.subr.bf16.mxu1 %v4845_v0 }
 0x485   : > { %4307 = vmatmul.mubr.bf16.vlgmr.msra.gmra.mrb[12].mxu1 %v1394_v20 }
 0x486   : > { %4311 = vmatpush3.bf16.msra.mxu1 %v5086_v34  ;;  %4312 = vmatprep.mubr.msk.bf16.mxu1 %vm4846_vm0, %v4845_v0 }
 0x487   : > { %1578 = vmatprep.subr.bf16.mxu1 %v4523_v37  ;;  %v1813_v37 = vld [vmem:[%s6000_s9 + $0x68] sm:$0xff] }
 0x550   : > { %v1387_v8 = vpop.f32.mrb[8].mxu1 }
 0x551   : > { %v1393_v23 = vpack.c.bf16 %v1387_v8, %v1387_v8  ;;  %v4302_v24 = vpop.f32.mrb[9].mxu1  ;;  %v4766_v8 = vld [vmem:[%s5011_s17 + $0x8] sm:$0xff] }
 0x552   : > { %v1390_v25 = vpop.f32.mrb[10].mxu1 }
 0x553   : > { %v4303_v26 = vpop.f32.mrb[11].mxu1  ;;  %1732 = vmatmul.mubr.bf16.vlgmr.msra.gmra.mrb[8].mxu0 %v1393_v23 }
 0x558   : > { %v1430_v27 = vpop.f32.mrb[12].mxu1 }
 0x559   : > { %v1436_v28 = vmul.f32 0.088388346, %v1430_v27  ;;  %v4308_v7 = vpop.f32.mrb[13].mxu1  ;;  %v1800_v27 = vld [vmem:[%s6000_s9] sm:$0xff] }
 0x55a   : > { %v1433_v29 = vpop.f32.mrb[14].mxu1  ;;  %v1801_v7 = vld [vmem:[%s6000_s9 + $0x8] sm:$0xff] }
 0x55b   : > { %v4309_v30 = vpop.f32.mrb[15].mxu1  ;;  %v1437_v31 = vadd.f32 %v1436_v28, %v5090_v38  ;;  %v1804_v28 = vld [vmem:[%s6000_s9 + $0x20] sm:$0xff] }
 0x55c   : > { %v4024_v29 = vcombine.low %v1800_v27, %v1804_v28  ;;  %v4025_v30 = vcombine.high %v1800_v27, %v1804_v28  ;;  %v1860_v27 = vld [vmem:[%s6000_s9 + $0x1e0] sm:$0xff]  ;;  %v1857_v28 = vld [vmem:[%s6000_s9 + $0x1c8] sm:$0xff] }
 0x55d   : > { %v1438_v32 = vsel %vm1332_vm3, %v1437_v31, -inf }
 0x55e   : > { %1439 = vmax.xlane.f32.xlu0 %v1438_v32  ;;  %v1808_v32 = vld [vmem:[%s6000_s9 + $0x40] sm:$0xff] }
 0x5eb   : > { %v1440_v33 = vpop.xlane.xlu0 %1439 }
 0x5ec   : > { %v1441_v0 = vsub.f32 %v1437_v31, %v1440_v33  ;;  %v1805_v31 = vld [vmem:[%s6000_s9 + $0x28] sm:$0xff]  ;;  %v1812_v33 = vld [vmem:[%s6000_s9 + $0x60] sm:$0xff] }
 0x5ee   : > { %v1442_v34 = vmul.f32 1.442695, %v1441_v0  ;;  %v4026_v0 = vcombine.low %v1801_v7, %v1805_v31 }
 0x5f0   : > { %4743 = vpow2.f32 %v1442_v34  ;;  %v4027_v34 = vcombine.high %v1801_v7, %v1805_v31  ;;  %v1861_v7 = vld [vmem:[%s6000_s9 + $0x1e8] sm:$0xff] }
 0x5f2   : > { %2653 = vmatprep.subr.bf16.mxu0 %v4027_v34  ;;  %v1865_v34 = vld [vmem:[%s6000_s9 + $0x208] sm:$0xff] }
 0x5f3   : > { %2654 = vmatpush1.bf16.msra.mxu0 %v4026_v0  ;;  %v1868_v0 = vld [vmem:[%s6000_s9 + $0x220] sm:$0xff] }
 0x5fa   : > { %v4744_v35 = vpop.eup %4743 }
 0x5fb   : > { %v1444_v36 = vsel %vm1332_vm3, %v4744_v35, 0.0 }
 0x5fc   : > { %1445 = vadd.xlane.f32.xlu1 %v1444_v36  ;;  %v1809_v36 = vld [vmem:[%s6000_s9 + $0x48] sm:$0xff] }
 0x626   : > { %v1733_v39 = vpop.f32.mrb[8].mxu0 }
 0x627   : > { %v1735_v40 = vpop.f32.mrb[9].mxu0 }
 0x628   : > { %v1737_v41 = vpop.f32.mrb[10].mxu0 }
 0x629   : > { %v1738_v42 = vpop.f32.mrb[11].mxu0  ;;  %v1820_v41 = vld [vmem:[%s6000_s9 + $0xa0] sm:$0xff] }
 0x62a   : > { %v1817_v42 = vld [vmem:[%s6000_s9 + $0x88] sm:$0xff] }
 0x689   : > { %v1446_v43 = vpop.xlane.xlu1 %1445 }
 0x68a   : > { %4745 = vrcp.f32 %v1446_v43  ;;  %v1821_v43 = vld [vmem:[%s6000_s9 + $0xa8] sm:$0xff] }
 0x694   : > { %v4746_v38 = vpop.eup %4745 }
 0x695   : > { %v1448_v44 = vmul.f32 %v4746_v38, %v4744_v35  ;;  %v4033_v35 = vcombine.high %v1808_v32, %v1812_v33  ;;  %v4032_v38 = vcombine.low %v1808_v32, %v1812_v33  ;;  %v4083_v32 = vcombine.high %v1857_v28, %v1861_v7  ;;  %v1864_v33 = vld [vmem:[%s6000_s9 + $0x200] sm:$0xff] }
 0x697   : > { %v1449_v46 = vpack.c.bf16 %v1448_v44, %v1448_v44  ;;  %v4034_v44 = vcombine.low %v1809_v36, %v1813_v37 }
 0x699   : > { %4313 = vmatmul.mubr.msk.bf16.vlgmr.msra.gmra.mrb[16].mxu1 %vm1332_vm3, %v1449_v46  ;;  %v4043_v46 = vcombine.high %v1817_v42, %v1821_v43 }
 0x69a   : > { %1579 = vmatpush1.bf16.msra.mxu1 %v4521_v45  ;;  %1610 = vmatprep.mubr.bf16.mxu1 %v4848_v2 }
 0x69b   : > { %1580 = vmatprep.subr.bf16.mxu1 %v4526_v47  ;;  %v1824_v47 = vld [vmem:[%s6000_s9 + $0xc0] sm:$0xff] }
 0x69e   : > { %1581 = vmatpush1.bf16.msra.mxu1 %v4524_v13  ;;  %v1828_v13 = vld [vmem:[%s6000_s9 + $0xe0] sm:$0xff] }
 0x69f   : > { %1582 = vmatprep.subr.bf16.mxu1 %v4529_v48  ;;  %v1825_v48 = vld [vmem:[%s6000_s9 + $0xc8] sm:$0xff] }
 0x6a2   : > { %1583 = vmatpush1.bf16.msra.mxu1 %v4527_v49  ;;  %v1829_v49 = vld [vmem:[%s6000_s9 + $0xe8] sm:$0xff] }
 0x6a3   : > { %1584 = vmatprep.subr.bf16.mxu1 %v4532_v50 }
 0x6a6   : > { %1585 = vmatpush1.bf16.msra.mxu1 %v4530_v51  ;;  %v4042_v51 = vcombine.low %v1817_v42, %v1821_v43  ;;  %v1876_v42 = vld [vmem:[%s6000_s9 + $0x260] sm:$0xff]  ;;  %v1873_v43 = vld [vmem:[%s6000_s9 + $0x248] sm:$0xff] }
 0x6a7   : > { %1586 = vmatprep.subr.bf16.mxu1 %v4535_v52  ;;  %v4049_v52 = vcombine.high %v1824_v47, %v1828_v13 }
 0x6aa   : > { %1587 = vmatpush1.bf16.msra.mxu1 %v4533_v53  ;;  %v4051_v53 = vcombine.high %v1825_v48, %v1829_v49 }
 0x6ab   : > { %1588 = vmatprep.subr.bf16.mxu1 %v4538_v54  ;;  %v1832_v54 = vld [vmem:[%s6000_s9 + $0x100] sm:$0xff] }
 0x6ae   : > { %1589 = vmatpush1.bf16.msra.mxu1 %v4536_v55  ;;  %v1836_v55 = vld [vmem:[%s6000_s9 + $0x120] sm:$0xff] }
 0x6af   : > { %1590 = vmatprep.subr.bf16.mxu1 %v4541_v56  ;;  %v1833_v56 = vld [vmem:[%s6000_s9 + $0x108] sm:$0xff] }
 0x6b2   : > { %1591 = vmatpush1.bf16.msra.mxu1 %v4539_v57  ;;  %v1837_v57 = vld [vmem:[%s6000_s9 + $0x128] sm:$0xff] }
 0x6b3   : > { %1592 = vmatprep.subr.bf16.mxu1 %v4544_v58  ;;  %v4048_v58 = vcombine.low %v1824_v47, %v1828_v13  ;;  %v1880_v13 = vld [vmem:[%s6000_s9 + $0x280] sm:$0xff] }
 0x6b6   : > { %1593 = vmatpush1.bf16.msra.mxu1 %v4542_v59  ;;  %v4050_v59 = vcombine.low %v1825_v48, %v1829_v49  ;;  %v1884_v48 = vld [vmem:[%s6000_s9 + $0x2a0] sm:$0xff]  ;;  %v1881_v49 = vld [vmem:[%s6000_s9 + $0x288] sm:$0xff] }
 0x6b7   : > { %2612 = vmatprep.subr.bf16.mxu1 %v4025_v30 }
 0x76c   : > { %v1491_v60 = vpop.f32.mrb[16].mxu1 }
 0x76d   : > { %v1497_v61 = vpack.c.bf16 %v1491_v60, %v1491_v60  ;;  %v4314_v62 = vpop.f32.mrb[17].mxu1  ;;  %v4057_v60 = vcombine.high %v1832_v54, %v1836_v55 }
 0x76e   : > { %v1494_v63 = vpop.f32.mrb[18].mxu1  ;;  %v1840_v62 = vld [vmem:[%s6000_s9 + $0x140] sm:$0xff] }
 0x76f   : > { %v4315_v3 = vpop.f32.mrb[19].mxu1  ;;  %1611 = vmatmul.mubr.bf16.vlgmr.msra.gmra.mrb[20].mxu1 %v1497_v61  ;;  %v4059_v61 = vcombine.high %v1833_v56, %v1837_v57  ;;  %v1844_v63 = vld [vmem:[%s6000_s9 + $0x160] sm:$0xff] }
 0x770   : > { %2613 = vmatpush1.bf16.msra.mxu1 %v4024_v29  ;;  %v1841_v3 = vld [vmem:[%s6000_s9 + $0x148] sm:$0xff] }
 0x771   : > { %2614 = vmatprep.subr.bf16.mxu1 %v4033_v35  ;;  %v1869_v35 = vld [vmem:[%s6000_s9 + $0x228] sm:$0xff] }
 0x774   : > { %2615 = vmatpush1.bf16.msra.mxu1 %v4032_v38  ;;  %v1877_v38 = vld [vmem:[%s6000_s9 + $0x268] sm:$0xff] }
 0x775   : > { %v4099_v47 = vcombine.high %v1873_v43, %v1877_v38 }
 0x842   : > { %v1612_v6 = vpop.f32.mrb[20].mxu1 }
 0x843   : > { %v1734_v9 = vadd.f32 %v1733_v39, %v1612_v6  ;;  %v1614_v11 = vpop.f32.mrb[21].mxu1  ;;  %v1816_v39 = vld [vmem:[%s6000_s9 + $0x80] sm:$0xff]  ;;  %v4056_v6 = vcombine.low %v1832_v54, %v1836_v55  ;;  %v4104_v55 = vcombine.low %v1880_v13, %v1884_v48 }
 0x844   : > { %v1736_v12 = vadd.f32 %v1735_v40, %v1614_v11  ;;  %v1616_v18 = vpop.f32.mrb[22].mxu1  ;;  %v4035_v40 = vcombine.high %v1809_v36, %v1813_v37  ;;  %v4041_v45 = vcombine.high %v1816_v39, %v1820_v41  ;;  %v4040_v50 = vcombine.low %v1816_v39, %v1820_v41  ;;  %v1872_v41 = vld [vmem:[%s6000_s9 + $0x240] sm:$0xff] }
 0x845   : > { %v1740_v20 = vadd.f32 %v4765_v19, %v1734_v9  ;;  %v1617_v2 = vpop.f32.mrb[23].mxu1  ;;  %v4058_v9 = vcombine.low %v1833_v56, %v1837_v57  ;;  %v4067_v11 = vcombine.high %v1841_v3, %v1845_v4  ;;  %v1849_v18 = vld [vmem:[%s6000_s9 + $0x188] sm:$0xff]  ;;  %v4082_v37 = vcombine.low %v1857_v28, %v1861_v7  ;;  %v1904_v28 = vld [vmem:[%s6000_s9 + $0x340] sm:$0xff] }
 0x846   : > { %v1741_v23 = vadd.f32 %v4766_v8, %v1736_v12  ;;  %2655 = vmatprep.subr.bf16.mxu0 %v4035_v40  ;;  %2616 = vmatprep.subr.bf16.mxu1 %v4041_v45  ;;  %v1848_v12 = vld [vmem:[%s6000_s9 + $0x180] sm:$0xff]  ;;  %v1853_v19 = vld [vmem:[%s6000_s9 + $0x1a8] sm:$0xff]  ;;  %v4066_v2 = vcombine.low %v1841_v3, %v1845_v4  ;;  %v4089_v39 = vcombine.high %v1864_v33, %v1868_v0 }
 0x847   : > { %v5121_v24 = vadd.f32 %v1747_v10, %v1740_v20  ;;  %2656 = vmatpush1.bf16.msra.mxu0 %v4034_v44  ;;  %2617 = vmatpush1.bf16.msra.mxu1 %v4040_v50  ;;  %v4065_v10 = vcombine.high %v1840_v62, %v1844_v63  ;;  %v4064_v20 = vcombine.low %v1840_v62, %v1844_v63  ;;  %v1885_v50 = vld [vmem:[%s6000_s9 + $0x2a8] sm:$0xff]  ;;  %v1888_v3 = vld [vmem:[%s6000_s9 + $0x2c0] sm:$0xff] }
 0x848   : > { %v5123_v25 = vadd.f32 %v1751_v14, %v1741_v23  ;;  %2657 = vmatprep.subr.bf16.mxu0 %v4043_v46  ;;  %2618 = vmatprep.subr.bf16.mxu1 %v4049_v52  ;;  %v1852_v14 = vld [vmem:[%s6000_s9 + $0x1a0] sm:$0xff]  ;;  %v4075_v23 = vcombine.high %v1849_v18, %v1853_v19  ;;  %v4074_v30 = vcombine.low %v1849_v18, %v1853_v19 }
 0x849   : > { %v4073_v8 = vcombine.high %v1848_v12, %v1852_v14  ;;  %v4072_v29 = vcombine.low %v1848_v12, %v1852_v14  ;;  %v4091_v40 = vcombine.high %v1865_v34, %v1869_v35  ;;  %v4088_v44 = vcombine.low %v1864_v33, %v1868_v0  ;;  %v1892_v4 = vld [vmem:[%s6000_s9 + $0x2e0] sm:$0xff] }
 0x84a   : > { %v1758_v26 = vadd.f32 %v5123_v25, %v5121_v24  ;;  %v4090_v45 = vcombine.low %v1865_v34, %v1869_v35  ;;  %v4097_v46 = vcombine.high %v1872_v41, %v1876_v42  ;;  %v4098_v52 = vcombine.low %v1873_v43, %v1877_v38  ;;  %v1896_v18 = vld [vmem:[%s6000_s9 + $0x300] sm:$0xff] }
 0x84b   : > { %2658 = vmatpush1.bf16.msra.mxu0 %v4042_v51  ;;  %2619 = vmatpush1.bf16.msra.mxu1 %v4048_v58  ;;  %v4096_v51 = vcombine.low %v1872_v41, %v1876_v42  ;;  %v4107_v54 = vcombine.high %v1881_v49, %v1885_v50  ;;  %v4106_v56 = vcombine.low %v1881_v49, %v1885_v50  ;;  %v1900_v19 = vld [vmem:[%s6000_s9 + $0x320] sm:$0xff]  ;;  %v1802_v49 = vld [vmem:[%s6000_s9 + $0x10] sm:$0xff] }
 0x84c   : > { %1759 = vadd.xlane.f32.xlu0 %v1758_v26  ;;  %2659 = vmatprep.subr.bf16.mxu0 %v4051_v53  ;;  %v1856_v26 = vld [vmem:[%s6000_s9 + $0x1c0] sm:$0xff]  ;;  %v4105_v53 = vcombine.high %v1880_v13, %v1884_v48  ;;  %v1806_v50 = vld [vmem:[%s6000_s9 + $0x30] sm:$0xff] }
 0x84d   : > { %2620 = vmatprep.subr.bf16.mxu1 %v4057_v60  ;;  %v4081_v31 = vcombine.high %v1856_v26, %v1860_v27  ;;  %v4080_v36 = vcombine.low %v1856_v26, %v1860_v27  ;;  %v1908_v7 = vld [vmem:[%s6000_s9 + $0x360] sm:$0xff] }
 0x84e   : > { %v1912_v34 = vld [vmem:[%s6000_s9 + $0x380] sm:$0xff] }
 0x84f   : > { %2660 = vmatpush1.bf16.msra.mxu0 %v4050_v59  ;;  %2621 = vmatpush1.bf16.msra.mxu1 %v4056_v6  ;;  %v1889_v6 = vld [vmem:[%s6000_s9 + $0x2c8] sm:$0xff]  ;;  %v1916_v35 = vld [vmem:[%s6000_s9 + $0x3a0] sm:$0xff] }
 0x850   : > { %2661 = vmatprep.subr.bf16.mxu0 %v4059_v61  ;;  %2622 = vmatprep.subr.bf16.mxu1 %v4065_v10  ;;  %v1893_v10 = vld [vmem:[%s6000_s9 + $0x2e8] sm:$0xff]  ;;  %v1920_v43 = vld [vmem:[%s6000_s9 + $0x3c0] sm:$0xff] }
 0x851   : > { %v4114_v12 = vcombine.low %v1889_v6, %v1893_v10  ;;  %v4115_v14 = vcombine.high %v1889_v6, %v1893_v10  ;;  %v1924_v38 = vld [vmem:[%s6000_s9 + $0x3e0] sm:$0xff] }
 0x853   : > { %2662 = vmatpush1.bf16.msra.mxu0 %v4058_v9  ;;  %2623 = vmatpush1.bf16.msra.mxu1 %v4064_v20  ;;  %v4113_v9 = vcombine.high %v1888_v3, %v1892_v4  ;;  %v1897_v20 = vld [vmem:[%s6000_s9 + $0x308] sm:$0xff] }
 0x854   : > { %2663 = vmatprep.subr.bf16.mxu0 %v4067_v11  ;;  %2624 = vmatprep.subr.bf16.mxu1 %v4073_v8  ;;  %v4112_v11 = vcombine.low %v1888_v3, %v1892_v4  ;;  %v1901_v8 = vld [vmem:[%s6000_s9 + $0x328] sm:$0xff] }
 0x855   : > { %v4122_v26 = vcombine.low %v1897_v20, %v1901_v8  ;;  %v4123_v27 = vcombine.high %v1897_v20, %v1901_v8  ;;  %v1814_v8 = vld [vmem:[%s6000_s9 + $0x70] sm:$0xff] }
 0x857   : > { %2664 = vmatpush1.bf16.msra.mxu0 %v4066_v2  ;;  %2625 = vmatpush1.bf16.msra.mxu1 %v4072_v29  ;;  %v4121_v2 = vcombine.high %v1896_v18, %v1900_v19  ;;  %v1905_v29 = vld [vmem:[%s6000_s9 + $0x348] sm:$0xff] }
 0x858   : > { %2665 = vmatprep.subr.bf16.mxu0 %v4075_v23  ;;  %2626 = vmatprep.subr.bf16.mxu1 %v4081_v31  ;;  %v4120_v23 = vcombine.low %v1896_v18, %v1900_v19  ;;  %v1909_v31 = vld [vmem:[%s6000_s9 + $0x368] sm:$0xff] }
 0x859   : > { %v4130_v33 = vcombine.low %v1905_v29, %v1909_v31  ;;  %v4131_v0 = vcombine.high %v1905_v29, %v1909_v31  ;;  %v1822_v29 = vld [vmem:[%s6000_s9 + $0xb0] sm:$0xff]  ;;  %v1823_v31 = vld [vmem:[%s6000_s9 + $0xb8] sm:$0xff] }
 0x85b   : > { %2666 = vmatpush1.bf16.msra.mxu0 %v4074_v30  ;;  %2627 = vmatpush1.bf16.msra.mxu1 %v4080_v36  ;;  %v4129_v30 = vcombine.high %v1904_v28, %v1908_v7  ;;  %v1913_v36 = vld [vmem:[%s6000_s9 + $0x388] sm:$0xff] }
 0x85c   : > { %2667 = vmatprep.subr.bf16.mxu0 %v4083_v32  ;;  %2628 = vmatprep.subr.bf16.mxu1 %v4089_v39  ;;  %v4128_v32 = vcombine.low %v1904_v28, %v1908_v7  ;;  %v1917_v39 = vld [vmem:[%s6000_s9 + $0x3a8] sm:$0xff] }
 0x85d   : > { %v4138_v41 = vcombine.low %v1913_v36, %v1917_v39  ;;  %v4139_v42 = vcombine.high %v1913_v36, %v1917_v39  ;;  %v1830_v36 = vld [vmem:[%s6000_s9 + $0xf0] sm:$0xff]  ;;  %v1831_v39 = vld [vmem:[%s6000_s9 + $0xf8] sm:$0xff] }
 0x85f   : > { %2668 = vmatpush1.bf16.msra.mxu0 %v4082_v37  ;;  %2629 = vmatpush1.bf16.msra.mxu1 %v4088_v44  ;;  %v4137_v37 = vcombine.high %v1912_v34, %v1916_v35  ;;  %v1921_v44 = vld [vmem:[%s6000_s9 + $0x3c8] sm:$0xff] }
 0x860   : > { %2669 = vmatprep.subr.bf16.mxu0 %v4091_v40  ;;  %2630 = vmatprep.subr.bf16.mxu1 %v4097_v46  ;;  %v4136_v40 = vcombine.low %v1912_v34, %v1916_v35  ;;  %v1925_v46 = vld [vmem:[%s6000_s9 + $0x3e8] sm:$0xff]  ;;  %v1826_v35 = vld [vmem:[%s6000_s9 + $0xd0] sm:$0xff] }
 0x861   : > { %v4147_v13 = vcombine.high %v1921_v44, %v1925_v46  ;;  %v4146_v48 = vcombine.low %v1921_v44, %v1925_v46  ;;  %v1838_v44 = vld [vmem:[%s6000_s9 + $0x130] sm:$0xff]  ;;  %v1839_v46 = vld [vmem:[%s6000_s9 + $0x138] sm:$0xff] }
 0x863   : > { %2670 = vmatpush1.bf16.msra.mxu0 %v4090_v45  ;;  %2631 = vmatpush1.bf16.msra.mxu1 %v4096_v51  ;;  %v4145_v45 = vcombine.high %v1920_v43, %v1924_v38  ;;  %v1803_v51 = vld [vmem:[%s6000_s9 + $0x18] sm:$0xff] }
 0x864   : > { %2671 = vmatprep.subr.bf16.mxu0 %v4099_v47  ;;  %2632 = vmatprep.subr.bf16.mxu1 %v4105_v53  ;;  %v4144_v47 = vcombine.low %v1920_v43, %v1924_v38  ;;  %v1807_v53 = vld [vmem:[%s6000_s9 + $0x38] sm:$0xff]  ;;  %v1834_v38 = vld [vmem:[%s6000_s9 + $0x110] sm:$0xff] }
 0x867   : > { %2672 = vmatpush1.bf16.msra.mxu0 %v4098_v52  ;;  %2633 = vmatpush1.bf16.msra.mxu1 %v4104_v55  ;;  %v4029_v52 = vcombine.high %v1802_v49, %v1806_v50  ;;  %v4030_v55 = vcombine.low %v1803_v51, %v1807_v53 }
 0x868   : > { %2673 = vmatprep.subr.bf16.mxu0 %v4107_v54  ;;  %2634 = vmatprep.subr.bf16.mxu1 %v4113_v9  ;;  %v4028_v54 = vcombine.low %v1802_v49, %v1806_v50  ;;  %v1842_v50 = vld [vmem:[%s6000_s9 + $0x150] sm:$0xff] }
 0x86b   : > { %2674 = vmatpush1.bf16.msra.mxu0 %v4106_v56  ;;  %2635 = vmatpush1.bf16.msra.mxu1 %v4112_v11  ;;  %v4031_v56 = vcombine.high %v1803_v51, %v1807_v53  ;;  %v1846_v51 = vld [vmem:[%s6000_s9 + $0x170] sm:$0xff]  ;;  %v1847_v53 = vld [vmem:[%s6000_s9 + $0x178] sm:$0xff] }
 0x86c   : > { %2675 = vmatprep.subr.bf16.mxu0 %v4115_v14  ;;  %2636 = vmatprep.subr.bf16.mxu1 %v4121_v2  ;;  %v1810_v2 = vld [vmem:[%s6000_s9 + $0x50] sm:$0xff] }
 0x86d   : > { %v4037_v28 = vcombine.high %v1810_v2, %v1814_v8 }
 0x86f   : > { %2676 = vmatpush1.bf16.msra.mxu0 %v4114_v12  ;;  %2637 = vmatpush1.bf16.msra.mxu1 %v4120_v23 }
 0x870   : > { %2677 = vmatprep.subr.bf16.mxu0 %v4123_v27  ;;  %2638 = vmatprep.subr.bf16.mxu1 %v4129_v30  ;;  %v1818_v27 = vld [vmem:[%s6000_s9 + $0x90] sm:$0xff]  ;;  %v1819_v30 = vld [vmem:[%s6000_s9 + $0x98] sm:$0xff] }
 0x871   : > { %v4047_v34 = vcombine.high %v1819_v30, %v1823_v31 }
 0x873   : > { %2678 = vmatpush1.bf16.msra.mxu0 %v4122_v26  ;;  %2639 = vmatpush1.bf16.msra.mxu1 %v4128_v32  ;;  %v4036_v32 = vcombine.low %v1810_v2, %v1814_v8  ;;  %v1866_v8 = vld [vmem:[%s6000_s9 + $0x210] sm:$0xff] }
 0x874   : > { %2679 = vmatprep.subr.bf16.mxu0 %v4131_v0  ;;  %2640 = vmatprep.subr.bf16.mxu1 %v4137_v37  ;;  %v4045_v0 = vcombine.high %v1818_v27, %v1822_v29  ;;  %v1827_v37 = vld [vmem:[%s6000_s9 + $0xd8] sm:$0xff] }
 0x875   : > { %v4055_v43 = vcombine.high %v1827_v37, %v1831_v39 }
 0x877   : > { %2680 = vmatpush1.bf16.msra.mxu0 %v4130_v33  ;;  %2641 = vmatpush1.bf16.msra.mxu1 %v4136_v40  ;;  %v4044_v40 = vcombine.low %v1818_v27, %v1822_v29 }
 0x878   : > { %2681 = vmatprep.subr.bf16.mxu0 %v4139_v42  ;;  %2642 = vmatprep.subr.bf16.mxu1 %v4145_v45  ;;  %v4053_v42 = vcombine.high %v1826_v35, %v1830_v36  ;;  %v1835_v45 = vld [vmem:[%s6000_s9 + $0x118] sm:$0xff] }
 0x879   : > { %v4063_v49 = vcombine.high %v1835_v45, %v1839_v46 }
 0x87b   : > { %2682 = vmatpush1.bf16.msra.mxu0 %v4138_v41  ;;  %2643 = vmatpush1.bf16.msra.mxu1 %v4144_v47  ;;  %v4046_v41 = vcombine.low %v1819_v30, %v1823_v31  ;;  %v4052_v47 = vcombine.low %v1826_v35, %v1830_v36  ;;  %v1874_v30 = vld [vmem:[%s6000_s9 + $0x250] sm:$0xff] }
 0x87c   : > { %2683 = vmatprep.subr.bf16.mxu0 %v4147_v13  ;;  %2694 = vmatprep.subr.bf16.mxu1 %v4029_v52  ;;  %v4054_v13 = vcombine.low %v1827_v37, %v1831_v39  ;;  %v1843_v52 = vld [vmem:[%s6000_s9 + $0x158] sm:$0xff]  ;;  %v1878_v31 = vld [vmem:[%s6000_s9 + $0x270] sm:$0xff] }
 0x87d   : > { %v4101_v35 = vcombine.high %v1874_v30, %v1878_v31  ;;  %v1882_v37 = vld [vmem:[%s6000_s9 + $0x290] sm:$0xff] }
 0x87e   : > { %v1886_v39 = vld [vmem:[%s6000_s9 + $0x2b0] sm:$0xff] }
 0x87f   : > { %2684 = vmatpush1.bf16.msra.mxu0 %v4146_v48  ;;  %v4061_v48 = vcombine.high %v1834_v38, %v1838_v44 }
 0x880   : > { %2735 = vmatprep.subr.bf16.mxu0 %v4031_v56  ;;  %v4069_v56 = vcombine.high %v1842_v50, %v1846_v51 }
 0x8d9   : > { %v1760_v57 = vpop.xlane.xlu0 %1759 }
 0x8da   : > { %v1761_v58 = vmul.f32 0.00390625, %v1760_v57 }
 0x8dc   : > { %v5260_v59 = vsub.f32 %v5121_v24, %v1761_v58  ;;  %v5263_v60 = vsub.f32 %v5123_v25, %v1761_v58 }
 0x8de   : > { %v1764_v61 = vmul.f32 %v5260_v59, %v5260_v59  ;;  %v1765_v62 = vmul.f32 %v5263_v60, %v5263_v60 }
 0x8e0   : > { %v1766_v63 = vadd.f32 %v1765_v62, %v1764_v61  ;;  %v1756_v62 = vld [vmem:[%s5998_s7] sm:$0x3] }
 0x8e1   : > { %v1782_v3 = vrot.slane %v1756_v62, %v5035_v16  ;;  %v1778_v4 = vrot.slane %v1756_v62, %v5038_v17  ;;  %v1851_v62 = vld [vmem:[%s6000_s9 + $0x198] sm:$0xff] }
 0x8e2   : > { %1767 = vadd.xlane.f32.xlu1 %v1766_v63  ;;  %v1757_v63 = vld [vmem:[%s5999_s8] sm:$0x3] }
 0x8e3   : > { %v1795_v11 = vrot.slane %v1757_v63, %v5035_v16  ;;  %v1791_v12 = vrot.slane %v1757_v63, %v5038_v17  ;;  %v1855_v63 = vld [vmem:[%s6000_s9 + $0x1b8] sm:$0xff] }
 0x96f   : > { %v1768_v57 = vpop.xlane.xlu1 %1767 }
 0x970   : > { %v1769_v58 = vmul.f32 0.00390625, %v1768_v57  ;;  %v4071_v57 = vcombine.high %v1843_v52, %v1847_v53 }
 0x972   : > { %v1770_v61 = vadd.f32 1e-12, %v1769_v58  ;;  %v1850_v58 = vld [vmem:[%s6000_s9 + $0x190] sm:$0xff] }
 0x974   : > { %4747 = vrsqrt.f32 %v1770_v61  ;;  %v1854_v61 = vld [vmem:[%s6000_s9 + $0x1b0] sm:$0xff] }
 0x97e   : > { %v4748_v6 = vpop.eup %4747 }
 0x97f   : > { %v1772_v9 = vmul.f32 %v4748_v6, %v5260_v59  ;;  %v1773_v10 = vmul.f32 %v4748_v6, %v5263_v60  ;;  %v1811_v59 = vld [vmem:[%s6000_s9 + $0x58] sm:$0xff]  ;;  %v4077_v6 = vcombine.high %v1850_v58, %v1854_v61 }
 0x980   : > { %v1815_v60 = vld [vmem:[%s6000_s9 + $0x78] sm:$0xff] }
 0x981   : > { %v1786_v14 = vmul.f32 %v1782_v3, %v1773_v10  ;;  %v1785_v18 = vmul.f32 %v1778_v4, %v1772_v9  ;;  %v4039_v7 = vcombine.high %v1811_v59, %v1815_v60  ;;  %v4038_v33 = vcombine.low %v1811_v59, %v1815_v60  ;;  %v1858_v10 = vld [vmem:[%s6000_s9 + $0x1d0] sm:$0xff]  ;;  %v1867_v60 = vld [vmem:[%s6000_s9 + $0x218] sm:$0xff] }
 0x982   : > { %v4068_v3 = vcombine.low %v1842_v50, %v1846_v51  ;;  %v4070_v4 = vcombine.low %v1843_v52, %v1847_v53  ;;  %v4079_v9 = vcombine.high %v1851_v62, %v1855_v63  ;;  %v1870_v59 = vld [vmem:[%s6000_s9 + $0x230] sm:$0xff] }
 0x983   : > { %v1799_v19 = vadd.f32 %v1795_v11, %v1786_v14  ;;  %v1798_v20 = vadd.f32 %v1791_v12, %v1785_v18  ;;  %v1862_v11 = vld [vmem:[%s6000_s9 + $0x1f0] sm:$0xff]  ;;  %v1859_v12 = vld [vmem:[%s6000_s9 + $0x1d8] sm:$0xff]  ;;  %v4076_v18 = vcombine.low %v1850_v58, %v1854_v61 }
 0x984   : > { %v1863_v14 = vld [vmem:[%s6000_s9 + $0x1f8] sm:$0xff]  ;;  %v4084_v27 = vcombine.low %v1858_v10, %v1862_v11  ;;  %v1898_v52 = vld [vmem:[%s6000_s9 + $0x310] sm:$0xff] }
 0x985   : > { %v1929_v23 = vpack.c.bf16 %v1799_v19, %v1799_v19  ;;  %v5365_v26 = vpack.c.bf16 %v1798_v20, %v1798_v20  ;;  %v4078_v19 = vcombine.low %v1851_v62, %v1855_v63  ;;  %v4085_v20 = vcombine.high %v1858_v10, %v1862_v11  ;;  %v1902_v53 = vld [vmem:[%s6000_s9 + $0x330] sm:$0xff] }
 0x986   : > { %v4087_v2 = vcombine.high %v1859_v12, %v1863_v14  ;;  %v4125_v58 = vcombine.high %v1898_v52, %v1902_v53  ;;  %v1906_v62 = vld [vmem:[%s6000_s9 + $0x350] sm:$0xff] }
 0x987   : > { %2644 = vmatprep.mubr.bf16.mxu1 %v1929_v23  ;;  %2685 = vmatprep.mubr.bf16.mxu0 %v1929_v23  ;;  %v1910_v63 = vld [vmem:[%s6000_s9 + $0x370] sm:$0xff] }
 0x988   : > { %2645 = vmatmul.mubr.bf16.vlgmr.msra.gmra.mrb[24].mxu1 %v5365_v26  ;;  %2686 = vmatmul.mubr.bf16.vlgmr.msra.gmra.mrb[12].mxu0 %v5365_v26  ;;  %v4133_v10 = vcombine.high %v1906_v62, %v1910_v63 }
 0x989   : > { %2695 = vmatpush1.bf16.msra.mxu1 %v4028_v54  ;;  %2736 = vmatpush1.bf16.msra.mxu0 %v4030_v55  ;;  %v4060_v54 = vcombine.low %v1834_v38, %v1838_v44  ;;  %v4062_v55 = vcombine.low %v1835_v45, %v1839_v46  ;;  %v4109_v38 = vcombine.high %v1882_v37, %v1886_v39  ;;  %v1890_v45 = vld [vmem:[%s6000_s9 + $0x2d0] sm:$0xff] }
 0x98a   : > { %2726 = vmatprep.mubr.bf16.mxu1 %v1929_v23  ;;  %2767 = vmatprep.mubr.bf16.mxu0 %v1929_v23  ;;  %v1871_v23 = vld [vmem:[%s6000_s9 + $0x238] sm:$0xff]  ;;  %v1894_v46 = vld [vmem:[%s6000_s9 + $0x2f0] sm:$0xff] }
 0x98b   : > { %2696 = vmatprep.subr.bf16.mxu1 %v4037_v28  ;;  %2737 = vmatprep.subr.bf16.mxu0 %v4039_v7  ;;  %v4086_v28 = vcombine.low %v1859_v12, %v1863_v14  ;;  %v4093_v7 = vcombine.high %v1866_v8, %v1870_v59  ;;  %v4095_v29 = vcombine.high %v1867_v60, %v1871_v23  ;;  %v1914_v12 = vld [vmem:[%s6000_s9 + $0x390] sm:$0xff] }
 0x98c   : > { %v4117_v50 = vcombine.high %v1890_v45, %v1894_v46  ;;  %v1918_v14 = vld [vmem:[%s6000_s9 + $0x3b0] sm:$0xff] }
 0x98d   : > { %2697 = vmatpush1.bf16.msra.mxu1 %v4036_v32  ;;  %2738 = vmatpush1.bf16.msra.mxu0 %v4038_v33  ;;  %v1875_v32 = vld [vmem:[%s6000_s9 + $0x258] sm:$0xff] }
 0x98e   : > { %2698 = vmatprep.subr.bf16.mxu1 %v4045_v0  ;;  %2739 = vmatprep.subr.bf16.mxu0 %v4047_v34  ;;  %v1879_v33 = vld [vmem:[%s6000_s9 + $0x278] sm:$0xff]  ;;  %v4092_v0 = vcombine.low %v1866_v8, %v1870_v59  ;;  %v4094_v34 = vcombine.low %v1867_v60, %v1871_v23  ;;  %v4141_v8 = vcombine.high %v1914_v12, %v1918_v14  ;;  %v1922_v60 = vld [vmem:[%s6000_s9 + $0x3d0] sm:$0xff] }
 0x98f   : > { %v4103_v36 = vcombine.high %v1875_v32, %v1879_v33  ;;  %v1926_v23 = vld [vmem:[%s6000_s9 + $0x3f0] sm:$0xff] }
 0x991   : > { %2699 = vmatpush1.bf16.msra.mxu1 %v4044_v40  ;;  %2740 = vmatpush1.bf16.msra.mxu0 %v4046_v41  ;;  %v1883_v40 = vld [vmem:[%s6000_s9 + $0x298] sm:$0xff] }
 0x992   : > { %2700 = vmatprep.subr.bf16.mxu1 %v4053_v42  ;;  %2741 = vmatprep.subr.bf16.mxu0 %v4055_v43  ;;  %v1887_v41 = vld [vmem:[%s6000_s9 + $0x2b8] sm:$0xff]  ;;  %v4100_v42 = vcombine.low %v1874_v30, %v1878_v31  ;;  %v4102_v43 = vcombine.low %v1875_v32, %v1879_v33  ;;  %v4149_v30 = vcombine.high %v1922_v60, %v1926_v23 }
 0x993   : > { %v4111_v44 = vcombine.high %v1883_v40, %v1887_v41  ;;  %v4148_v32 = vcombine.low %v1922_v60, %v1926_v23  ;;  %v4616_v60 = vld [vmem:[%s6002_s11 + $0x1b4] ss:$8 sps:$4 sm:$0xff]   ;;  %v4611_v23 = vld [vmem:[%s6002_s11 + $0xb0] ss:$8 sps:$4 sm:$0xff]  }
 0x995   : > { %2701 = vmatpush1.bf16.msra.mxu1 %v4052_v47  ;;  %2742 = vmatpush1.bf16.msra.mxu0 %v4054_v13  ;;  %v1891_v47 = vld [vmem:[%s6000_s9 + $0x2d8] sm:$0xff] }
 0x996   : > { %2702 = vmatprep.subr.bf16.mxu1 %v4061_v48  ;;  %2743 = vmatprep.subr.bf16.mxu0 %v4063_v49  ;;  %v1895_v13 = vld [vmem:[%s6000_s9 + $0x2f8] sm:$0xff]  ;;  %v4108_v48 = vcombine.low %v1882_v37, %v1886_v39  ;;  %v4110_v49 = vcombine.low %v1883_v40, %v1887_v41 }
 0x997   : > { %v4119_v51 = vcombine.high %v1891_v47, %v1895_v13  ;;  %v4553_v37 = vld [vmem:[%s6002_s11 + $0x14] ss:$8 sps:$4 sm:$0xff]   ;;  %v4551_v40 = vld [vmem:[%s6002_s11 + $0x10] ss:$8 sps:$4 sm:$0xff]  }
 0x998   : > { %v4556_v39 = vld [vmem:[%s6002_s11 + $0x114] ss:$8 sps:$4 sm:$0xff]   ;;  %v4554_v41 = vld [vmem:[%s6002_s11 + $0x110] ss:$8 sps:$4 sm:$0xff]  }
 0x999   : > { %2703 = vmatpush1.bf16.msra.mxu1 %v4060_v54  ;;  %2744 = vmatpush1.bf16.msra.mxu0 %v4062_v55  ;;  %v1899_v54 = vld [vmem:[%s6000_s9 + $0x318] sm:$0xff] }
 0x99a   : > { %2704 = vmatprep.subr.bf16.mxu1 %v4069_v56  ;;  %2745 = vmatprep.subr.bf16.mxu0 %v4071_v57  ;;  %v1903_v55 = vld [vmem:[%s6000_s9 + $0x338] sm:$0xff]  ;;  %v4116_v56 = vcombine.low %v1890_v45, %v1894_v46  ;;  %v4118_v57 = vcombine.low %v1891_v47, %v1895_v13  ;;  %v4571_v13 = vld [vmem:[%s6002_s11 + $0x44] ss:$8 sps:$4 sm:$0xff]  }
 0x99b   : > { %v4127_v61 = vcombine.high %v1899_v54, %v1903_v55  ;;  %v4568_v45 = vld [vmem:[%s6002_s11 + $0x134] ss:$8 sps:$4 sm:$0xff]   ;;  %v4563_v46 = vld [vmem:[%s6002_s11 + $0x30] ss:$8 sps:$4 sm:$0xff]  }
 0x99c   : > { %v4566_v47 = vld [vmem:[%s6002_s11 + $0x130] ss:$8 sps:$4 sm:$0xff]  }
 0x99d   : > { %2705 = vmatpush1.bf16.msra.mxu1 %v4068_v3  ;;  %2746 = vmatpush1.bf16.msra.mxu0 %v4070_v4  ;;  %v1907_v3 = vld [vmem:[%s6000_s9 + $0x358] sm:$0xff] }
 0x99e   : > { %2706 = vmatprep.subr.bf16.mxu1 %v4077_v6  ;;  %2747 = vmatprep.subr.bf16.mxu0 %v4079_v9  ;;  %v1911_v4 = vld [vmem:[%s6000_s9 + $0x378] sm:$0xff]  ;;  %v4124_v6 = vcombine.low %v1898_v52, %v1902_v53  ;;  %v4126_v9 = vcombine.low %v1899_v54, %v1903_v55  ;;  %v4583_v55 = vld [vmem:[%s6002_s11 + $0x64] ss:$8 sps:$4 sm:$0xff]  }
 0x99f   : > { %v4135_v11 = vcombine.high %v1907_v3, %v1911_v4  ;;  %v4580_v52 = vld [vmem:[%s6002_s11 + $0x154] ss:$8 sps:$4 sm:$0xff]   ;;  %v4575_v53 = vld [vmem:[%s6002_s11 + $0x50] ss:$8 sps:$4 sm:$0xff]  }
 0x9a0   : > { %v4578_v54 = vld [vmem:[%s6002_s11 + $0x150] ss:$8 sps:$4 sm:$0xff]  }
 0x9a1   : > { %2707 = vmatpush1.bf16.msra.mxu1 %v4076_v18  ;;  %2748 = vmatpush1.bf16.msra.mxu0 %v4078_v19  ;;  %v1915_v18 = vld [vmem:[%s6000_s9 + $0x398] sm:$0xff] }
 0x9a2   : > { %2708 = vmatprep.subr.bf16.mxu1 %v4085_v20  ;;  %2749 = vmatprep.subr.bf16.mxu0 %v4087_v2  ;;  %v1919_v19 = vld [vmem:[%s6000_s9 + $0x3b8] sm:$0xff]  ;;  %v4132_v20 = vcombine.low %v1906_v62, %v1910_v63  ;;  %v4134_v2 = vcombine.low %v1907_v3, %v1911_v4  ;;  %v4595_v4 = vld [vmem:[%s6002_s11 + $0x84] ss:$8 sps:$4 sm:$0xff]  }
 0x9a3   : > { %v4143_v59 = vcombine.high %v1915_v18, %v1919_v19  ;;  %v4592_v62 = vld [vmem:[%s6002_s11 + $0x174] ss:$8 sps:$4 sm:$0xff]   ;;  %v4587_v63 = vld [vmem:[%s6002_s11 + $0x70] ss:$8 sps:$4 sm:$0xff]  }
 0x9a4   : > { %v4590_v3 = vld [vmem:[%s6002_s11 + $0x170] ss:$8 sps:$4 sm:$0xff]  }
 0x9a5   : > { %2709 = vmatpush1.bf16.msra.mxu1 %v4084_v27  ;;  %2750 = vmatpush1.bf16.msra.mxu0 %v4086_v28  ;;  %v1923_v27 = vld [vmem:[%s6000_s9 + $0x3d8] sm:$0xff] }
 0x9a6   : > { %2710 = vmatprep.subr.bf16.mxu1 %v4093_v7  ;;  %2751 = vmatprep.subr.bf16.mxu0 %v4095_v29  ;;  %v1927_v28 = vld [vmem:[%s6000_s9 + $0x3f8] sm:$0xff]  ;;  %v4140_v7 = vcombine.low %v1914_v12, %v1918_v14  ;;  %v4142_v29 = vcombine.low %v1915_v18, %v1919_v19  ;;  %v4607_v19 = vld [vmem:[%s6002_s11 + $0xa4] ss:$8 sps:$4 sm:$0xff]  }
 0x9a7   : > { %v4151_v31 = vcombine.high %v1923_v27, %v1927_v28  ;;  %v4150_v33 = vcombine.low %v1923_v27, %v1927_v28  ;;  %v4604_v12 = vld [vmem:[%s6002_s11 + $0x194] ss:$8 sps:$4 sm:$0xff]   ;;  %v4599_v14 = vld [vmem:[%s6002_s11 + $0x90] ss:$8 sps:$4 sm:$0xff]   ;;  %v4619_v28 = vld [vmem:[%s6002_s11 + $0xc4] ss:$8 sps:$4 sm:$0xff]  }
 0x9a8   : > { %v4602_v18 = vld [vmem:[%s6002_s11 + $0x190] ss:$8 sps:$4 sm:$0xff]  }
 0x9a9   : > { %2711 = vmatpush1.bf16.msra.mxu1 %v4092_v0  ;;  %2752 = vmatpush1.bf16.msra.mxu0 %v4094_v34  ;;  %v4547_v0 = vld [vmem:[%s6002_s11 + $0x4] ss:$8 sps:$4 sm:$0xff]   ;;  %v4614_v27 = vld [vmem:[%s6002_s11 + $0x1b0] ss:$8 sps:$4 sm:$0xff]  }
 0x9aa   : > { %2712 = vmatprep.subr.bf16.mxu1 %v4101_v35  ;;  %2753 = vmatprep.subr.bf16.mxu0 %v4103_v36  ;;  %v4550_v34 = vld [vmem:[%s6002_s11 + $0x104] ss:$8 sps:$4 sm:$0xff]   ;;  %v4545_v35 = vld [vmem:[%s6002_s11] ss:$8 sps:$4 sm:$0xff]  }
 0x9ab   : > { %v4548_v36 = vld [vmem:[%s6002_s11 + $0x100] ss:$8 sps:$4 sm:$0xff]  }
 0x9ad   : > { %2713 = vmatpush1.bf16.msra.mxu1 %v4100_v42  ;;  %2754 = vmatpush1.bf16.msra.mxu0 %v4102_v43  ;;  %v4559_v42 = vld [vmem:[%s6002_s11 + $0x24] ss:$8 sps:$4 sm:$0xff]   ;;  %v4557_v43 = vld [vmem:[%s6002_s11 + $0x20] ss:$8 sps:$4 sm:$0xff]  }
 0x9ae   : > { %2714 = vmatprep.subr.bf16.mxu1 %v4109_v38  ;;  %2755 = vmatprep.subr.bf16.mxu0 %v4111_v44  ;;  %v4560_v38 = vld [vmem:[%s6002_s11 + $0x120] ss:$8 sps:$4 sm:$0xff]   ;;  %v4565_v44 = vld [vmem:[%s6002_s11 + $0x34] ss:$8 sps:$4 sm:$0xff]  }
 0x9b1   : > { %2715 = vmatpush1.bf16.msra.mxu1 %v4108_v48  ;;  %2756 = vmatpush1.bf16.msra.mxu0 %v4110_v49  ;;  %v4574_v48 = vld [vmem:[%s6002_s11 + $0x144] ss:$8 sps:$4 sm:$0xff]   ;;  %v4569_v49 = vld [vmem:[%s6002_s11 + $0x40] ss:$8 sps:$4 sm:$0xff]  }
 0x9b2   : > { %2716 = vmatprep.subr.bf16.mxu1 %v4117_v50  ;;  %2757 = vmatprep.subr.bf16.mxu0 %v4119_v51  ;;  %v4572_v50 = vld [vmem:[%s6002_s11 + $0x140] ss:$8 sps:$4 sm:$0xff]   ;;  %v4577_v51 = vld [vmem:[%s6002_s11 + $0x54] ss:$8 sps:$4 sm:$0xff]  }
 0x9b5   : > { %2717 = vmatpush1.bf16.msra.mxu1 %v4116_v56  ;;  %2758 = vmatpush1.bf16.msra.mxu0 %v4118_v57  ;;  %v4586_v56 = vld [vmem:[%s6002_s11 + $0x164] ss:$8 sps:$4 sm:$0xff]   ;;  %v4581_v57 = vld [vmem:[%s6002_s11 + $0x60] ss:$8 sps:$4 sm:$0xff]  }
 0x9b6   : > { %2718 = vmatprep.subr.bf16.mxu1 %v4125_v58  ;;  %2759 = vmatprep.subr.bf16.mxu0 %v4127_v61  ;;  %v4584_v58 = vld [vmem:[%s6002_s11 + $0x160] ss:$8 sps:$4 sm:$0xff]   ;;  %v4589_v61 = vld [vmem:[%s6002_s11 + $0x74] ss:$8 sps:$4 sm:$0xff]  }
 0x9b9   : > { %2719 = vmatpush1.bf16.msra.mxu1 %v4124_v6  ;;  %2760 = vmatpush1.bf16.msra.mxu0 %v4126_v9  ;;  %v4598_v6 = vld [vmem:[%s6002_s11 + $0x184] ss:$8 sps:$4 sm:$0xff]   ;;  %v4593_v9 = vld [vmem:[%s6002_s11 + $0x80] ss:$8 sps:$4 sm:$0xff]  }
 0x9ba   : > { %2720 = vmatprep.subr.bf16.mxu1 %v4133_v10  ;;  %2761 = vmatprep.subr.bf16.mxu0 %v4135_v11  ;;  %v4596_v10 = vld [vmem:[%s6002_s11 + $0x180] ss:$8 sps:$4 sm:$0xff]   ;;  %v4601_v11 = vld [vmem:[%s6002_s11 + $0x94] ss:$8 sps:$4 sm:$0xff]  }
 0x9bd   : > { %2721 = vmatpush1.bf16.msra.mxu1 %v4132_v20  ;;  %2762 = vmatpush1.bf16.msra.mxu0 %v4134_v2  ;;  %v4610_v20 = vld [vmem:[%s6002_s11 + $0x1a4] ss:$8 sps:$4 sm:$0xff]   ;;  %v4605_v2 = vld [vmem:[%s6002_s11 + $0xa0] ss:$8 sps:$4 sm:$0xff]  }
 0x9be   : > { %2722 = vmatprep.subr.bf16.mxu1 %v4141_v8  ;;  %2763 = vmatprep.subr.bf16.mxu0 %v4143_v59  ;;  %v4608_v8 = vld [vmem:[%s6002_s11 + $0x1a0] ss:$8 sps:$4 sm:$0xff]   ;;  %v4613_v59 = vld [vmem:[%s6002_s11 + $0xb4] ss:$8 sps:$4 sm:$0xff]  }
 0x9c1   : > { %2723 = vmatpush1.bf16.msra.mxu1 %v4140_v7  ;;  %2764 = vmatpush1.bf16.msra.mxu0 %v4142_v29  ;;  %v4622_v7 = vld [vmem:[%s6002_s11 + $0x1c4] ss:$8 sps:$4 sm:$0xff]   ;;  %v4617_v29 = vld [vmem:[%s6002_s11 + $0xc0] ss:$8 sps:$4 sm:$0xff]  }
 0x9c2   : > { %2724 = vmatprep.subr.bf16.mxu1 %v4149_v30  ;;  %2765 = vmatprep.subr.bf16.mxu0 %v4151_v31  ;;  %v4620_v30 = vld [vmem:[%s6002_s11 + $0x1c0] ss:$8 sps:$4 sm:$0xff]   ;;  %v4625_v31 = vld [vmem:[%s6002_s11 + $0xd4] ss:$8 sps:$4 sm:$0xff]  }
 0x9c5   : > { %2725 = vmatpush1.bf16.msra.mxu1 %v4148_v32  ;;  %2766 = vmatpush1.bf16.msra.mxu0 %v4150_v33  ;;  %v4628_v32 = vld [vmem:[%s6002_s11 + $0x1d4] ss:$8 sps:$4 sm:$0xff]   ;;  %v4623_v33 = vld [vmem:[%s6002_s11 + $0xd0] ss:$8 sps:$4 sm:$0xff]  }
 0x9c6   : > { %3636 = vmatprep.subr.bf16.mxu1 %v4547_v0  ;;  %3677 = vmatprep.subr.bf16.mxu0 %v4550_v34  ;;  %v4626_v0 = vld [vmem:[%s6002_s11 + $0x1d0] ss:$8 sps:$4 sm:$0xff]   ;;  %v4631_v34 = vld [vmem:[%s6002_s11 + $0xe4] ss:$8 sps:$4 sm:$0xff]  }
 0x9c8   : > { %2727 = vmatmul.mubr.bf16.vlgmr.msra.gmra.mrb[28].mxu1 %v5365_v26  ;;  %2768 = vmatmul.mubr.bf16.vlgmr.msra.gmra.mrb[16].mxu0 %v5365_v26  ;;  %v4562_v26 = vld [vmem:[%s6002_s11 + $0x124] ss:$8 sps:$4 sm:$0xff]  }
 0x9c9   : > { %3637 = vmatpush1.bf16.msra.mxu1 %v4545_v35  ;;  %3678 = vmatpush1.bf16.msra.mxu0 %v4548_v36  ;;  %v4634_v35 = vld [vmem:[%s6002_s11 + $0x1e4] ss:$8 sps:$4 sm:$0xff]   ;;  %v4629_v36 = vld [vmem:[%s6002_s11 + $0xe0] ss:$8 sps:$4 sm:$0xff]  }
 0x9ca   : > { %3638 = vmatprep.subr.bf16.mxu1 %v4553_v37  ;;  %3679 = vmatprep.subr.bf16.mxu0 %v4556_v39  ;;  %v4632_v37 = vld [vmem:[%s6002_s11 + $0x1e0] ss:$8 sps:$4 sm:$0xff]   ;;  %v4637_v39 = vld [vmem:[%s6002_s11 + $0xf4] ss:$8 sps:$4 sm:$0xff]  }
 0x9cd   : > { %3639 = vmatpush1.bf16.msra.mxu1 %v4551_v40  ;;  %3680 = vmatpush1.bf16.msra.mxu0 %v4554_v41  ;;  %v4640_v40 = vld [vmem:[%s6002_s11 + $0x1f4] ss:$8 sps:$4 sm:$0xff]   ;;  %v4635_v41 = vld [vmem:[%s6002_s11 + $0xf0] ss:$8 sps:$4 sm:$0xff]  }
 0x9ce   : > { %3640 = vmatprep.subr.bf16.mxu1 %v4559_v42  ;;  %3681 = vmatprep.subr.bf16.mxu0 %v4562_v26  ;;  %v4638_v42 = vld [vmem:[%s6002_s11 + $0x1f0] ss:$8 sps:$4 sm:$0xff]   ;;  %v4643_v26 = vld [vmem:[%s6002_s11 + $0x204] ss:$8 sps:$4 sm:$0xff]  }
 0x9d1   : > { %3641 = vmatpush1.bf16.msra.mxu1 %v4557_v43  ;;  %3682 = vmatpush1.bf16.msra.mxu0 %v4560_v38  ;;  %v4646_v43 = vld [vmem:[%s6002_s11 + $0x304] ss:$8 sps:$4 sm:$0xff]  }
 0x9d2   : > { %3642 = vmatprep.subr.bf16.mxu1 %v4565_v44  ;;  %3683 = vmatprep.subr.bf16.mxu0 %v4568_v45  ;;  %v5740_v38 = vld [vmem:[%s6001_s10] sm:$0xff] }
 0x9d3   : > { %v1935_v44 = vrot.slane %v5740_v38, %v5038_v17  ;;  %v1943_v45 = vrot.slane %v5740_v38, %v629_v1 }
 0x9d5   : > { %3643 = vmatpush1.bf16.msra.mxu1 %v4563_v46  ;;  %3684 = vmatpush1.bf16.msra.mxu0 %v4566_v47  ;;  %v1939_v46 = vrot.slane %v5740_v38, %v5035_v16  ;;  %v1947_v47 = vrot.slane %v5740_v38, %v633_v5 }
 0x9d6   : > { %3644 = vmatprep.subr.bf16.mxu1 %v4571_v13  ;;  %3685 = vmatprep.subr.bf16.mxu0 %v4574_v48 }
 0x9d9   : > { %3645 = vmatpush1.bf16.msra.mxu1 %v4569_v49  ;;  %3686 = vmatpush1.bf16.msra.mxu0 %v4572_v50 }
 0x9da   : > { %3646 = vmatprep.subr.bf16.mxu1 %v4577_v51  ;;  %3687 = vmatprep.subr.bf16.mxu0 %v4580_v52 }
 0x9dd   : > { %3647 = vmatpush1.bf16.msra.mxu1 %v4575_v53  ;;  %3688 = vmatpush1.bf16.msra.mxu0 %v4578_v54 }
 0x9de   : > { %3648 = vmatprep.subr.bf16.mxu1 %v4583_v55  ;;  %3689 = vmatprep.subr.bf16.mxu0 %v4586_v56 }
 0x9e1   : > { %3649 = vmatpush1.bf16.msra.mxu1 %v4581_v57  ;;  %3690 = vmatpush1.bf16.msra.mxu0 %v4584_v58 }
 0x9e2   : > { %3650 = vmatprep.subr.bf16.mxu1 %v4589_v61  ;;  %3691 = vmatprep.subr.bf16.mxu0 %v4592_v62 }
 0x9e5   : > { %3651 = vmatpush1.bf16.msra.mxu1 %v4587_v63  ;;  %3692 = vmatpush1.bf16.msra.mxu0 %v4590_v3 }
 0x9e6   : > { %3652 = vmatprep.subr.bf16.mxu1 %v4595_v4  ;;  %3693 = vmatprep.subr.bf16.mxu0 %v4598_v6 }
 0x9e9   : > { %3653 = vmatpush1.bf16.msra.mxu1 %v4593_v9  ;;  %3694 = vmatpush1.bf16.msra.mxu0 %v4596_v10 }
 0x9ea   : > { %3654 = vmatprep.subr.bf16.mxu1 %v4601_v11  ;;  %3695 = vmatprep.subr.bf16.mxu0 %v4604_v12 }
 0x9ed   : > { %3655 = vmatpush1.bf16.msra.mxu1 %v4599_v14  ;;  %3696 = vmatpush1.bf16.msra.mxu0 %v4602_v18 }
 0x9ee   : > { %3656 = vmatprep.subr.bf16.mxu1 %v4607_v19  ;;  %3697 = vmatprep.subr.bf16.mxu0 %v4610_v20 }
 0x9f1   : > { %3657 = vmatpush1.bf16.msra.mxu1 %v4605_v2  ;;  %3698 = vmatpush1.bf16.msra.mxu0 %v4608_v8 }
 0x9f2   : > { %3658 = vmatprep.subr.bf16.mxu1 %v4613_v59  ;;  %3699 = vmatprep.subr.bf16.mxu0 %v4616_v60 }
 0x9f5   : > { %3659 = vmatpush1.bf16.msra.mxu1 %v4611_v23  ;;  %3700 = vmatpush1.bf16.msra.mxu0 %v4614_v27 }
 0x9f6   : > { %3660 = vmatprep.subr.bf16.mxu1 %v4619_v28  ;;  %3701 = vmatprep.subr.bf16.mxu0 %v4622_v7 }
 0x9f9   : > { %3661 = vmatpush1.bf16.msra.mxu1 %v4617_v29  ;;  %3702 = vmatpush1.bf16.msra.mxu0 %v4620_v30 }
 0x9fa   : > { %3662 = vmatprep.subr.bf16.mxu1 %v4625_v31  ;;  %3703 = vmatprep.subr.bf16.mxu0 %v4628_v32 }
 0x9fd   : > { %3663 = vmatpush1.bf16.msra.mxu1 %v4623_v33  ;;  %3704 = vmatpush1.bf16.msra.mxu0 %v4626_v0 }
 0x9fe   : > { %3664 = vmatprep.subr.bf16.mxu1 %v4631_v34  ;;  %3705 = vmatprep.subr.bf16.mxu0 %v4634_v35 }
 0xa01   : > { %3665 = vmatpush1.bf16.msra.mxu1 %v4629_v36  ;;  %3706 = vmatpush1.bf16.msra.mxu0 %v4632_v37 }
 0xa02   : > { %3666 = vmatprep.subr.bf16.mxu1 %v4637_v39  ;;  %3707 = vmatprep.subr.bf16.mxu0 %v4640_v40 }
 0xa05   : > { %3667 = vmatpush1.bf16.msra.mxu1 %v4635_v41  ;;  %3708 = vmatpush1.bf16.msra.mxu0 %v4638_v42  ;;  %v4641_v42 = vld [vmem:[%s6002_s11 + $0x200] ss:$8 sps:$4 sm:$0xff]  }
 0xa06   : > { %3718 = vmatprep.subr.bf16.mxu1 %v4643_v26  ;;  %3759 = vmatprep.subr.bf16.mxu0 %v4646_v43  ;;  %v4644_v43 = vld [vmem:[%s6002_s11 + $0x300] ss:$8 sps:$4 sm:$0xff]  }
 0xa5b   : > { %v2646_v13 = vpop.f32.mrb[24].mxu1  ;;  %v2687_v48 = vpop.f32.mrb[12].mxu0 }
 0xa5c   : > { %v2647_v49 = vadd.f32 %v2646_v13, %v1935_v44  ;;  %v2688_v50 = vadd.f32 %v2687_v48, %v1943_v45  ;;  %v2648_v51 = vpop.f32.mrb[25].mxu1  ;;  %v2689_v52 = vpop.f32.mrb[13].mxu0  ;;  %v4649_v45 = vld [vmem:[%s6002_s11 + $0x214] ss:$8 sps:$4 sm:$0xff]   ;;  %v4647_v13 = vld [vmem:[%s6002_s11 + $0x210] ss:$8 sps:$4 sm:$0xff]  }
 0xa5d   : > { %v2649_v53 = vadd.f32 %v2648_v51, %v1939_v46  ;;  %v2690_v54 = vadd.f32 %v2689_v52, %v1947_v47  ;;  %v2650_v55 = vpop.f32.mrb[26].mxu1  ;;  %v2691_v56 = vpop.f32.mrb[14].mxu0  ;;  %v4652_v47 = vld [vmem:[%s6002_s11 + $0x314] ss:$8 sps:$4 sm:$0xff]   ;;  %v4650_v48 = vld [vmem:[%s6002_s11 + $0x310] ss:$8 sps:$4 sm:$0xff]  }
 0xa5e   : > { %v2776_v57 = vmul.f32 %v2647_v49, %v2647_v49  ;;  %v2778_v58 = vmul.f32 %v2688_v50, %v2688_v50  ;;  %v2651_v1 = vpop.f32.mrb[27].mxu1  ;;  %v2692_v61 = vpop.f32.mrb[15].mxu0  ;;  %v4653_v51 = vld [vmem:[%s6002_s11 + $0x220] ss:$8 sps:$4 sm:$0xff]   ;;  %v4659_v55 = vld [vmem:[%s6002_s11 + $0x230] ss:$8 sps:$4 sm:$0xff]  }
 0xa5f   : > { %v2777_v62 = vmul.f32 %v2649_v53, %v2649_v53  ;;  %v2779_v63 = vmul.f32 %v2690_v54, %v2690_v54  ;;  %v4656_v52 = vld [vmem:[%s6002_s11 + $0x320] ss:$8 sps:$4 sm:$0xff]   ;;  %v4662_v56 = vld [vmem:[%s6002_s11 + $0x330] ss:$8 sps:$4 sm:$0xff]  }
 0xa60   : > { %v2784_v3 = vmul.f32 %v2776_v57, %v2647_v49  ;;  %v2786_v4 = vmul.f32 %v2778_v58, %v2688_v50  ;;  %v4667_v57 = vld [vmem:[%s6002_s11 + $0x244] ss:$8 sps:$4 sm:$0xff]   ;;  %v4665_v1 = vld [vmem:[%s6002_s11 + $0x240] ss:$8 sps:$4 sm:$0xff]  }
 0xa61   : > { %v2785_v6 = vmul.f32 %v2777_v62, %v2649_v53  ;;  %v2787_v5 = vmul.f32 %v2779_v63, %v2690_v54  ;;  %v4670_v58 = vld [vmem:[%s6002_s11 + $0x344] ss:$8 sps:$4 sm:$0xff]   ;;  %v4668_v61 = vld [vmem:[%s6002_s11 + $0x340] ss:$8 sps:$4 sm:$0xff]   ;;  %v4673_v62 = vld [vmem:[%s6002_s11 + $0x254] ss:$8 sps:$4 sm:$0xff]  }
 0xa62   : > { %v2792_v9 = vmul.f32 0.044715, %v2784_v3  ;;  %v2794_v10 = vmul.f32 0.044715, %v2786_v4  ;;  %v4676_v63 = vld [vmem:[%s6002_s11 + $0x354] ss:$8 sps:$4 sm:$0xff]  }
 0xa63   : > { %v2793_v11 = vmul.f32 0.044715, %v2785_v6  ;;  %v2795_v12 = vmul.f32 0.044715, %v2787_v5  ;;  %v4671_v3 = vld [vmem:[%s6002_s11 + $0x250] ss:$8 sps:$4 sm:$0xff]  }
 0xa64   : > { %v2800_v14 = vadd.f32 %v2792_v9, %v2647_v49  ;;  %v2802_v18 = vadd.f32 %v2794_v10, %v2688_v50  ;;  %v4674_v4 = vld [vmem:[%s6002_s11 + $0x350] ss:$8 sps:$4 sm:$0xff]   ;;  %v4679_v6 = vld [vmem:[%s6002_s11 + $0x264] ss:$8 sps:$4 sm:$0xff]   ;;  %v4677_v9 = vld [vmem:[%s6002_s11 + $0x260] ss:$8 sps:$4 sm:$0xff]  }
 0xa65   : > { %v2801_v19 = vadd.f32 %v2793_v11, %v2649_v53  ;;  %v2803_v20 = vadd.f32 %v2795_v12, %v2690_v54  ;;  %v4682_v5 = vld [vmem:[%s6002_s11 + $0x364] ss:$8 sps:$4 sm:$0xff]   ;;  %v4680_v10 = vld [vmem:[%s6002_s11 + $0x360] ss:$8 sps:$4 sm:$0xff]   ;;  %v4685_v11 = vld [vmem:[%s6002_s11 + $0x274] ss:$8 sps:$4 sm:$0xff]  }
 0xa66   : > { %v2808_v2 = vmul.f32 0.7978846, %v2800_v14  ;;  %v2810_v8 = vmul.f32 0.7978846, %v2802_v18  ;;  %v1958_v12 = vsub.s32 6, %v5032_v15  ;;  %v1962_v18 = vsub.s32 7, %v5032_v15 }
 0xa67   : > { %v2809_v59 = vmul.f32 0.7978846, %v2801_v19  ;;  %v2811_v60 = vmul.f32 0.7978846, %v2803_v20  ;;  %v4688_v14 = vld [vmem:[%s6002_s11 + $0x374] ss:$8 sps:$4 sm:$0xff]  }
 0xa68   : > { %4749 = vtanh.f32 %v2808_v2  ;;  %v4683_v19 = vld [vmem:[%s6002_s11 + $0x270] ss:$8 sps:$4 sm:$0xff]   ;;  %v1951_v2 = vrot.slane %v5740_v38, %v637_v21 }
 0xa69   : > { %4751 = vtanh.f32 %v2810_v8  ;;  %v4686_v20 = vld [vmem:[%s6002_s11 + $0x370] ss:$8 sps:$4 sm:$0xff]   ;;  %v1959_v8 = vrot.slane %v5740_v38, %v1958_v12  ;;  %v4716_v12 = vld [vmem:[%s6002_s11 + $0x3c0] ss:$8 sps:$4 sm:$0xff]  }
 0xa6a   : > { %4753 = vtanh.f32 %v2809_v59  ;;  %v4691_v59 = vld [vmem:[%s6002_s11 + $0x284] ss:$8 sps:$4 sm:$0xff]  }
 0xa6b   : > { %4755 = vtanh.f32 %v2811_v60  ;;  %v1955_v60 = vrot.slane %v5740_v38, %v641_v22 }
 0xa72   : > { %v4750_v23 = vpop.eup %4749 }
 0xa73   : > { %v4752_v27 = vpop.eup %4751  ;;  %v2824_v28 = vadd.f32 1.0, %v4750_v23  ;;  %v1963_v23 = vrot.slane %v5740_v38, %v1962_v18  ;;  %v4692_v38 = vld [vmem:[%s6002_s11 + $0x380] ss:$8 sps:$4 sm:$0xff]   ;;  %v4724_v18 = vld [vmem:[%s6002_s11 + $0x3d4] ss:$8 sps:$4 sm:$0xff]  }
 0xa74   : > { %v4754_v7 = vpop.eup %4753  ;;  %v2826_v29 = vadd.f32 1.0, %v4752_v27  ;;  %v4694_v27 = vld [vmem:[%s6002_s11 + $0x384] ss:$8 sps:$4 sm:$0xff]  }
 0xa75   : > { %v4756_v30 = vpop.eup %4755  ;;  %v2825_v31 = vadd.f32 1.0, %v4754_v7  ;;  %v2832_v32 = vmul.f32 0.5, %v2824_v28  ;;  %v4689_v7 = vld [vmem:[%s6002_s11 + $0x280] ss:$8 sps:$4 sm:$0xff]  }
 0xa76   : > { %v2827_v33 = vadd.f32 1.0, %v4756_v30  ;;  %v2834_v0 = vmul.f32 0.5, %v2826_v29 }
 0xa77   : > { %v2833_v34 = vmul.f32 0.5, %v2825_v31  ;;  %v2840_v36 = vmul.f32 %v2832_v32, %v2647_v49  ;;  %v4655_v49 = vld [vmem:[%s6002_s11 + $0x224] ss:$8 sps:$4 sm:$0xff]   ;;  %v4697_v31 = vld [vmem:[%s6002_s11 + $0x294] ss:$8 sps:$4 sm:$0xff]  }
 0xa78   : > { %v2835_v35 = vmul.f32 0.5, %v2827_v33  ;;  %v2842_v39 = vmul.f32 %v2834_v0, %v2688_v50  ;;  %v4658_v50 = vld [vmem:[%s6002_s11 + $0x324] ss:$8 sps:$4 sm:$0xff]  }
 0xa79   : > { %v2841_v37 = vmul.f32 %v2833_v34, %v2649_v53  ;;  %v2976_v44 = vpack.c.bf16 %v2840_v36, %v2840_v36  ;;  %v4661_v53 = vld [vmem:[%s6002_s11 + $0x234] ss:$8 sps:$4 sm:$0xff]  }
 0xa7a   : > { %v2843_v40 = vmul.f32 %v2835_v35, %v2690_v54  ;;  %v2978_v46 = vpack.c.bf16 %v2842_v39, %v2842_v39  ;;  %v4664_v54 = vld [vmem:[%s6002_s11 + $0x334] ss:$8 sps:$4 sm:$0xff]  }
 0xa7b   : > { %v2977_v41 = vpack.c.bf16 %v2841_v37, %v2841_v37  ;;  %v4700_v35 = vld [vmem:[%s6002_s11 + $0x394] ss:$8 sps:$4 sm:$0xff]  }
 0xa7c   : > { %v2979_v26 = vpack.c.bf16 %v2843_v40, %v2843_v40 }
 0xa7d   : > { %3668 = vmatprep.mubr.bf16.mxu1 %v2977_v41 }
 0xa7e   : > { %3709 = vmatprep.mubr.bf16.mxu0 %v2979_v26  ;;  %3669 = vmatmul.mubr.bf16.vlgmr.msra.gmra.mrb[32].mxu1 %v2976_v44  ;;  %v4695_v26 = vld [vmem:[%s6002_s11 + $0x290] ss:$8 sps:$4 sm:$0xff]  }
 0xa7f   : > { %3710 = vmatmul.mubr.bf16.vlgmr.msra.gmra.mrb[20].mxu0 %v2978_v46  ;;  %3719 = vmatpush1.bf16.msra.mxu1 %v4641_v42  ;;  %v4703_v46 = vld [vmem:[%s6002_s11 + $0x2a4] ss:$8 sps:$4 sm:$0xff]  }
 0xa80   : > { %3760 = vmatpush1.bf16.msra.mxu0 %v4644_v43  ;;  %3720 = vmatprep.subr.bf16.mxu1 %v4649_v45  ;;  %v4698_v45 = vld [vmem:[%s6002_s11 + $0x390] ss:$8 sps:$4 sm:$0xff]  }
 0xa81   : > { %3761 = vmatprep.subr.bf16.mxu0 %v4652_v47 }
 0xa83   : > { %3721 = vmatpush1.bf16.msra.mxu1 %v4647_v13 }
 0xa84   : > { %3762 = vmatpush1.bf16.msra.mxu0 %v4650_v48  ;;  %3722 = vmatprep.subr.bf16.mxu1 %v4655_v49  ;;  %v4706_v48 = vld [vmem:[%s6002_s11 + $0x3a4] ss:$8 sps:$4 sm:$0xff]  }
 0xa85   : > { %3763 = vmatprep.subr.bf16.mxu0 %v4658_v50 }
 0xa87   : > { %3723 = vmatpush1.bf16.msra.mxu1 %v4653_v51 }
 0xa88   : > { %3764 = vmatpush1.bf16.msra.mxu0 %v4656_v52  ;;  %3724 = vmatprep.subr.bf16.mxu1 %v4661_v53  ;;  %v4701_v53 = vld [vmem:[%s6002_s11 + $0x2a0] ss:$8 sps:$4 sm:$0xff]  }
 0xa89   : > { %3765 = vmatprep.subr.bf16.mxu0 %v4664_v54 }
 0xa8b   : > { %3725 = vmatpush1.bf16.msra.mxu1 %v4659_v55 }
 0xa8c   : > { %3766 = vmatpush1.bf16.msra.mxu0 %v4662_v56  ;;  %3726 = vmatprep.subr.bf16.mxu1 %v4667_v57  ;;  %v4704_v56 = vld [vmem:[%s6002_s11 + $0x3a0] ss:$8 sps:$4 sm:$0xff]   ;;  %v4709_v57 = vld [vmem:[%s6002_s11 + $0x2b4] ss:$8 sps:$4 sm:$0xff]  }
 0xa8d   : > { %3767 = vmatprep.subr.bf16.mxu0 %v4670_v58 }
 0xa8f   : > { %3727 = vmatpush1.bf16.msra.mxu1 %v4665_v1 }
 0xa90   : > { %3768 = vmatpush1.bf16.msra.mxu0 %v4668_v61  ;;  %3728 = vmatprep.subr.bf16.mxu1 %v4673_v62  ;;  %v4712_v61 = vld [vmem:[%s6002_s11 + $0x3b4] ss:$8 sps:$4 sm:$0xff]  }
 0xa91   : > { %3769 = vmatprep.subr.bf16.mxu0 %v4676_v63 }
 0xa93   : > { %3729 = vmatpush1.bf16.msra.mxu1 %v4671_v3 }
 0xa94   : > { %3770 = vmatpush1.bf16.msra.mxu0 %v4674_v4  ;;  %3730 = vmatprep.subr.bf16.mxu1 %v4679_v6  ;;  %v4707_v6 = vld [vmem:[%s6002_s11 + $0x2b0] ss:$8 sps:$4 sm:$0xff]  }
 0xa95   : > { %3771 = vmatprep.subr.bf16.mxu0 %v4682_v5  ;;  %v4710_v5 = vld [vmem:[%s6002_s11 + $0x3b0] ss:$8 sps:$4 sm:$0xff]  }
 0xa97   : > { %3731 = vmatpush1.bf16.msra.mxu1 %v4677_v9  ;;  %v4715_v9 = vld [vmem:[%s6002_s11 + $0x2c4] ss:$8 sps:$4 sm:$0xff]  }
 0xa98   : > { %3772 = vmatpush1.bf16.msra.mxu0 %v4680_v10  ;;  %3732 = vmatprep.subr.bf16.mxu1 %v4685_v11  ;;  %v4718_v10 = vld [vmem:[%s6002_s11 + $0x3c4] ss:$8 sps:$4 sm:$0xff]   ;;  %v4713_v11 = vld [vmem:[%s6002_s11 + $0x2c0] ss:$8 sps:$4 sm:$0xff]  }
 0xa99   : > { %3773 = vmatprep.subr.bf16.mxu0 %v4688_v14  ;;  %v4721_v14 = vld [vmem:[%s6002_s11 + $0x2d4] ss:$8 sps:$4 sm:$0xff]  }
 0xa9b   : > { %3733 = vmatpush1.bf16.msra.mxu1 %v4683_v19  ;;  %v2728_v28 = vpop.f32.mrb[28].mxu1  ;;  %v2769_v21 = vpop.f32.mrb[16].mxu0  ;;  %v4719_v19 = vld [vmem:[%s6002_s11 + $0x2d0] ss:$8 sps:$4 sm:$0xff]  }
 0xa9c   : > { %3774 = vmatpush1.bf16.msra.mxu0 %v4686_v20  ;;  %v5861_v29 = vadd.f32 %v2728_v28, %v1951_v2  ;;  %v5863_v30 = vadd.f32 %v2769_v21, %v1959_v8  ;;  %v2730_v15 = vpop.f32.mrb[29].mxu1  ;;  %v2771_v22 = vpop.f32.mrb[17].mxu0  ;;  %3734 = vmatprep.subr.bf16.mxu1 %v4691_v59  ;;  %v4722_v20 = vld [vmem:[%s6002_s11 + $0x3d0] ss:$8 sps:$4 sm:$0xff]   ;;  %v4727_v2 = vld [vmem:[%s6002_s11 + $0x2e4] ss:$8 sps:$4 sm:$0xff]  }
 0xa9d   : > { %v5871_v32 = vadd.f32 %v2730_v15, %v1955_v60  ;;  %v5873_v33 = vadd.f32 %v2771_v22, %v1963_v23  ;;  %v2732_v0 = vpop.f32.mrb[30].mxu1  ;;  %v2773_v34 = vpop.f32.mrb[18].mxu0  ;;  %3775 = vmatprep.subr.bf16.mxu0 %v4694_v27  ;;  %v4730_v8 = vld [vmem:[%s6002_s11 + $0x3e4] ss:$8 sps:$4 sm:$0xff]   ;;  %v4725_v23 = vld [vmem:[%s6002_s11 + $0x2e0] ss:$8 sps:$4 sm:$0xff]  }
 0xa9e   : > { %v2780_v36 = vmul.f32 %v5861_v29, %v5861_v29  ;;  %v2782_v37 = vmul.f32 %v5863_v30, %v5863_v30  ;;  %v2733_v39 = vpop.f32.mrb[31].mxu1  ;;  %v2774_v40 = vpop.f32.mrb[19].mxu0  ;;  %v4728_v21 = vld [vmem:[%s6002_s11 + $0x3e0] ss:$8 sps:$4 sm:$0xff]  }
 0xa9f   : > { %v2781_v41 = vmul.f32 %v5871_v32, %v5871_v32  ;;  %v2783_v42 = vmul.f32 %v5873_v33, %v5873_v33  ;;  %3735 = vmatpush1.bf16.msra.mxu1 %v4689_v7  ;;  %v4733_v7 = vld [vmem:[%s6002_s11 + $0x2f4] ss:$8 sps:$4 sm:$0xff]   ;;  %v4734_v39 = vld [vmem:[%s6002_s11 + $0x3f0] ss:$8 sps:$4 sm:$0xff]  }
 0xaa0   : > { %v2788_v43 = vmul.f32 %v2780_v36, %v5861_v29  ;;  %v2790_v44 = vmul.f32 %v2782_v37, %v5863_v30  ;;  %3776 = vmatpush1.bf16.msra.mxu0 %v4692_v38  ;;  %3736 = vmatprep.subr.bf16.mxu1 %v4697_v31  ;;  %v4736_v38 = vld [vmem:[%s6002_s11 + $0x3f4] ss:$8 sps:$4 sm:$0xff]   ;;  %v4731_v36 = vld [vmem:[%s6002_s11 + $0x2f0] ss:$8 sps:$4 sm:$0xff]  }
 0xaa1   : > { %v2789_v47 = vmul.f32 %v2781_v41, %v5871_v32  ;;  %v2791_v13 = vmul.f32 %v2783_v42, %v5873_v33  ;;  %3777 = vmatprep.subr.bf16.mxu0 %v4700_v35 }
 0xaa2   : > { %v2796_v49 = vmul.f32 0.044715, %v2788_v43  ;;  %v2798_v50 = vmul.f32 0.044715, %v2790_v44 }
 0xaa3   : > { %v2797_v51 = vmul.f32 0.044715, %v2789_v47  ;;  %v2799_v52 = vmul.f32 0.044715, %v2791_v13  ;;  %3737 = vmatpush1.bf16.msra.mxu1 %v4695_v26 }
 0xaa4   : > { %v2804_v54 = vadd.f32 %v2796_v49, %v5861_v29  ;;  %v2806_v55 = vadd.f32 %v2798_v50, %v5863_v30  ;;  %3778 = vmatpush1.bf16.msra.mxu0 %v4698_v45  ;;  %3738 = vmatprep.subr.bf16.mxu1 %v4703_v46 }
 0xaa5   : > { %v2805_v58 = vadd.f32 %v2797_v51, %v5871_v32  ;;  %v2807_v1 = vadd.f32 %v2799_v52, %v5873_v33  ;;  %3779 = vmatprep.subr.bf16.mxu0 %v4706_v48 }
 0xaa6   : > { %v2812_v62 = vmul.f32 0.7978846, %v2804_v54  ;;  %v2814_v63 = vmul.f32 0.7978846, %v2806_v55 }
 0xaa7   : > { %v2813_v3 = vmul.f32 0.7978846, %v2805_v58  ;;  %v2815_v4 = vmul.f32 0.7978846, %v2807_v1  ;;  %3739 = vmatpush1.bf16.msra.mxu1 %v4701_v53 }
 0xaa8   : > { %4757 = vtanh.f32 %v2812_v62  ;;  %3780 = vmatpush1.bf16.msra.mxu0 %v4704_v56  ;;  %3740 = vmatprep.subr.bf16.mxu1 %v4709_v57 }
 0xaa9   : > { %4759 = vtanh.f32 %v2814_v63  ;;  %3781 = vmatprep.subr.bf16.mxu0 %v4712_v61 }
 0xaaa   : > { %4761 = vtanh.f32 %v2813_v3 }
 0xaab   : > { %4763 = vtanh.f32 %v2815_v4  ;;  %3741 = vmatpush1.bf16.msra.mxu1 %v4707_v6 }
 0xaac   : > { %3782 = vmatpush1.bf16.msra.mxu0 %v4710_v5  ;;  %3742 = vmatprep.subr.bf16.mxu1 %v4715_v9 }
 0xaad   : > { %3783 = vmatprep.subr.bf16.mxu0 %v4718_v10 }
 0xaaf   : > { %3743 = vmatpush1.bf16.msra.mxu1 %v4713_v11 }
 0xab0   : > { %3784 = vmatpush1.bf16.msra.mxu0 %v4716_v12  ;;  %3744 = vmatprep.subr.bf16.mxu1 %v4721_v14 }
 0xab1   : > { %3785 = vmatprep.subr.bf16.mxu0 %v4724_v18 }
 0xab2   : > { %v4758_v59 = vpop.eup %4757 }
 0xab3   : > { %v4760_v60 = vpop.eup %4759  ;;  %3745 = vmatpush1.bf16.msra.mxu1 %v4719_v19  ;;  %v2828_v27 = vadd.f32 1.0, %v4758_v59 }
 0xab4   : > { %v4762_v28 = vpop.eup %4761  ;;  %3786 = vmatpush1.bf16.msra.mxu0 %v4722_v20  ;;  %3746 = vmatprep.subr.bf16.mxu1 %v4727_v2  ;;  %v2830_v15 = vadd.f32 1.0, %v4760_v60 }
 0xab5   : > { %v4764_v22 = vpop.eup %4763  ;;  %3787 = vmatprep.subr.bf16.mxu0 %v4730_v8  ;;  %v2829_v31 = vadd.f32 1.0, %v4762_v28  ;;  %v2836_v0 = vmul.f32 0.5, %v2828_v27 }
 0xab6   : > { %v2831_v34 = vadd.f32 1.0, %v4764_v22  ;;  %v2838_v35 = vmul.f32 0.5, %v2830_v15 }
 0xab7   : > { %3747 = vmatpush1.bf16.msra.mxu1 %v4725_v23  ;;  %v2837_v37 = vmul.f32 0.5, %v2829_v31  ;;  %v2844_v41 = vmul.f32 %v2836_v0, %v5861_v29  ;;  %v2984_v29 = vld [vmem:[%s6003_s12] sm:$0x3] }
 0xab8   : > { %3788 = vmatpush1.bf16.msra.mxu0 %v4728_v21  ;;  %3748 = vmatprep.subr.bf16.mxu1 %v4733_v7  ;;  %v2839_v40 = vmul.f32 0.5, %v2831_v34  ;;  %v2846_v26 = vmul.f32 %v2838_v35, %v5863_v30  ;;  %v2993_v30 = vrot.slane %v2984_v29, %v5035_v16 }
 0xab9   : > { %3789 = vmatprep.subr.bf16.mxu0 %v4736_v38  ;;  %v2845_v42 = vmul.f32 %v2837_v37, %v5871_v32  ;;  %v2980_v46 = vpack.c.bf16 %v2844_v41, %v2844_v41  ;;  %v2989_v32 = vrot.slane %v2984_v29, %v5038_v17 }
 0xaba   : > { %v2847_v43 = vmul.f32 %v2839_v40, %v5873_v33  ;;  %v2982_v47 = vpack.c.bf16 %v2846_v26, %v2846_v26 }
 0xabb   : > { %3749 = vmatpush1.bf16.msra.mxu1 %v4731_v36  ;;  %v2981_v44 = vpack.c.bf16 %v2845_v42, %v2845_v42 }
 0xabc   : > { %3790 = vmatpush1.bf16.msra.mxu0 %v4734_v39  ;;  %v2983_v45 = vpack.c.bf16 %v2847_v43, %v2847_v43 }
 0xabd   : > { %3750 = vmatprep.mubr.bf16.mxu1 %v2981_v44 }
 0xabe   : > { %3791 = vmatprep.mubr.bf16.mxu0 %v2983_v45  ;;  %3751 = vmatmul.mubr.bf16.vlgmr.msra.gmra.mrb[36].mxu1 %v2980_v46 }
 0xabf   : > { %3792 = vmatmul.mubr.bf16.vlgmr.msra.gmra.mrb[24].mxu0 %v2982_v47 }
 0xb51   : > { %v3670_v13 = vpop.f32.mrb[32].mxu1 }
 0xb52   : > { %v3671_v33 = vadd.f32 %v3670_v13, %v2989_v32  ;;  %v3711_v48 = vpop.f32.mrb[20].mxu0  ;;  %v3672_v49 = vpop.f32.mrb[33].mxu1 }
 0xb53   : > { %v3673_v50 = vadd.f32 %v3672_v49, %v2993_v30  ;;  %v3713_v51 = vpop.f32.mrb[21].mxu0  ;;  %v3674_v52 = vpop.f32.mrb[34].mxu1 }
 0xb54   : > { %v3712_v53 = vadd.f32 %v3711_v48, %v3671_v33  ;;  %v3715_v54 = vpop.f32.mrb[22].mxu0  ;;  %v3675_v55 = vpop.f32.mrb[35].mxu1 }
 0xb55   : > { %v3714_v56 = vadd.f32 %v3713_v51, %v3673_v50  ;;  %v3716_v57 = vpop.f32.mrb[23].mxu0 }
 0xb91   : > { %v3752_v58 = vpop.f32.mrb[36].mxu1 }
 0xb92   : > { %v3753_v1 = vadd.f32 %v3752_v58, %v3712_v53  ;;  %v3793_v61 = vpop.f32.mrb[24].mxu0  ;;  %v3754_v62 = vpop.f32.mrb[37].mxu1 }
 0xb93   : > { %v3755_v17 = vadd.f32 %v3754_v62, %v3714_v56  ;;  %v3795_v63 = vpop.f32.mrb[25].mxu0  ;;  %v3756_v16 = vpop.f32.mrb[38].mxu1 }
 0xb94   : > { %v3794_v3 = vadd.f32 %v3793_v61, %v3753_v1  ;;  %v3797_v4 = vpop.f32.mrb[26].mxu0  ;;  %v3757_v6 = vpop.f32.mrb[39].mxu1 }
 0xb95   : > { %v3796_v5 = vadd.f32 %v3795_v63, %v3755_v17  ;;  %v3798_v9 = vpop.f32.mrb[27].mxu0 }
 0xb96   : > { %v3800_v10 = vadd.f32 %v3794_v3, %v5121_v24 }
 0xb97   : > { %v3801_v11 = vadd.f32 %v3796_v5, %v5123_v25 }
 0xb98   : > { %3802 = vst [vmem:[%s470_s15] sm:$0xff] %v3800_v10 }
 0xb99   : > { %3803 = vst [vmem:[%s470_s15 + $0x8] sm:$0xff] %v3801_v11 }
 0xb9a PF: > { %s25_s25 = sadd.s32 1, %s4837_s25  }
 0xb9b   : > { %p22_p5 = scmp.ge.s32.totalorder %s25_s25, 4  }
 0xb9d   :  { %24 = sbr.rel (!%p22_p5) target bundleno = 2 (0x2), region = 111 }
 0xba4   :  { %3825 = vsyncpa [#allocation3], 1 }
 0xba5   :  { %3827 = vsyncpa [#allocation3 + $0x1], 1 }
 0xba6   :  { %3828 = vsyncpa [#allocation5], 1 }

// kernel: vit_forward.6
= control target key start
LH: loop header
LB: loop body
LE: loop exit
PB: predicated region body
PF: predicated region fallthrough
CT: control target
= control target key end

     0   :  { %s4768_s25 = smov 0   ;;  %s6148_s0 = inlined_call_operand.vmem [shape: f32[16,256], index: 0, kind: input, shape index: {}]   ;;  %s6149_s1 = inlined_call_operand.vmem [shape: f32[1,256], index: 1, kind: input, shape index: {}]   ;;  %s6150_s2 = inlined_call_operand.vmem [shape: f32[1,256], index: 2, kind: input, shape index: {}]   ;;  %s6151_s3 = inlined_call_operand.vmem [shape: bf16[256,768], index: 3, kind: input, shape index: {}]   ;;  %s6152_s4 = inlined_call_operand.vmem [shape: f32[1,768], index: 4, kind: input, shape index: {}]   ;;  %s6153_s5 = inlined_call_operand.vmem [shape: bf16[256,256], index: 5, kind: input, shape index: {}]   ;;  %s6154_s6 = inlined_call_operand.vmem [shape: f32[1,256], index: 6, kind: input, shape index: {}]   ;;  %s6155_s7 = inlined_call_operand.vmem [shape: f32[1,256], index: 7, kind: input, shape index: {}]   ;;  %s6156_s8 = inlined_call_operand.vmem [shape: f32[1,256], index: 8, kind: input, shape index: {}]   ;;  %s6157_s9 = inlined_call_operand.vmem [shape: bf16[256,1024], index: 9, kind: input, shape index: {}]   ;;  %s6158_s10 = inlined_call_operand.vmem [shape: f32[1,1024], index: 10, kind: input, shape index: {}]   ;;  %s6159_s11 = inlined_call_operand.vmem [shape: bf16[1024,256], index: 11, kind: input, shape index: {}]   ;;  %s6160_s12 = inlined_call_operand.vmem [shape: f32[1,256], index: 12, kind: input, shape index: {}]   ;;  %s6161_s13 = inlined_call_operand.vmem [shape: f32[16,256], index: 13, kind: output, shape index: {}]  }
   0x1 LB: > { %s3829_s26 = sadd.s32 4294967295, %s4692_s25   ;;  %p3833_p0 = scmp.ge.s32.totalorder %s4692_s25, 1  ;;  %s4692_s25 = sphi %s4768_s25, %s23_s25  }
   0x2   : > { %p387_p1 = scmp.lt.s32.totalorder %s4692_s25, 3 }
   0x4   : > { %p388_p2 = pnand %p3833_p0, %p387_p1 }
   0x5   : > { %p431_p3 = scmp.lt.s32.totalorder (!%p388_p2), %s3829_s26, 1  ;;  %v4272_v3 = vld [vmem:[%s6151_s3 + $0x4] ss:$24 sps:$4 sm:$0xff] (!%p388_p2)   ;;  %v4274_v4 = vld [vmem:[%s6151_s3] ss:$24 sps:$4 sm:$0xff] (!%p388_p2)   ;;  %vm4695_vm0 = vmmov (!%p388_p2), 0  }
   0x6   : > { %391 = sbr.rel (%p388_p2) target bundleno = 2911 (0xb5f), region = 72  ;;  %v4275_v5 = vld [vmem:[%s6151_s3 + $0xc] ss:$24 sps:$4 sm:$0xff] (!%p388_p2)   ;;  %v4277_v6 = vld [vmem:[%s6151_s3 + $0x8] ss:$24 sps:$4 sm:$0xff] (!%p388_p2)   ;;  %1099 = vmatprep.subr.bf16.mxu0 (!%p388_p2), %v4272_v3  ;;  %vm1319_vm1 = vcmask (!%p388_p2), 1043456  }
   0x7   : > { %v4278_v7 = vld [vmem:[%s6151_s3 + $0x34] ss:$24 sps:$4 sm:$0xff] (!%p388_p2)   ;;  %1140 = vmatprep.subr.bf16.mxu1 (!%p388_p2), %v4275_v5  ;;  %1100 = vmatpush1.bf16.msra.mxu0 (!%p388_p2), %v4274_v4  ;;  %v4280_v9 = vld [vmem:[%s6151_s3 + $0x30] ss:$24 sps:$4 sm:$0xff] (!%p388_p2)   ;;  %v4284_v11 = vld [vmem:[%s6151_s3 + $0x64] ss:$24 sps:$4 sm:$0xff] (!%p388_p2)  }
   0x8   : > { %v4281_v8 = vld [vmem:[%s6151_s3 + $0x3c] ss:$24 sps:$4 sm:$0xff] (!%p388_p2)   ;;  %1141 = vmatpush1.bf16.msra.mxu1 (!%p388_p2), %v4277_v6  ;;  %v4283_v10 = vld [vmem:[%s6151_s3 + $0x38] ss:$24 sps:$4 sm:$0xff] (!%p388_p2)   ;;  %1101 = vmatprep.subr.bf16.mxu0 (!%p388_p2), %v4278_v7  ;;  %v4287_v12 = vld [vmem:[%s6151_s3 + $0x6c] ss:$24 sps:$4 sm:$0xff] (!%p388_p2)  }
   0x9   : > { %1142 = vmatprep.subr.bf16.mxu1 (!%p388_p2), %v4281_v8  ;;  %v4286_v13 = vld [vmem:[%s6151_s3 + $0x60] ss:$24 sps:$4 sm:$0xff] (!%p388_p2)   ;;  %v4290_v15 = vld [vmem:[%s6151_s3 + $0x94] ss:$24 sps:$4 sm:$0xff] (!%p388_p2)   ;;  %v4292_v17 = vld [vmem:[%s6151_s3 + $0x90] ss:$24 sps:$4 sm:$0xff] (!%p388_p2)  }
   0xa   : > { %v4289_v14 = vld [vmem:[%s6151_s3 + $0x68] ss:$24 sps:$4 sm:$0xff] (!%p388_p2)   ;;  %v4293_v16 = vld [vmem:[%s6151_s3 + $0x9c] ss:$24 sps:$4 sm:$0xff] (!%p388_p2)   ;;  %v4295_v18 = vld [vmem:[%s6151_s3 + $0x98] ss:$24 sps:$4 sm:$0xff] (!%p388_p2)  }
   0xb   : > { %1102 = vmatpush1.bf16.msra.mxu0 (!%p388_p2), %v4280_v9  ;;  %v4296_v19 = vld [vmem:[%s6151_s3 + $0xc4] ss:$24 sps:$4 sm:$0xff] (!%p388_p2)   ;;  %v4298_v21 = vld [vmem:[%s6151_s3 + $0xc0] ss:$24 sps:$4 sm:$0xff] (!%p388_p2)   ;;  %v4302_v23 = vld [vmem:[%s6151_s3 + $0xf4] ss:$24 sps:$4 sm:$0xff] (!%p388_p2)  }
   0xc   : > { %1143 = vmatpush1.bf16.msra.mxu1 (!%p388_p2), %v4283_v10  ;;  %1103 = vmatprep.subr.bf16.mxu0 (!%p388_p2), %v4284_v11  ;;  %v4299_v20 = vld [vmem:[%s6151_s3 + $0xcc] ss:$24 sps:$4 sm:$0xff] (!%p388_p2)   ;;  %v4301_v22 = vld [vmem:[%s6151_s3 + $0xc8] ss:$24 sps:$4 sm:$0xff] (!%p388_p2)   ;;  %v4305_v24 = vld [vmem:[%s6151_s3 + $0xfc] ss:$24 sps:$4 sm:$0xff] (!%p388_p2)  }
   0xd   : > { %s6163_s26 = smov (!%p431_p3, %s3829_s26), 1  ;;  %1144 = vmatprep.subr.bf16.mxu1 %v4287_v12  ;;  %v4304_v25 = vld [vmem:[%s6151_s3 + $0xf0] ss:$24 sps:$4 sm:$0xff]   ;;  %v4308_v27 = vld [vmem:[%s6151_s3 + $0x124] ss:$24 sps:$4 sm:$0xff]   ;;  %vm1302_vm3 = vcmask 64512  }
   0xe   : > { %s4226_s27 = sshll.u32 %s6163_s26, 4  ;;  %v4307_v26 = vld [vmem:[%s6151_s3 + $0xf8] ss:$24 sps:$4 sm:$0xff]   ;;  %v4311_v28 = vld [vmem:[%s6151_s3 + $0x12c] ss:$24 sps:$4 sm:$0xff]  }
   0xf   : > { %s4784_s30 = scalar_lea.vmem %s6148_s0, %s4226_s27  ;;  %1104 = vmatpush1.bf16.msra.mxu0 %v4286_v13  ;;  %v4310_v29 = vld [vmem:[%s6151_s3 + $0x120] ss:$24 sps:$4 sm:$0xff]   ;;  %v4314_v31 = vld [vmem:[%s6151_s3 + $0x154] ss:$24 sps:$4 sm:$0xff]   ;;  %v4316_v33 = vld [vmem:[%s6151_s3 + $0x150] ss:$24 sps:$4 sm:$0xff]   ;;  %v464_v13 = vlaneseq  ;;  %s440_s22 = scalar_lea.vmem %s6161_s13, %s4226_s27 }
  0x10   : > { %v4787_v0 = vld [vmem:[%s4784_s30] sm:$0xff]  ;;  %v4790_v1 = vld [vmem:[%s4784_s30 + $0x8] sm:$0xff]  ;;  %1145 = vmatpush1.bf16.msra.mxu1 %v4289_v14  ;;  %1105 = vmatprep.subr.bf16.mxu0 %v4290_v15  ;;  %v4317_v32 = vld [vmem:[%s6151_s3 + $0x15c] ss:$24 sps:$4 sm:$0xff]  }
  0x11   : > { %v446_v2 = vadd.f32 %v4790_v1, %v4787_v0  ;;  %1146 = vmatprep.subr.bf16.mxu1 %v4293_v16  ;;  %v4313_v30 = vld [vmem:[%s6151_s3 + $0x128] ss:$24 sps:$4 sm:$0xff]   ;;  %v4319_v34 = vld [vmem:[%s6151_s3 + $0x158] ss:$24 sps:$4 sm:$0xff]   ;;  %v4320_v35 = vld [vmem:[%s6151_s3 + $0x184] ss:$24 sps:$4 sm:$0xff]  }
  0x12   : > { %v4323_v36 = vld [vmem:[%s6151_s3 + $0x18c] ss:$24 sps:$4 sm:$0xff]   ;;  %v4322_v37 = vld [vmem:[%s6151_s3 + $0x180] ss:$24 sps:$4 sm:$0xff]   ;;  %v4329_v40 = vld [vmem:[%s6151_s3 + $0x1bc] ss:$24 sps:$4 sm:$0xff]  }
  0x13   : > { %447 = vadd.xlane.f32.xlu0 %v446_v2  ;;  %1106 = vmatpush1.bf16.msra.mxu0 %v4292_v17  ;;  %v4325_v38 = vld [vmem:[%s6151_s3 + $0x188] ss:$24 sps:$4 sm:$0xff]   ;;  %v4326_v39 = vld [vmem:[%s6151_s3 + $0x1b4] ss:$24 sps:$4 sm:$0xff]   ;;  %v4331_v42 = vld [vmem:[%s6151_s3 + $0x1b8] ss:$24 sps:$4 sm:$0xff]  }
  0x14   : > { %1147 = vmatpush1.bf16.msra.mxu1 %v4295_v18  ;;  %1107 = vmatprep.subr.bf16.mxu0 %v4296_v19  ;;  %v4328_v41 = vld [vmem:[%s6151_s3 + $0x1b0] ss:$24 sps:$4 sm:$0xff]   ;;  %v4332_v43 = vld [vmem:[%s6151_s3 + $0x1e4] ss:$24 sps:$4 sm:$0xff]   ;;  %v4334_v51 = vld [vmem:[%s6151_s3 + $0x1e0] ss:$24 sps:$4 sm:$0xff]  }
  0x15   : > { %1148 = vmatprep.subr.bf16.mxu1 %v4299_v20  ;;  %v4335_v52 = vld [vmem:[%s6151_s3 + $0x1ec] ss:$24 sps:$4 sm:$0xff]   ;;  %v4337_v53 = vld [vmem:[%s6151_s3 + $0x1e8] ss:$24 sps:$4 sm:$0xff]   ;;  %v4341_v56 = vld [vmem:[%s6151_s3 + $0x21c] ss:$24 sps:$4 sm:$0xff]  }
  0x16   : > { %v4338_v54 = vld [vmem:[%s6151_s3 + $0x214] ss:$24 sps:$4 sm:$0xff]   ;;  %v4340_v55 = vld [vmem:[%s6151_s3 + $0x210] ss:$24 sps:$4 sm:$0xff]   ;;  %v4344_v58 = vld [vmem:[%s6151_s3 + $0x244] ss:$24 sps:$4 sm:$0xff]  }
  0x17   : > { %1108 = vmatpush1.bf16.msra.mxu0 %v4298_v21  ;;  %v4343_v57 = vld [vmem:[%s6151_s3 + $0x218] ss:$24 sps:$4 sm:$0xff]   ;;  %v4347_v60 = vld [vmem:[%s6151_s3 + $0x24c] ss:$24 sps:$4 sm:$0xff]   ;;  %v4349_v61 = vld [vmem:[%s6151_s3 + $0x248] ss:$24 sps:$4 sm:$0xff]  }
  0x18   : > { %1149 = vmatpush1.bf16.msra.mxu1 %v4301_v22  ;;  %1109 = vmatprep.subr.bf16.mxu0 %v4302_v23  ;;  %v4346_v59 = vld [vmem:[%s6151_s3 + $0x240] ss:$24 sps:$4 sm:$0xff]   ;;  %v4350_v62 = vld [vmem:[%s6151_s3 + $0x274] ss:$24 sps:$4 sm:$0xff]   ;;  %v4356_v2 = vld [vmem:[%s6151_s3 + $0x2a4] ss:$24 sps:$4 sm:$0xff]  }
  0x19   : > { %1150 = vmatprep.subr.bf16.mxu1 %v4305_v24  ;;  %v4353_v63 = vld [vmem:[%s6151_s3 + $0x27c] ss:$24 sps:$4 sm:$0xff]   ;;  %v4359_v3 = vld [vmem:[%s6151_s3 + $0x2ac] ss:$24 sps:$4 sm:$0xff]   ;;  %v4358_v4 = vld [vmem:[%s6151_s3 + $0x2a0] ss:$24 sps:$4 sm:$0xff]  }
  0x1a   : > { %v4361_v5 = vld [vmem:[%s6151_s3 + $0x2a8] ss:$24 sps:$4 sm:$0xff]   ;;  %v4362_v6 = vld [vmem:[%s6151_s3 + $0x2d4] ss:$24 sps:$4 sm:$0xff]   ;;  %v4367_v9 = vld [vmem:[%s6151_s3 + $0x2d8] ss:$24 sps:$4 sm:$0xff]  }
  0x1b   : > { %1110 = vmatpush1.bf16.msra.mxu0 %v4304_v25  ;;  %v4365_v7 = vld [vmem:[%s6151_s3 + $0x2dc] ss:$24 sps:$4 sm:$0xff]   ;;  %v4364_v8 = vld [vmem:[%s6151_s3 + $0x2d0] ss:$24 sps:$4 sm:$0xff]   ;;  %v5000_v15 = vshrl.u32 %v464_v13, 7 }
  0x1c   : > { %1151 = vmatpush1.bf16.msra.mxu1 %v4307_v26  ;;  %1111 = vmatprep.subr.bf16.mxu0 %v4308_v27  ;;  %v4370_v10 = vld [vmem:[%s6151_s3 + $0x14] ss:$24 sps:$4 sm:$0xff]   ;;  %v444_v18 = vld [vmem:[%s6149_s1] sm:$0x3] }
  0x1d   : > { %1152 = vmatprep.subr.bf16.mxu1 %v4311_v28  ;;  %v5003_v16 = vsub.s32 1, %v5000_v15  ;;  %v5006_v17 = vsub.s32 0, %v5000_v15  ;;  %v445_v19 = vld [vmem:[%s6150_s2] sm:$0x3] }
  0x1f   : > { %1112 = vmatpush1.bf16.msra.mxu0 %v4310_v29  ;;  %v471_v20 = vrot.slane %v444_v18, %v5003_v16  ;;  %v467_v21 = vrot.slane %v444_v18, %v5006_v17  ;;  %v484_v24 = vrot.slane %v445_v19, %v5003_v16  ;;  %v480_v26 = vrot.slane %v445_v19, %v5006_v17 }
  0x20   : > { %1153 = vmatpush1.bf16.msra.mxu1 %v4313_v30  ;;  %1113 = vmatprep.subr.bf16.mxu0 %v4314_v31 }
  0x21   : > { %1154 = vmatprep.subr.bf16.mxu1 %v4317_v32  ;;  %v4368_v32 = vld [vmem:[%s6151_s3 + $0x10] ss:$24 sps:$4 sm:$0xff]  }
  0x23   : > { %1114 = vmatpush1.bf16.msra.mxu0 %v4316_v33 }
  0x24   : > { %1155 = vmatpush1.bf16.msra.mxu1 %v4319_v34  ;;  %1115 = vmatprep.subr.bf16.mxu0 %v4320_v35  ;;  %v4373_v34 = vld [vmem:[%s6151_s3 + $0x44] ss:$24 sps:$4 sm:$0xff]   ;;  %v4371_v35 = vld [vmem:[%s6151_s3 + $0x40] ss:$24 sps:$4 sm:$0xff]  }
  0x25   : > { %1156 = vmatprep.subr.bf16.mxu1 %v4323_v36  ;;  %v4376_v36 = vld [vmem:[%s6151_s3 + $0x74] ss:$24 sps:$4 sm:$0xff]  }
  0x27   : > { %1116 = vmatpush1.bf16.msra.mxu0 %v4322_v37  ;;  %v4374_v37 = vld [vmem:[%s6151_s3 + $0x70] ss:$24 sps:$4 sm:$0xff]  }
  0x28   : > { %1157 = vmatpush1.bf16.msra.mxu1 %v4325_v38  ;;  %1117 = vmatprep.subr.bf16.mxu0 %v4326_v39  ;;  %v4379_v38 = vld [vmem:[%s6151_s3 + $0xa4] ss:$24 sps:$4 sm:$0xff]   ;;  %v4377_v39 = vld [vmem:[%s6151_s3 + $0xa0] ss:$24 sps:$4 sm:$0xff]  }
  0x29   : > { %1158 = vmatprep.subr.bf16.mxu1 %v4329_v40  ;;  %v4382_v40 = vld [vmem:[%s6151_s3 + $0xd4] ss:$24 sps:$4 sm:$0xff]  }
  0x2b   : > { %1118 = vmatpush1.bf16.msra.mxu0 %v4328_v41  ;;  %v4380_v41 = vld [vmem:[%s6151_s3 + $0xd0] ss:$24 sps:$4 sm:$0xff]  }
  0x2c   : > { %1159 = vmatpush1.bf16.msra.mxu1 %v4331_v42  ;;  %1119 = vmatprep.subr.bf16.mxu0 %v4332_v43  ;;  %v4385_v42 = vld [vmem:[%s6151_s3 + $0x104] ss:$24 sps:$4 sm:$0xff]   ;;  %v4383_v43 = vld [vmem:[%s6151_s3 + $0x100] ss:$24 sps:$4 sm:$0xff]  }
  0x2d   : > { %1160 = vmatprep.subr.bf16.mxu1 %v4335_v52  ;;  %v4400_v52 = vld [vmem:[%s6151_s3 + $0x1f4] ss:$24 sps:$4 sm:$0xff]  }
  0x2f   : > { %1120 = vmatpush1.bf16.msra.mxu0 %v4334_v51  ;;  %v4395_v51 = vld [vmem:[%s6151_s3 + $0x1c0] ss:$24 sps:$4 sm:$0xff]  }
  0x30   : > { %1161 = vmatpush1.bf16.msra.mxu1 %v4337_v53  ;;  %1121 = vmatprep.subr.bf16.mxu0 %v4338_v54  ;;  %v4398_v53 = vld [vmem:[%s6151_s3 + $0x1f0] ss:$24 sps:$4 sm:$0xff]   ;;  %v4403_v54 = vld [vmem:[%s6151_s3 + $0x224] ss:$24 sps:$4 sm:$0xff]  }
  0x31   : > { %1162 = vmatprep.subr.bf16.mxu1 %v4341_v56  ;;  %v4406_v56 = vld [vmem:[%s6151_s3 + $0x254] ss:$24 sps:$4 sm:$0xff]  }
  0x33   : > { %1122 = vmatpush1.bf16.msra.mxu0 %v4340_v55  ;;  %v4401_v55 = vld [vmem:[%s6151_s3 + $0x220] ss:$24 sps:$4 sm:$0xff]  }
  0x34   : > { %1163 = vmatpush1.bf16.msra.mxu1 %v4343_v57  ;;  %1123 = vmatprep.subr.bf16.mxu0 %v4344_v58  ;;  %v4404_v57 = vld [vmem:[%s6151_s3 + $0x250] ss:$24 sps:$4 sm:$0xff]   ;;  %v4409_v58 = vld [vmem:[%s6151_s3 + $0x284] ss:$24 sps:$4 sm:$0xff]  }
  0x35   : > { %1164 = vmatprep.subr.bf16.mxu1 %v4347_v60  ;;  %v4412_v60 = vld [vmem:[%s6151_s3 + $0x2b4] ss:$24 sps:$4 sm:$0xff]  }
  0x37   : > { %1124 = vmatpush1.bf16.msra.mxu0 %v4346_v59  ;;  %v4407_v59 = vld [vmem:[%s6151_s3 + $0x280] ss:$24 sps:$4 sm:$0xff]  }
  0x38   : > { %1165 = vmatpush1.bf16.msra.mxu1 %v4349_v61  ;;  %1125 = vmatprep.subr.bf16.mxu0 %v4350_v62  ;;  %v4410_v61 = vld [vmem:[%s6151_s3 + $0x2b0] ss:$24 sps:$4 sm:$0xff]   ;;  %v4415_v62 = vld [vmem:[%s6151_s3 + $0x2e4] ss:$24 sps:$4 sm:$0xff]  }
  0x39   : > { %1166 = vmatprep.subr.bf16.mxu1 %v4353_v63  ;;  %v4413_v63 = vld [vmem:[%s6151_s3 + $0x2e0] ss:$24 sps:$4 sm:$0xff]  }
  0xa0   : > { %v448_v44 = vpop.xlane.xlu0 %447 }
  0xa1   : > { %v450_v45 = vmul.f32 0.00390625, %v448_v44  ;;  %v4388_v44 = vld [vmem:[%s6151_s3 + $0x134] ss:$24 sps:$4 sm:$0xff]  }
  0xa3   : > { %v4918_v46 = vsub.f32 %v4787_v0, %v450_v45  ;;  %v4921_v47 = vsub.f32 %v4790_v1, %v450_v45  ;;  %v4352_v0 = vld [vmem:[%s6151_s3 + $0x270] ss:$24 sps:$4 sm:$0xff]  }
  0xa4   : > { %v4355_v1 = vld [vmem:[%s6151_s3 + $0x278] ss:$24 sps:$4 sm:$0xff]   ;;  %1126 = vmatpush1.bf16.msra.mxu0 %v4352_v0  ;;  %v4694_v0 = vmov 0.0  }
  0xa5   : > { %v453_v48 = vmul.f32 %v4918_v46, %v4918_v46  ;;  %v454_v49 = vmul.f32 %v4921_v47, %v4921_v47  ;;  %1167 = vmatpush1.bf16.msra.mxu1 %v4355_v1  ;;  %1127 = vmatprep.subr.bf16.mxu0 %v4356_v2  ;;  %v4386_v45 = vld [vmem:[%s6151_s3 + $0x130] ss:$24 sps:$4 sm:$0xff]   ;;  %v599_v1 = vsub.s32 2, %v5000_v15  ;;  %v5125_v2 = vld [vmem:[%s6152_s4] sm:$0x3f] }
  0xa6   : > { %1168 = vmatprep.subr.bf16.mxu1 %v4359_v3 }
  0xa7   : > { %v455_v50 = vadd.f32 %v454_v49, %v453_v48  ;;  %v4394_v48 = vld [vmem:[%s6151_s3 + $0x194] ss:$24 sps:$4 sm:$0xff]   ;;  %v4392_v49 = vld [vmem:[%s6151_s3 + $0x190] ss:$24 sps:$4 sm:$0xff]   ;;  %v600_v3 = vrot.slane %v5125_v2, %v599_v1 }
  0xa8   : > { %1128 = vmatpush1.bf16.msra.mxu0 %v4358_v4 }
  0xa9   : > { %456 = vadd.xlane.f32.xlu0 %v455_v50  ;;  %1169 = vmatpush1.bf16.msra.mxu1 %v4361_v5  ;;  %v4397_v50 = vld [vmem:[%s6151_s3 + $0x1c4] ss:$24 sps:$4 sm:$0xff]  }
  0xaa   : > { %1129 = vmatprep.subr.bf16.mxu0 %v4362_v6  ;;  %1170 = vmatprep.subr.bf16.mxu1 %v4365_v7 }
  0xac   : > { %1130 = vmatpush1.bf16.msra.mxu0 %v4364_v8 }
  0xad   : > { %1171 = vmatpush1.bf16.msra.mxu1 %v4367_v9  ;;  %1181 = vmatprep.subr.bf16.mxu0 %v4370_v10  ;;  %v592_v9 = vrot.slane %v5125_v2, %v5006_v17 }
  0xae   : > { %4236 = vmatprep.subr.bf16.mxu1 %v4694_v0 }
 0x136   : > { %v457_v11 = vpop.xlane.xlu0 %456 }
 0x137   : > { %v458_v12 = vmul.f32 0.00390625, %v457_v11 }
 0x139   : > { %v459_v14 = vadd.f32 1e-12, %v458_v12 }
 0x13b   : > { %4656 = vrsqrt.f32 %v459_v14 }
 0x145   : > { %v4657_v22 = vpop.eup %4656 }
 0x146   : > { %v462_v23 = vmul.f32 %v4657_v22, %v4921_v47  ;;  %v461_v25 = vmul.f32 %v4657_v22, %v4918_v46  ;;  %v4391_v46 = vld [vmem:[%s6151_s3 + $0x164] ss:$24 sps:$4 sm:$0xff]   ;;  %v4389_v47 = vld [vmem:[%s6151_s3 + $0x160] ss:$24 sps:$4 sm:$0xff]   ;;  %v611_v22 = vsub.s32 5, %v5000_v15 }
 0x148   : > { %v475_v27 = vmul.f32 %v471_v20, %v462_v23  ;;  %v474_v28 = vmul.f32 %v467_v21, %v461_v25  ;;  %v607_v21 = vsub.s32 4, %v5000_v15 }
 0x14a   : > { %v488_v29 = vadd.f32 %v484_v24, %v475_v27  ;;  %v487_v30 = vadd.f32 %v480_v26, %v474_v28  ;;  %v608_v23 = vrot.slane %v5125_v2, %v607_v21  ;;  %v612_v24 = vrot.slane %v5125_v2, %v611_v22 }
 0x14c   : > { %v586_v31 = vpack.c.bf16 %v488_v29, %v488_v29  ;;  %v5023_v33 = vpack.c.bf16 %v487_v30, %v487_v30 }
 0x14e   : > { %1131 = vmatprep.mubr.bf16.mxu0 %v586_v31  ;;  %1172 = vmatprep.mubr.bf16.mxu1 %v586_v31 }
 0x14f   : > { %1132 = vmatmul.mubr.bf16.vlgmr.msra.gmra.mrb[0].mxu0 %v5023_v33  ;;  %1173 = vmatmul.mubr.bf16.vlgmr.msra.gmra.mrb[0].mxu1 %v5023_v33 }
 0x150   : > { %1182 = vmatpush1.bf16.msra.mxu0 %v4368_v32  ;;  %1213 = vmatprep.mubr.bf16.mxu0 %v586_v31 }
 0x151   : > { %1183 = vmatprep.subr.bf16.mxu0 %v4373_v34  ;;  %4238 = vmatprep.mubr.msk.bf16.mxu1 %vm4695_vm0, %v4694_v0 }
 0x154   : > { %1184 = vmatpush1.bf16.msra.mxu0 %v4371_v35  ;;  %v1223_v35 = vand.u32 127, %v464_v13 }
 0x155   : > { %1185 = vmatprep.subr.bf16.mxu0 %v4376_v36 }
 0x156   : > { %vm1224_vm2 = vcmp.lt.s32.totalorder %v1223_v35, 5 }
 0x158   : > { %1186 = vmatpush1.bf16.msra.mxu0 %v4374_v37  ;;  %v4696_v37 = vmov -1e+09  }
 0x159   : > { %1187 = vmatprep.subr.bf16.mxu0 %v4379_v38  ;;  %v5151_v38 = vsel %vm1224_vm2, 0.0, %v4696_v37  ;;  %v4442_v37 = vld [vmem:[%s6153_s5 + $0x84] ss:$8 sps:$4 sm:$0xff]  }
 0x15c   : > { %1188 = vmatpush1.bf16.msra.mxu0 %v4377_v39 }
 0x15d   : > { %1189 = vmatprep.subr.bf16.mxu0 %v4382_v40 }
 0x160   : > { %1190 = vmatpush1.bf16.msra.mxu0 %v4380_v41 }
 0x161   : > { %1191 = vmatprep.subr.bf16.mxu0 %v4385_v42 }
 0x164   : > { %1192 = vmatpush1.bf16.msra.mxu0 %v4383_v43 }
 0x165   : > { %1193 = vmatprep.subr.bf16.mxu0 %v4388_v44 }
 0x168   : > { %1194 = vmatpush1.bf16.msra.mxu0 %v4386_v45 }
 0x169   : > { %1195 = vmatprep.subr.bf16.mxu0 %v4391_v46 }
 0x16c   : > { %1196 = vmatpush1.bf16.msra.mxu0 %v4389_v47 }
 0x16d   : > { %1197 = vmatprep.subr.bf16.mxu0 %v4394_v48 }
 0x170   : > { %1198 = vmatpush1.bf16.msra.mxu0 %v4392_v49  ;;  %v4416_v49 = vld [vmem:[%s6153_s5] ss:$8 sps:$4 sm:$0xff]  }
 0x171   : > { %1199 = vmatprep.subr.bf16.mxu0 %v4397_v50  ;;  %v4418_v50 = vld [vmem:[%s6153_s5 + $0x4] ss:$8 sps:$4 sm:$0xff]  }
 0x174   : > { %1200 = vmatpush1.bf16.msra.mxu0 %v4395_v51  ;;  %v4421_v51 = vld [vmem:[%s6153_s5 + $0x14] ss:$8 sps:$4 sm:$0xff]  }
 0x175   : > { %1201 = vmatprep.subr.bf16.mxu0 %v4400_v52  ;;  %v4419_v52 = vld [vmem:[%s6153_s5 + $0x10] ss:$8 sps:$4 sm:$0xff]  }
 0x178   : > { %1202 = vmatpush1.bf16.msra.mxu0 %v4398_v53  ;;  %v4424_v53 = vld [vmem:[%s6153_s5 + $0x24] ss:$8 sps:$4 sm:$0xff]  }
 0x179   : > { %1203 = vmatprep.subr.bf16.mxu0 %v4403_v54  ;;  %v4422_v54 = vld [vmem:[%s6153_s5 + $0x20] ss:$8 sps:$4 sm:$0xff]  }
 0x17c   : > { %1204 = vmatpush1.bf16.msra.mxu0 %v4401_v55  ;;  %v4427_v55 = vld [vmem:[%s6153_s5 + $0x34] ss:$8 sps:$4 sm:$0xff]  }
 0x17d   : > { %1205 = vmatprep.subr.bf16.mxu0 %v4406_v56  ;;  %v4425_v56 = vld [vmem:[%s6153_s5 + $0x30] ss:$8 sps:$4 sm:$0xff]  }
 0x180   : > { %1206 = vmatpush1.bf16.msra.mxu0 %v4404_v57  ;;  %v4430_v57 = vld [vmem:[%s6153_s5 + $0x44] ss:$8 sps:$4 sm:$0xff]  }
 0x181   : > { %1207 = vmatprep.subr.bf16.mxu0 %v4409_v58  ;;  %v4428_v58 = vld [vmem:[%s6153_s5 + $0x40] ss:$8 sps:$4 sm:$0xff]  }
 0x184   : > { %1208 = vmatpush1.bf16.msra.mxu0 %v4407_v59  ;;  %v4433_v59 = vld [vmem:[%s6153_s5 + $0x54] ss:$8 sps:$4 sm:$0xff]  }
 0x185   : > { %1209 = vmatprep.subr.bf16.mxu0 %v4412_v60  ;;  %v4431_v60 = vld [vmem:[%s6153_s5 + $0x50] ss:$8 sps:$4 sm:$0xff]  }
 0x188   : > { %1210 = vmatpush1.bf16.msra.mxu0 %v4410_v61  ;;  %v4436_v61 = vld [vmem:[%s6153_s5 + $0x64] ss:$8 sps:$4 sm:$0xff]  }
 0x189   : > { %1211 = vmatprep.subr.bf16.mxu0 %v4415_v62  ;;  %v4434_v62 = vld [vmem:[%s6153_s5 + $0x60] ss:$8 sps:$4 sm:$0xff]  }
 0x18c   : > { %1212 = vmatpush1.bf16.msra.mxu0 %v4413_v63  ;;  %v4439_v63 = vld [vmem:[%s6153_s5 + $0x74] ss:$8 sps:$4 sm:$0xff]  }
 0x18d   : > { %1669 = vmatprep.subr.bf16.mxu0 %v4418_v50  ;;  %v4451_v50 = vld [vmem:[%s6153_s5 + $0xb4] ss:$8 sps:$4 sm:$0xff]  }
 0x18f   : > { %1214 = vmatmul.mubr.bf16.vlgmr.msra.gmra.mrb[4].mxu0 %v5023_v33 }
 0x190   : > { %1670 = vmatpush1.bf16.msra.mxu0 %v4416_v49  ;;  %v4446_v49 = vld [vmem:[%s6153_s5 + $0xa0] ss:$8 sps:$4 sm:$0xff]  }
 0x191   : > { %1671 = vmatprep.subr.bf16.mxu0 %v4421_v51  ;;  %v4449_v51 = vld [vmem:[%s6153_s5 + $0xb0] ss:$8 sps:$4 sm:$0xff]  }
 0x194   : > { %1672 = vmatpush1.bf16.msra.mxu0 %v4419_v52  ;;  %v4454_v52 = vld [vmem:[%s6153_s5 + $0xc4] ss:$8 sps:$4 sm:$0xff]  }
 0x195   : > { %1673 = vmatprep.subr.bf16.mxu0 %v4424_v53  ;;  %v4452_v53 = vld [vmem:[%s6153_s5 + $0xc0] ss:$8 sps:$4 sm:$0xff]  }
 0x198   : > { %1674 = vmatpush1.bf16.msra.mxu0 %v4422_v54  ;;  %v4457_v54 = vld [vmem:[%s6153_s5 + $0xd4] ss:$8 sps:$4 sm:$0xff]  }
 0x199   : > { %1675 = vmatprep.subr.bf16.mxu0 %v4427_v55  ;;  %v4455_v55 = vld [vmem:[%s6153_s5 + $0xd0] ss:$8 sps:$4 sm:$0xff]  }
 0x19c   : > { %1676 = vmatpush1.bf16.msra.mxu0 %v4425_v56  ;;  %v4460_v56 = vld [vmem:[%s6153_s5 + $0xe4] ss:$8 sps:$4 sm:$0xff]  }
 0x19d   : > { %1677 = vmatprep.subr.bf16.mxu0 %v4430_v57  ;;  %v4458_v57 = vld [vmem:[%s6153_s5 + $0xe0] ss:$8 sps:$4 sm:$0xff]  }
 0x1a0   : > { %1678 = vmatpush1.bf16.msra.mxu0 %v4428_v58  ;;  %v4463_v58 = vld [vmem:[%s6153_s5 + $0xf4] ss:$8 sps:$4 sm:$0xff]  }
 0x1a1   : > { %1679 = vmatprep.subr.bf16.mxu0 %v4433_v59  ;;  %v4461_v59 = vld [vmem:[%s6153_s5 + $0xf0] ss:$8 sps:$4 sm:$0xff]  }
 0x1a4   : > { %1680 = vmatpush1.bf16.msra.mxu0 %v4431_v60 }
 0x1a5   : > { %1681 = vmatprep.subr.bf16.mxu0 %v4436_v61 }
 0x1a8   : > { %1682 = vmatpush1.bf16.msra.mxu0 %v4434_v62 }
 0x1a9   : > { %1683 = vmatprep.subr.bf16.mxu0 %v4439_v63 }
 0x222   : > { %v1133_v4 = vpop.f32.mrb[0].mxu0  ;;  %v1174_v5 = vpop.f32.mrb[0].mxu1 }
 0x223   : > { %v1175_v6 = vadd.f32 %v1174_v5, %v600_v3  ;;  %v5130_v7 = vpop.f32.mrb[1].mxu0  ;;  %v5132_v8 = vpop.f32.mrb[1].mxu1  ;;  %v1134_v19 = vadd.f32 %v1133_v4, %v592_v9  ;;  %v4437_v3 = vld [vmem:[%s6153_s5 + $0x70] ss:$8 sps:$4 sm:$0xff]   ;;  %v603_v5 = vsub.s32 3, %v5000_v15 }
 0x224   : > { %v1137_v10 = vpop.f32.mrb[2].mxu0  ;;  %v1178_v11 = vpop.f32.mrb[2].mxu1  ;;  %1684 = vmatpush1.bf16.msra.mxu0 %v4437_v3 }
 0x225   : > { %v1259_v12 = vpack.c.bf16 %v1175_v6, %v1175_v6  ;;  %v1138_v14 = vpop.f32.mrb[3].mxu0  ;;  %v1179_v18 = vpop.f32.mrb[3].mxu1  ;;  %v1258_v20 = vpack.c.bf16 %v1134_v19, %v1134_v19  ;;  %v604_v6 = vrot.slane %v5125_v2, %v603_v5 }
 0x227   : > { %4237 = vmatpush3.bf16.xpose.msra.mxu1 %v1259_v12  ;;  %v1177_v10 = vadd.f32 %v5132_v8, %v604_v6  ;;  %v596_v12 = vrot.slane %v5125_v2, %v5003_v16  ;;  %v4697_v2 = vmov 0  }
 0x228   : > { %4242 = vmatprep.subr.bf16.mxu1 %v4694_v0  ;;  %1701 = vmatprep.mubr.bf16.mxu0 %v4697_v2 }
 0x229   : > { %v1365_v18 = vpack.c.bf16 %v1177_v10, %v1177_v10  ;;  %v1136_v19 = vadd.f32 %v5130_v7, %v596_v12 }
 0x22e   : > { %4239 = vmatmul.mubr.bf16.vlgmr.msra.gmra.mrb[4].mxu1 %v1258_v20  ;;  %v1364_v20 = vpack.c.bf16 %v1136_v19, %v1136_v19  ;;  %v4684_v19 = vld [vmem:[%s4784_s30] sm:$0xff] }
 0x22f   : > { %4244 = vmatprep.mubr.msk.bf16.mxu1 %vm4695_vm0, %v4694_v0 }
 0x262   : > { %v1215_v25 = vpop.f32.mrb[4].mxu0 }
 0x263   : > { %v1216_v26 = vadd.f32 %v1215_v25, %v608_v23  ;;  %v1217_v27 = vpop.f32.mrb[5].mxu0 }
 0x264   : > { %v1218_v28 = vadd.f32 %v1217_v27, %v612_v24  ;;  %v1219_v29 = vpop.f32.mrb[6].mxu0 }
 0x265   : > { %v1315_v30 = vpack.c.bf16 %v1216_v26, %v1216_v26  ;;  %v1220_v31 = vpop.f32.mrb[7].mxu0 }
 0x266   : > { %v1420_v32 = vpack.c.bf16 %v1218_v28, %v1218_v28 }
 0x267   : > { %v1321_v33 = vsel %vm1319_vm1, %v1315_v30, 0 }
 0x268   : > { %v5147_v34 = vsel %vm1319_vm1, %v1420_v32, 0  ;;  %4243 = vmatpush3.bf16.msra.mxu1 %v1321_v33 }
 0x269   : > { %4248 = vmatprep.subr.bf16.mxu1 %v4694_v0 }
 0x301   : > { %v1294_v36 = vpop.f32.mrb[4].mxu1 }
 0x302   : > { %v1300_v39 = vmul.f32 0.088388346, %v1294_v36  ;;  %v4240_v40 = vpop.f32.mrb[5].mxu1 }
 0x303   : > { %v1297_v41 = vpop.f32.mrb[6].mxu1 }
 0x304   : > { %v4241_v42 = vpop.f32.mrb[7].mxu1  ;;  %v1301_v43 = vadd.f32 %v1300_v39, %v5151_v38 }
 0x306   : > { %v1303_v44 = vsel %vm1302_vm3, %v1301_v43, -inf }
 0x307   : > { %1304 = vmax.xlane.f32.xlu1 %v1303_v44 }
 0x394   : > { %v1305_v45 = vpop.xlane.xlu1 %1304 }
 0x395   : > { %v1306_v46 = vsub.f32 %v1301_v43, %v1305_v45  ;;  %v4440_v45 = vld [vmem:[%s6153_s5 + $0x80] ss:$8 sps:$4 sm:$0xff]  }
 0x397   : > { %v1307_v47 = vmul.f32 1.442695, %v1306_v46 }
 0x399   : > { %4658 = vpow2.f32 %v1307_v47  ;;  %v4445_v47 = vld [vmem:[%s6153_s5 + $0x94] ss:$8 sps:$4 sm:$0xff]  }
 0x3a3   : > { %v4659_v13 = vpop.eup %4658 }
 0x3a4   : > { %v1309_v48 = vsel %vm1302_vm3, %v4659_v13, 0.0 }
 0x3a5   : > { %1310 = vadd.xlane.f32.xlu1 %v1309_v48  ;;  %v4448_v48 = vld [vmem:[%s6153_s5 + $0xa4] ss:$8 sps:$4 sm:$0xff]  }
 0x432   : > { %v1311_v4 = vpop.xlane.xlu1 %1310 }
 0x433   : > { %4660 = vrcp.f32 %v1311_v4  ;;  %v1712_v4 = vld [vmem:[%s6154_s6] sm:$0x3] }
 0x434   : > { %v1717_v10 = vrot.slane %v1712_v4, %v5006_v17 }
 0x43d   : > { %v4661_v9 = vpop.eup %4660 }
 0x43e   : > { %v1313_v11 = vmul.f32 %v4661_v9, %v4659_v13  ;;  %v4443_v13 = vld [vmem:[%s6153_s5 + $0x90] ss:$8 sps:$4 sm:$0xff]  }
 0x440   : > { %v1314_v14 = vpack.c.bf16 %v1313_v11, %v1313_v11 }
 0x442   : > { %4245 = vmatmul.mubr.msk.bf16.vlgmr.msra.gmra.mrb[8].mxu1 %vm1302_vm3, %v1314_v14  ;;  %v1721_v14 = vrot.slane %v1712_v4, %v5003_v16  ;;  %v1815_v4 = vld [vmem:[%s6157_s9 + $0x168] sm:$0xff] }
 0x443   : > { %4249 = vmatpush3.bf16.xpose.msra.mxu1 %v1365_v18  ;;  %4250 = vmatprep.mubr.msk.bf16.mxu1 %vm4695_vm0, %v4694_v0 }
 0x444   : > { %4254 = vmatprep.subr.bf16.mxu1 %v4694_v0 }
 0x44a   : > { %4251 = vmatmul.mubr.bf16.vlgmr.msra.gmra.mrb[12].mxu1 %v1364_v20 }
 0x44b   : > { %4255 = vmatpush3.bf16.msra.mxu1 %v5147_v34  ;;  %4256 = vmatprep.mubr.msk.bf16.mxu1 %vm4695_vm0, %v4694_v0 }
 0x44c   : > { %1548 = vmatprep.subr.bf16.mxu1 %v4442_v37  ;;  %v1783_v37 = vld [vmem:[%s6157_s9 + $0x68] sm:$0xff] }
 0x515   : > { %v1357_v8 = vpop.f32.mrb[8].mxu1 }
 0x516   : > { %v1363_v23 = vpack.c.bf16 %v1357_v8, %v1357_v8  ;;  %v4246_v24 = vpop.f32.mrb[9].mxu1  ;;  %v4685_v8 = vld [vmem:[%s4784_s30 + $0x8] sm:$0xff] }
 0x517   : > { %v1360_v25 = vpop.f32.mrb[10].mxu1 }
 0x518   : > { %v4247_v26 = vpop.f32.mrb[11].mxu1  ;;  %1702 = vmatmul.mubr.bf16.vlgmr.msra.gmra.mrb[8].mxu0 %v1363_v23 }
 0x51d   : > { %v1400_v27 = vpop.f32.mrb[12].mxu1 }
 0x51e   : > { %v1406_v28 = vmul.f32 0.088388346, %v1400_v27  ;;  %v4252_v7 = vpop.f32.mrb[13].mxu1  ;;  %v1770_v27 = vld [vmem:[%s6157_s9] sm:$0xff] }
 0x51f   : > { %v1403_v29 = vpop.f32.mrb[14].mxu1  ;;  %v1771_v7 = vld [vmem:[%s6157_s9 + $0x8] sm:$0xff] }
 0x520   : > { %v4253_v30 = vpop.f32.mrb[15].mxu1  ;;  %v1407_v31 = vadd.f32 %v1406_v28, %v5151_v38  ;;  %v1774_v28 = vld [vmem:[%s6157_s9 + $0x20] sm:$0xff] }
 0x521   : > { %v3968_v29 = vcombine.low %v1770_v27, %v1774_v28  ;;  %v3969_v30 = vcombine.high %v1770_v27, %v1774_v28  ;;  %v1830_v27 = vld [vmem:[%s6157_s9 + $0x1e0] sm:$0xff]  ;;  %v1827_v28 = vld [vmem:[%s6157_s9 + $0x1c8] sm:$0xff] }
 0x522   : > { %v1408_v32 = vsel %vm1302_vm3, %v1407_v31, -inf }
 0x523   : > { %1409 = vmax.xlane.f32.xlu0 %v1408_v32  ;;  %v1778_v32 = vld [vmem:[%s6157_s9 + $0x40] sm:$0xff] }
 0x5b0   : > { %v1410_v33 = vpop.xlane.xlu0 %1409 }
 0x5b1   : > { %v1411_v0 = vsub.f32 %v1407_v31, %v1410_v33  ;;  %v1775_v31 = vld [vmem:[%s6157_s9 + $0x28] sm:$0xff]  ;;  %v1782_v33 = vld [vmem:[%s6157_s9 + $0x60] sm:$0xff] }
 0x5b3   : > { %v1412_v34 = vmul.f32 1.442695, %v1411_v0  ;;  %v3970_v0 = vcombine.low %v1771_v7, %v1775_v31 }
 0x5b5   : > { %4662 = vpow2.f32 %v1412_v34  ;;  %v3971_v34 = vcombine.high %v1771_v7, %v1775_v31  ;;  %v1831_v7 = vld [vmem:[%s6157_s9 + $0x1e8] sm:$0xff] }
 0x5b7   : > { %2623 = vmatprep.subr.bf16.mxu0 %v3971_v34  ;;  %v1835_v34 = vld [vmem:[%s6157_s9 + $0x208] sm:$0xff] }
 0x5b8   : > { %2624 = vmatpush1.bf16.msra.mxu0 %v3970_v0  ;;  %v1838_v0 = vld [vmem:[%s6157_s9 + $0x220] sm:$0xff] }
 0x5bf   : > { %v4663_v35 = vpop.eup %4662 }
 0x5c0   : > { %v1414_v36 = vsel %vm1302_vm3, %v4663_v35, 0.0 }
 0x5c1   : > { %1415 = vadd.xlane.f32.xlu1 %v1414_v36  ;;  %v1779_v36 = vld [vmem:[%s6157_s9 + $0x48] sm:$0xff] }
 0x5eb   : > { %v1703_v39 = vpop.f32.mrb[8].mxu0 }
 0x5ec   : > { %v1705_v40 = vpop.f32.mrb[9].mxu0 }
 0x5ed   : > { %v1707_v41 = vpop.f32.mrb[10].mxu0 }
 0x5ee   : > { %v1708_v38 = vpop.f32.mrb[11].mxu0  ;;  %v1790_v41 = vld [vmem:[%s6157_s9 + $0xa0] sm:$0xff] }
 0x5ef   : > { %v1787_v38 = vld [vmem:[%s6157_s9 + $0x88] sm:$0xff] }
 0x64e   : > { %v1416_v42 = vpop.xlane.xlu1 %1415 }
 0x64f   : > { %4664 = vrcp.f32 %v1416_v42  ;;  %v1791_v42 = vld [vmem:[%s6157_s9 + $0xa8] sm:$0xff] }
 0x659   : > { %v4665_v43 = vpop.eup %4664 }
 0x65a   : > { %v1418_v44 = vmul.f32 %v4665_v43, %v4663_v35  ;;  %v3977_v35 = vcombine.high %v1778_v32, %v1782_v33  ;;  %v3976_v43 = vcombine.low %v1778_v32, %v1782_v33  ;;  %v4027_v32 = vcombine.high %v1827_v28, %v1831_v7  ;;  %v1834_v33 = vld [vmem:[%s6157_s9 + $0x200] sm:$0xff] }
 0x65c   : > { %v1419_v46 = vpack.c.bf16 %v1418_v44, %v1418_v44  ;;  %v3978_v44 = vcombine.low %v1779_v36, %v1783_v37 }
 0x65e   : > { %4257 = vmatmul.mubr.msk.bf16.vlgmr.msra.gmra.mrb[16].mxu1 %vm1302_vm3, %v1419_v46  ;;  %v3987_v46 = vcombine.high %v1787_v38, %v1791_v42 }
 0x65f   : > { %1549 = vmatpush1.bf16.msra.mxu1 %v4440_v45  ;;  %1580 = vmatprep.mubr.bf16.mxu1 %v4697_v2 }
 0x660   : > { %1550 = vmatprep.subr.bf16.mxu1 %v4445_v47  ;;  %v1794_v47 = vld [vmem:[%s6157_s9 + $0xc0] sm:$0xff] }
 0x663   : > { %1551 = vmatpush1.bf16.msra.mxu1 %v4443_v13  ;;  %v1798_v13 = vld [vmem:[%s6157_s9 + $0xe0] sm:$0xff] }
 0x664   : > { %1552 = vmatprep.subr.bf16.mxu1 %v4448_v48  ;;  %v1795_v48 = vld [vmem:[%s6157_s9 + $0xc8] sm:$0xff] }
 0x667   : > { %1553 = vmatpush1.bf16.msra.mxu1 %v4446_v49  ;;  %v1799_v49 = vld [vmem:[%s6157_s9 + $0xe8] sm:$0xff] }
 0x668   : > { %1554 = vmatprep.subr.bf16.mxu1 %v4451_v50 }
 0x66b   : > { %1555 = vmatpush1.bf16.msra.mxu1 %v4449_v51  ;;  %v3986_v51 = vcombine.low %v1787_v38, %v1791_v42  ;;  %v1846_v38 = vld [vmem:[%s6157_s9 + $0x260] sm:$0xff]  ;;  %v1843_v42 = vld [vmem:[%s6157_s9 + $0x248] sm:$0xff] }
 0x66c   : > { %1556 = vmatprep.subr.bf16.mxu1 %v4454_v52  ;;  %v3993_v52 = vcombine.high %v1794_v47, %v1798_v13 }
 0x66f   : > { %1557 = vmatpush1.bf16.msra.mxu1 %v4452_v53  ;;  %v3995_v53 = vcombine.high %v1795_v48, %v1799_v49 }
 0x670   : > { %1558 = vmatprep.subr.bf16.mxu1 %v4457_v54  ;;  %v1802_v54 = vld [vmem:[%s6157_s9 + $0x100] sm:$0xff] }
 0x673   : > { %1559 = vmatpush1.bf16.msra.mxu1 %v4455_v55  ;;  %v1806_v55 = vld [vmem:[%s6157_s9 + $0x120] sm:$0xff] }
 0x674   : > { %1560 = vmatprep.subr.bf16.mxu1 %v4460_v56  ;;  %v1803_v56 = vld [vmem:[%s6157_s9 + $0x108] sm:$0xff] }
 0x677   : > { %1561 = vmatpush1.bf16.msra.mxu1 %v4458_v57  ;;  %v1807_v57 = vld [vmem:[%s6157_s9 + $0x128] sm:$0xff] }
 0x678   : > { %1562 = vmatprep.subr.bf16.mxu1 %v4463_v58  ;;  %v3992_v58 = vcombine.low %v1794_v47, %v1798_v13  ;;  %v1850_v13 = vld [vmem:[%s6157_s9 + $0x280] sm:$0xff] }
 0x67b   : > { %1563 = vmatpush1.bf16.msra.mxu1 %v4461_v59  ;;  %v3994_v59 = vcombine.low %v1795_v48, %v1799_v49  ;;  %v1854_v48 = vld [vmem:[%s6157_s9 + $0x2a0] sm:$0xff]  ;;  %v1851_v49 = vld [vmem:[%s6157_s9 + $0x288] sm:$0xff] }
 0x67c   : > { %2582 = vmatprep.subr.bf16.mxu1 %v3969_v30 }
 0x731   : > { %v1461_v60 = vpop.f32.mrb[16].mxu1 }
 0x732   : > { %v1467_v61 = vpack.c.bf16 %v1461_v60, %v1461_v60  ;;  %v4258_v62 = vpop.f32.mrb[17].mxu1  ;;  %v4001_v60 = vcombine.high %v1802_v54, %v1806_v55 }
 0x733   : > { %v1464_v63 = vpop.f32.mrb[18].mxu1  ;;  %v1810_v62 = vld [vmem:[%s6157_s9 + $0x140] sm:$0xff] }
 0x734   : > { %v4259_v3 = vpop.f32.mrb[19].mxu1  ;;  %1581 = vmatmul.mubr.bf16.vlgmr.msra.gmra.mrb[20].mxu1 %v1467_v61  ;;  %v4003_v61 = vcombine.high %v1803_v56, %v1807_v57  ;;  %v1814_v63 = vld [vmem:[%s6157_s9 + $0x160] sm:$0xff] }
 0x735   : > { %2583 = vmatpush1.bf16.msra.mxu1 %v3968_v29  ;;  %v1811_v3 = vld [vmem:[%s6157_s9 + $0x148] sm:$0xff] }
 0x736   : > { %2584 = vmatprep.subr.bf16.mxu1 %v3977_v35  ;;  %v1839_v35 = vld [vmem:[%s6157_s9 + $0x228] sm:$0xff] }
 0x739   : > { %2585 = vmatpush1.bf16.msra.mxu1 %v3976_v43  ;;  %v1847_v43 = vld [vmem:[%s6157_s9 + $0x268] sm:$0xff] }
 0x73a   : > { %v4043_v47 = vcombine.high %v1843_v42, %v1847_v43 }
 0x807   : > { %v1582_v6 = vpop.f32.mrb[20].mxu1 }
 0x808   : > { %v1704_v9 = vadd.f32 %v1703_v39, %v1582_v6  ;;  %v1584_v11 = vpop.f32.mrb[21].mxu1  ;;  %v1786_v39 = vld [vmem:[%s6157_s9 + $0x80] sm:$0xff]  ;;  %v4000_v6 = vcombine.low %v1802_v54, %v1806_v55  ;;  %v4048_v55 = vcombine.low %v1850_v13, %v1854_v48 }
 0x809   : > { %v1706_v12 = vadd.f32 %v1705_v40, %v1584_v11  ;;  %v1586_v18 = vpop.f32.mrb[22].mxu1  ;;  %v3979_v40 = vcombine.high %v1779_v36, %v1783_v37  ;;  %v3985_v45 = vcombine.high %v1786_v39, %v1790_v41  ;;  %v3984_v50 = vcombine.low %v1786_v39, %v1790_v41  ;;  %v1842_v41 = vld [vmem:[%s6157_s9 + $0x240] sm:$0xff] }
 0x80a   : > { %v1710_v20 = vadd.f32 %v4684_v19, %v1704_v9  ;;  %v1587_v2 = vpop.f32.mrb[23].mxu1  ;;  %v4002_v9 = vcombine.low %v1803_v56, %v1807_v57  ;;  %v4011_v11 = vcombine.high %v1811_v3, %v1815_v4  ;;  %v1819_v18 = vld [vmem:[%s6157_s9 + $0x188] sm:$0xff]  ;;  %v4026_v37 = vcombine.low %v1827_v28, %v1831_v7  ;;  %v1874_v28 = vld [vmem:[%s6157_s9 + $0x340] sm:$0xff] }
 0x80b   : > { %v1711_v23 = vadd.f32 %v4685_v8, %v1706_v12  ;;  %2625 = vmatprep.subr.bf16.mxu0 %v3979_v40  ;;  %2586 = vmatprep.subr.bf16.mxu1 %v3985_v45  ;;  %v1818_v12 = vld [vmem:[%s6157_s9 + $0x180] sm:$0xff]  ;;  %v1823_v19 = vld [vmem:[%s6157_s9 + $0x1a8] sm:$0xff]  ;;  %v4010_v2 = vcombine.low %v1811_v3, %v1815_v4  ;;  %v4033_v39 = vcombine.high %v1834_v33, %v1838_v0 }
 0x80c   : > { %v5278_v24 = vadd.f32 %v1717_v10, %v1710_v20  ;;  %2626 = vmatpush1.bf16.msra.mxu0 %v3978_v44  ;;  %2587 = vmatpush1.bf16.msra.mxu1 %v3984_v50  ;;  %v4009_v10 = vcombine.high %v1810_v62, %v1814_v63  ;;  %v4008_v20 = vcombine.low %v1810_v62, %v1814_v63  ;;  %v1855_v50 = vld [vmem:[%s6157_s9 + $0x2a8] sm:$0xff]  ;;  %v1858_v3 = vld [vmem:[%s6157_s9 + $0x2c0] sm:$0xff] }
 0x80d   : > { %v5280_v25 = vadd.f32 %v1721_v14, %v1711_v23  ;;  %2627 = vmatprep.subr.bf16.mxu0 %v3987_v46  ;;  %2588 = vmatprep.subr.bf16.mxu1 %v3993_v52  ;;  %v1822_v14 = vld [vmem:[%s6157_s9 + $0x1a0] sm:$0xff]  ;;  %v4019_v23 = vcombine.high %v1819_v18, %v1823_v19  ;;  %v4018_v30 = vcombine.low %v1819_v18, %v1823_v19 }
 0x80e   : > { %v4017_v8 = vcombine.high %v1818_v12, %v1822_v14  ;;  %v4016_v29 = vcombine.low %v1818_v12, %v1822_v14  ;;  %v4035_v40 = vcombine.high %v1835_v34, %v1839_v35  ;;  %v4032_v44 = vcombine.low %v1834_v33, %v1838_v0  ;;  %v1862_v4 = vld [vmem:[%s6157_s9 + $0x2e0] sm:$0xff] }
 0x80f   : > { %v1728_v26 = vadd.f32 %v5280_v25, %v5278_v24  ;;  %v4034_v45 = vcombine.low %v1835_v34, %v1839_v35  ;;  %v4041_v46 = vcombine.high %v1842_v41, %v1846_v38  ;;  %v4042_v52 = vcombine.low %v1843_v42, %v1847_v43  ;;  %v1866_v18 = vld [vmem:[%s6157_s9 + $0x300] sm:$0xff] }
 0x810   : > { %2628 = vmatpush1.bf16.msra.mxu0 %v3986_v51  ;;  %2589 = vmatpush1.bf16.msra.mxu1 %v3992_v58  ;;  %v4040_v51 = vcombine.low %v1842_v41, %v1846_v38  ;;  %v4051_v54 = vcombine.high %v1851_v49, %v1855_v50  ;;  %v4050_v56 = vcombine.low %v1851_v49, %v1855_v50  ;;  %v1870_v19 = vld [vmem:[%s6157_s9 + $0x320] sm:$0xff]  ;;  %v1772_v49 = vld [vmem:[%s6157_s9 + $0x10] sm:$0xff] }
 0x811   : > { %1729 = vadd.xlane.f32.xlu0 %v1728_v26  ;;  %2629 = vmatprep.subr.bf16.mxu0 %v3995_v53  ;;  %v1826_v26 = vld [vmem:[%s6157_s9 + $0x1c0] sm:$0xff]  ;;  %v4049_v53 = vcombine.high %v1850_v13, %v1854_v48  ;;  %v1776_v50 = vld [vmem:[%s6157_s9 + $0x30] sm:$0xff] }
 0x812   : > { %2590 = vmatprep.subr.bf16.mxu1 %v4001_v60  ;;  %v4025_v31 = vcombine.high %v1826_v26, %v1830_v27  ;;  %v4024_v36 = vcombine.low %v1826_v26, %v1830_v27  ;;  %v1878_v7 = vld [vmem:[%s6157_s9 + $0x360] sm:$0xff] }
 0x813   : > { %v1882_v34 = vld [vmem:[%s6157_s9 + $0x380] sm:$0xff] }
 0x814   : > { %2630 = vmatpush1.bf16.msra.mxu0 %v3994_v59  ;;  %2591 = vmatpush1.bf16.msra.mxu1 %v4000_v6  ;;  %v1859_v6 = vld [vmem:[%s6157_s9 + $0x2c8] sm:$0xff]  ;;  %v1886_v35 = vld [vmem:[%s6157_s9 + $0x3a0] sm:$0xff] }
 0x815   : > { %2631 = vmatprep.subr.bf16.mxu0 %v4003_v61  ;;  %2592 = vmatprep.subr.bf16.mxu1 %v4009_v10  ;;  %v1863_v10 = vld [vmem:[%s6157_s9 + $0x2e8] sm:$0xff]  ;;  %v1890_v42 = vld [vmem:[%s6157_s9 + $0x3c0] sm:$0xff] }
 0x816   : > { %v4058_v12 = vcombine.low %v1859_v6, %v1863_v10  ;;  %v4059_v14 = vcombine.high %v1859_v6, %v1863_v10  ;;  %v1894_v43 = vld [vmem:[%s6157_s9 + $0x3e0] sm:$0xff] }
 0x818   : > { %2632 = vmatpush1.bf16.msra.mxu0 %v4002_v9  ;;  %2593 = vmatpush1.bf16.msra.mxu1 %v4008_v20  ;;  %v4057_v9 = vcombine.high %v1858_v3, %v1862_v4  ;;  %v1867_v20 = vld [vmem:[%s6157_s9 + $0x308] sm:$0xff] }
 0x819   : > { %2633 = vmatprep.subr.bf16.mxu0 %v4011_v11  ;;  %2594 = vmatprep.subr.bf16.mxu1 %v4017_v8  ;;  %v4056_v11 = vcombine.low %v1858_v3, %v1862_v4  ;;  %v1871_v8 = vld [vmem:[%s6157_s9 + $0x328] sm:$0xff] }
 0x81a   : > { %v4066_v26 = vcombine.low %v1867_v20, %v1871_v8  ;;  %v4067_v27 = vcombine.high %v1867_v20, %v1871_v8  ;;  %v1784_v8 = vld [vmem:[%s6157_s9 + $0x70] sm:$0xff] }
 0x81c   : > { %2634 = vmatpush1.bf16.msra.mxu0 %v4010_v2  ;;  %2595 = vmatpush1.bf16.msra.mxu1 %v4016_v29  ;;  %v4065_v2 = vcombine.high %v1866_v18, %v1870_v19  ;;  %v1875_v29 = vld [vmem:[%s6157_s9 + $0x348] sm:$0xff] }
 0x81d   : > { %2635 = vmatprep.subr.bf16.mxu0 %v4019_v23  ;;  %2596 = vmatprep.subr.bf16.mxu1 %v4025_v31  ;;  %v4064_v23 = vcombine.low %v1866_v18, %v1870_v19  ;;  %v1879_v31 = vld [vmem:[%s6157_s9 + $0x368] sm:$0xff] }
 0x81e   : > { %v4074_v33 = vcombine.low %v1875_v29, %v1879_v31  ;;  %v4075_v0 = vcombine.high %v1875_v29, %v1879_v31  ;;  %v1792_v29 = vld [vmem:[%s6157_s9 + $0xb0] sm:$0xff]  ;;  %v1793_v31 = vld [vmem:[%s6157_s9 + $0xb8] sm:$0xff] }
 0x820   : > { %2636 = vmatpush1.bf16.msra.mxu0 %v4018_v30  ;;  %2597 = vmatpush1.bf16.msra.mxu1 %v4024_v36  ;;  %v4073_v30 = vcombine.high %v1874_v28, %v1878_v7  ;;  %v1883_v36 = vld [vmem:[%s6157_s9 + $0x388] sm:$0xff] }
 0x821   : > { %2637 = vmatprep.subr.bf16.mxu0 %v4027_v32  ;;  %2598 = vmatprep.subr.bf16.mxu1 %v4033_v39  ;;  %v4072_v32 = vcombine.low %v1874_v28, %v1878_v7  ;;  %v1887_v39 = vld [vmem:[%s6157_s9 + $0x3a8] sm:$0xff] }
 0x822   : > { %v4082_v41 = vcombine.low %v1883_v36, %v1887_v39  ;;  %v4083_v38 = vcombine.high %v1883_v36, %v1887_v39  ;;  %v1800_v36 = vld [vmem:[%s6157_s9 + $0xf0] sm:$0xff]  ;;  %v1801_v39 = vld [vmem:[%s6157_s9 + $0xf8] sm:$0xff] }
 0x824   : > { %2638 = vmatpush1.bf16.msra.mxu0 %v4026_v37  ;;  %2599 = vmatpush1.bf16.msra.mxu1 %v4032_v44  ;;  %v4081_v37 = vcombine.high %v1882_v34, %v1886_v35  ;;  %v1891_v44 = vld [vmem:[%s6157_s9 + $0x3c8] sm:$0xff] }
 0x825   : > { %2639 = vmatprep.subr.bf16.mxu0 %v4035_v40  ;;  %2600 = vmatprep.subr.bf16.mxu1 %v4041_v46  ;;  %v4080_v40 = vcombine.low %v1882_v34, %v1886_v35  ;;  %v1895_v46 = vld [vmem:[%s6157_s9 + $0x3e8] sm:$0xff]  ;;  %v1796_v35 = vld [vmem:[%s6157_s9 + $0xd0] sm:$0xff] }
 0x826   : > { %v4091_v13 = vcombine.high %v1891_v44, %v1895_v46  ;;  %v4090_v48 = vcombine.low %v1891_v44, %v1895_v46  ;;  %v1808_v44 = vld [vmem:[%s6157_s9 + $0x130] sm:$0xff]  ;;  %v1809_v46 = vld [vmem:[%s6157_s9 + $0x138] sm:$0xff] }
 0x828   : > { %2640 = vmatpush1.bf16.msra.mxu0 %v4034_v45  ;;  %2601 = vmatpush1.bf16.msra.mxu1 %v4040_v51  ;;  %v4089_v45 = vcombine.high %v1890_v42, %v1894_v43  ;;  %v1773_v51 = vld [vmem:[%s6157_s9 + $0x18] sm:$0xff] }
 0x829   : > { %2641 = vmatprep.subr.bf16.mxu0 %v4043_v47  ;;  %2602 = vmatprep.subr.bf16.mxu1 %v4049_v53  ;;  %v4088_v47 = vcombine.low %v1890_v42, %v1894_v43  ;;  %v1777_v53 = vld [vmem:[%s6157_s9 + $0x38] sm:$0xff]  ;;  %v1804_v43 = vld [vmem:[%s6157_s9 + $0x110] sm:$0xff] }
 0x82c   : > { %2642 = vmatpush1.bf16.msra.mxu0 %v4042_v52  ;;  %2603 = vmatpush1.bf16.msra.mxu1 %v4048_v55  ;;  %v3973_v52 = vcombine.high %v1772_v49, %v1776_v50  ;;  %v3974_v55 = vcombine.low %v1773_v51, %v1777_v53 }
 0x82d   : > { %2643 = vmatprep.subr.bf16.mxu0 %v4051_v54  ;;  %2604 = vmatprep.subr.bf16.mxu1 %v4057_v9  ;;  %v3972_v54 = vcombine.low %v1772_v49, %v1776_v50  ;;  %v1812_v50 = vld [vmem:[%s6157_s9 + $0x150] sm:$0xff] }
 0x830   : > { %2644 = vmatpush1.bf16.msra.mxu0 %v4050_v56  ;;  %2605 = vmatpush1.bf16.msra.mxu1 %v4056_v11  ;;  %v3975_v56 = vcombine.high %v1773_v51, %v1777_v53  ;;  %v1816_v51 = vld [vmem:[%s6157_s9 + $0x170] sm:$0xff]  ;;  %v1817_v53 = vld [vmem:[%s6157_s9 + $0x178] sm:$0xff] }
 0x831   : > { %2645 = vmatprep.subr.bf16.mxu0 %v4059_v14  ;;  %2606 = vmatprep.subr.bf16.mxu1 %v4065_v2  ;;  %v1780_v2 = vld [vmem:[%s6157_s9 + $0x50] sm:$0xff] }
 0x832   : > { %v3981_v28 = vcombine.high %v1780_v2, %v1784_v8 }
 0x834   : > { %2646 = vmatpush1.bf16.msra.mxu0 %v4058_v12  ;;  %2607 = vmatpush1.bf16.msra.mxu1 %v4064_v23 }
 0x835   : > { %2647 = vmatprep.subr.bf16.mxu0 %v4067_v27  ;;  %2608 = vmatprep.subr.bf16.mxu1 %v4073_v30  ;;  %v1788_v27 = vld [vmem:[%s6157_s9 + $0x90] sm:$0xff]  ;;  %v1789_v30 = vld [vmem:[%s6157_s9 + $0x98] sm:$0xff] }
 0x836   : > { %v3991_v34 = vcombine.high %v1789_v30, %v1793_v31 }
 0x838   : > { %2648 = vmatpush1.bf16.msra.mxu0 %v4066_v26  ;;  %2609 = vmatpush1.bf16.msra.mxu1 %v4072_v32  ;;  %v3980_v32 = vcombine.low %v1780_v2, %v1784_v8  ;;  %v1836_v8 = vld [vmem:[%s6157_s9 + $0x210] sm:$0xff] }
 0x839   : > { %2649 = vmatprep.subr.bf16.mxu0 %v4075_v0  ;;  %2610 = vmatprep.subr.bf16.mxu1 %v4081_v37  ;;  %v3989_v0 = vcombine.high %v1788_v27, %v1792_v29  ;;  %v1797_v37 = vld [vmem:[%s6157_s9 + $0xd8] sm:$0xff] }
 0x83a   : > { %v3999_v42 = vcombine.high %v1797_v37, %v1801_v39 }
 0x83c   : > { %2650 = vmatpush1.bf16.msra.mxu0 %v4074_v33  ;;  %2611 = vmatpush1.bf16.msra.mxu1 %v4080_v40  ;;  %v3988_v40 = vcombine.low %v1788_v27, %v1792_v29 }
 0x83d   : > { %2651 = vmatprep.subr.bf16.mxu0 %v4083_v38  ;;  %2612 = vmatprep.subr.bf16.mxu1 %v4089_v45  ;;  %v3997_v38 = vcombine.high %v1796_v35, %v1800_v36  ;;  %v1805_v45 = vld [vmem:[%s6157_s9 + $0x118] sm:$0xff] }
 0x83e   : > { %v4007_v49 = vcombine.high %v1805_v45, %v1809_v46 }
 0x840   : > { %2652 = vmatpush1.bf16.msra.mxu0 %v4082_v41  ;;  %2613 = vmatpush1.bf16.msra.mxu1 %v4088_v47  ;;  %v3990_v41 = vcombine.low %v1789_v30, %v1793_v31  ;;  %v3996_v47 = vcombine.low %v1796_v35, %v1800_v36  ;;  %v1844_v30 = vld [vmem:[%s6157_s9 + $0x250] sm:$0xff] }
 0x841   : > { %2653 = vmatprep.subr.bf16.mxu0 %v4091_v13  ;;  %2664 = vmatprep.subr.bf16.mxu1 %v3973_v52  ;;  %v3998_v13 = vcombine.low %v1797_v37, %v1801_v39  ;;  %v1813_v52 = vld [vmem:[%s6157_s9 + $0x158] sm:$0xff]  ;;  %v1848_v31 = vld [vmem:[%s6157_s9 + $0x270] sm:$0xff] }
 0x842   : > { %v4045_v35 = vcombine.high %v1844_v30, %v1848_v31  ;;  %v1852_v37 = vld [vmem:[%s6157_s9 + $0x290] sm:$0xff] }
 0x843   : > { %v1856_v39 = vld [vmem:[%s6157_s9 + $0x2b0] sm:$0xff] }
 0x844   : > { %2654 = vmatpush1.bf16.msra.mxu0 %v4090_v48  ;;  %v4005_v48 = vcombine.high %v1804_v43, %v1808_v44 }
 0x845   : > { %2705 = vmatprep.subr.bf16.mxu0 %v3975_v56  ;;  %v4013_v56 = vcombine.high %v1812_v50, %v1816_v51 }
 0x89e   : > { %v1730_v57 = vpop.xlane.xlu0 %1729 }
 0x89f   : > { %v1731_v58 = vmul.f32 0.00390625, %v1730_v57 }
 0x8a1   : > { %v5417_v59 = vsub.f32 %v5278_v24, %v1731_v58  ;;  %v5420_v60 = vsub.f32 %v5280_v25, %v1731_v58 }
 0x8a3   : > { %v1734_v61 = vmul.f32 %v5417_v59, %v5417_v59  ;;  %v1735_v62 = vmul.f32 %v5420_v60, %v5420_v60 }
 0x8a5   : > { %v1736_v63 = vadd.f32 %v1735_v62, %v1734_v61  ;;  %v1726_v62 = vld [vmem:[%s6155_s7] sm:$0x3] }
 0x8a6   : > { %v1752_v3 = vrot.slane %v1726_v62, %v5003_v16  ;;  %v1748_v4 = vrot.slane %v1726_v62, %v5006_v17  ;;  %v1821_v62 = vld [vmem:[%s6157_s9 + $0x198] sm:$0xff] }
 0x8a7   : > { %1737 = vadd.xlane.f32.xlu1 %v1736_v63  ;;  %v1727_v63 = vld [vmem:[%s6156_s8] sm:$0x3] }
 0x8a8   : > { %v1765_v11 = vrot.slane %v1727_v63, %v5003_v16  ;;  %v1761_v12 = vrot.slane %v1727_v63, %v5006_v17  ;;  %v1825_v63 = vld [vmem:[%s6157_s9 + $0x1b8] sm:$0xff] }
 0x934   : > { %v1738_v57 = vpop.xlane.xlu1 %1737 }
 0x935   : > { %v1739_v58 = vmul.f32 0.00390625, %v1738_v57  ;;  %v4015_v57 = vcombine.high %v1813_v52, %v1817_v53 }
 0x937   : > { %v1740_v61 = vadd.f32 1e-12, %v1739_v58  ;;  %v1820_v58 = vld [vmem:[%s6157_s9 + $0x190] sm:$0xff] }
 0x939   : > { %4666 = vrsqrt.f32 %v1740_v61  ;;  %v1824_v61 = vld [vmem:[%s6157_s9 + $0x1b0] sm:$0xff] }
 0x943   : > { %v4667_v6 = vpop.eup %4666 }
 0x944   : > { %v1742_v9 = vmul.f32 %v4667_v6, %v5417_v59  ;;  %v1743_v10 = vmul.f32 %v4667_v6, %v5420_v60  ;;  %v1781_v59 = vld [vmem:[%s6157_s9 + $0x58] sm:$0xff]  ;;  %v4021_v6 = vcombine.high %v1820_v58, %v1824_v61 }
 0x945   : > { %v1785_v60 = vld [vmem:[%s6157_s9 + $0x78] sm:$0xff] }
 0x946   : > { %v1756_v14 = vmul.f32 %v1752_v3, %v1743_v10  ;;  %v1755_v18 = vmul.f32 %v1748_v4, %v1742_v9  ;;  %v3983_v7 = vcombine.high %v1781_v59, %v1785_v60  ;;  %v3982_v33 = vcombine.low %v1781_v59, %v1785_v60  ;;  %v1828_v10 = vld [vmem:[%s6157_s9 + $0x1d0] sm:$0xff]  ;;  %v1837_v60 = vld [vmem:[%s6157_s9 + $0x218] sm:$0xff] }
 0x947   : > { %v4012_v3 = vcombine.low %v1812_v50, %v1816_v51  ;;  %v4014_v4 = vcombine.low %v1813_v52, %v1817_v53  ;;  %v4023_v9 = vcombine.high %v1821_v62, %v1825_v63  ;;  %v1840_v59 = vld [vmem:[%s6157_s9 + $0x230] sm:$0xff] }
 0x948   : > { %v1769_v19 = vadd.f32 %v1765_v11, %v1756_v14  ;;  %v1768_v20 = vadd.f32 %v1761_v12, %v1755_v18  ;;  %v1832_v11 = vld [vmem:[%s6157_s9 + $0x1f0] sm:$0xff]  ;;  %v1829_v12 = vld [vmem:[%s6157_s9 + $0x1d8] sm:$0xff]  ;;  %v4020_v18 = vcombine.low %v1820_v58, %v1824_v61 }
 0x949   : > { %v1833_v14 = vld [vmem:[%s6157_s9 + $0x1f8] sm:$0xff]  ;;  %v4028_v27 = vcombine.low %v1828_v10, %v1832_v11  ;;  %v1868_v52 = vld [vmem:[%s6157_s9 + $0x310] sm:$0xff] }
 0x94a   : > { %v1899_v23 = vpack.c.bf16 %v1769_v19, %v1769_v19  ;;  %v5522_v26 = vpack.c.bf16 %v1768_v20, %v1768_v20  ;;  %v4022_v19 = vcombine.low %v1821_v62, %v1825_v63  ;;  %v4029_v20 = vcombine.high %v1828_v10, %v1832_v11  ;;  %v1872_v53 = vld [vmem:[%s6157_s9 + $0x330] sm:$0xff] }
 0x94b   : > { %v4031_v2 = vcombine.high %v1829_v12, %v1833_v14  ;;  %v4069_v58 = vcombine.high %v1868_v52, %v1872_v53  ;;  %v1876_v62 = vld [vmem:[%s6157_s9 + $0x350] sm:$0xff] }
 0x94c   : > { %2614 = vmatprep.mubr.bf16.mxu1 %v1899_v23  ;;  %2655 = vmatprep.mubr.bf16.mxu0 %v1899_v23  ;;  %v1880_v63 = vld [vmem:[%s6157_s9 + $0x370] sm:$0xff] }
 0x94d   : > { %2615 = vmatmul.mubr.bf16.vlgmr.msra.gmra.mrb[24].mxu1 %v5522_v26  ;;  %2656 = vmatmul.mubr.bf16.vlgmr.msra.gmra.mrb[12].mxu0 %v5522_v26  ;;  %v4077_v10 = vcombine.high %v1876_v62, %v1880_v63 }
 0x94e   : > { %2665 = vmatpush1.bf16.msra.mxu1 %v3972_v54  ;;  %2706 = vmatpush1.bf16.msra.mxu0 %v3974_v55  ;;  %v4004_v54 = vcombine.low %v1804_v43, %v1808_v44  ;;  %v4006_v55 = vcombine.low %v1805_v45, %v1809_v46  ;;  %v4053_v43 = vcombine.high %v1852_v37, %v1856_v39  ;;  %v1860_v45 = vld [vmem:[%s6157_s9 + $0x2d0] sm:$0xff] }
 0x94f   : > { %2696 = vmatprep.mubr.bf16.mxu1 %v1899_v23  ;;  %2737 = vmatprep.mubr.bf16.mxu0 %v1899_v23  ;;  %v1841_v23 = vld [vmem:[%s6157_s9 + $0x238] sm:$0xff]  ;;  %v1864_v46 = vld [vmem:[%s6157_s9 + $0x2f0] sm:$0xff] }
 0x950   : > { %2666 = vmatprep.subr.bf16.mxu1 %v3981_v28  ;;  %2707 = vmatprep.subr.bf16.mxu0 %v3983_v7  ;;  %v4030_v28 = vcombine.low %v1829_v12, %v1833_v14  ;;  %v4037_v7 = vcombine.high %v1836_v8, %v1840_v59  ;;  %v4039_v29 = vcombine.high %v1837_v60, %v1841_v23  ;;  %v1884_v12 = vld [vmem:[%s6157_s9 + $0x390] sm:$0xff] }
 0x951   : > { %v4061_v50 = vcombine.high %v1860_v45, %v1864_v46  ;;  %v1888_v14 = vld [vmem:[%s6157_s9 + $0x3b0] sm:$0xff] }
 0x952   : > { %2667 = vmatpush1.bf16.msra.mxu1 %v3980_v32  ;;  %2708 = vmatpush1.bf16.msra.mxu0 %v3982_v33  ;;  %v1845_v32 = vld [vmem:[%s6157_s9 + $0x258] sm:$0xff] }
 0x953   : > { %2668 = vmatprep.subr.bf16.mxu1 %v3989_v0  ;;  %2709 = vmatprep.subr.bf16.mxu0 %v3991_v34  ;;  %v1849_v33 = vld [vmem:[%s6157_s9 + $0x278] sm:$0xff]  ;;  %v4036_v0 = vcombine.low %v1836_v8, %v1840_v59  ;;  %v4038_v34 = vcombine.low %v1837_v60, %v1841_v23  ;;  %v4085_v8 = vcombine.high %v1884_v12, %v1888_v14  ;;  %v1892_v60 = vld [vmem:[%s6157_s9 + $0x3d0] sm:$0xff] }
 0x954   : > { %v4047_v36 = vcombine.high %v1845_v32, %v1849_v33  ;;  %v1896_v23 = vld [vmem:[%s6157_s9 + $0x3f0] sm:$0xff] }
 0x956   : > { %2669 = vmatpush1.bf16.msra.mxu1 %v3988_v40  ;;  %2710 = vmatpush1.bf16.msra.mxu0 %v3990_v41  ;;  %v1853_v40 = vld [vmem:[%s6157_s9 + $0x298] sm:$0xff] }
 0x957   : > { %2670 = vmatprep.subr.bf16.mxu1 %v3997_v38  ;;  %2711 = vmatprep.subr.bf16.mxu0 %v3999_v42  ;;  %v1857_v41 = vld [vmem:[%s6157_s9 + $0x2b8] sm:$0xff]  ;;  %v4044_v38 = vcombine.low %v1844_v30, %v1848_v31  ;;  %v4046_v42 = vcombine.low %v1845_v32, %v1849_v33  ;;  %v4093_v30 = vcombine.high %v1892_v60, %v1896_v23 }
 0x958   : > { %v4055_v44 = vcombine.high %v1853_v40, %v1857_v41  ;;  %v4092_v32 = vcombine.low %v1892_v60, %v1896_v23  ;;  %v4535_v60 = vld [vmem:[%s6159_s11 + $0x1b4] ss:$8 sps:$4 sm:$0xff]   ;;  %v4530_v23 = vld [vmem:[%s6159_s11 + $0xb0] ss:$8 sps:$4 sm:$0xff]  }
 0x95a   : > { %2671 = vmatpush1.bf16.msra.mxu1 %v3996_v47  ;;  %2712 = vmatpush1.bf16.msra.mxu0 %v3998_v13  ;;  %v1861_v47 = vld [vmem:[%s6157_s9 + $0x2d8] sm:$0xff] }
 0x95b   : > { %2672 = vmatprep.subr.bf16.mxu1 %v4005_v48  ;;  %2713 = vmatprep.subr.bf16.mxu0 %v4007_v49  ;;  %v1865_v13 = vld [vmem:[%s6157_s9 + $0x2f8] sm:$0xff]  ;;  %v4052_v48 = vcombine.low %v1852_v37, %v1856_v39  ;;  %v4054_v49 = vcombine.low %v1853_v40, %v1857_v41 }
 0x95c   : > { %v4063_v51 = vcombine.high %v1861_v47, %v1865_v13  ;;  %v4472_v37 = vld [vmem:[%s6159_s11 + $0x14] ss:$8 sps:$4 sm:$0xff]   ;;  %v4470_v40 = vld [vmem:[%s6159_s11 + $0x10] ss:$8 sps:$4 sm:$0xff]  }
 0x95d   : > { %v4475_v39 = vld [vmem:[%s6159_s11 + $0x114] ss:$8 sps:$4 sm:$0xff]   ;;  %v4473_v41 = vld [vmem:[%s6159_s11 + $0x110] ss:$8 sps:$4 sm:$0xff]  }
 0x95e   : > { %2673 = vmatpush1.bf16.msra.mxu1 %v4004_v54  ;;  %2714 = vmatpush1.bf16.msra.mxu0 %v4006_v55  ;;  %v1869_v54 = vld [vmem:[%s6157_s9 + $0x318] sm:$0xff] }
 0x95f   : > { %2674 = vmatprep.subr.bf16.mxu1 %v4013_v56  ;;  %2715 = vmatprep.subr.bf16.mxu0 %v4015_v57  ;;  %v1873_v55 = vld [vmem:[%s6157_s9 + $0x338] sm:$0xff]  ;;  %v4060_v56 = vcombine.low %v1860_v45, %v1864_v46  ;;  %v4062_v57 = vcombine.low %v1861_v47, %v1865_v13  ;;  %v4490_v13 = vld [vmem:[%s6159_s11 + $0x44] ss:$8 sps:$4 sm:$0xff]  }
 0x960   : > { %v4071_v61 = vcombine.high %v1869_v54, %v1873_v55  ;;  %v4487_v45 = vld [vmem:[%s6159_s11 + $0x134] ss:$8 sps:$4 sm:$0xff]   ;;  %v4482_v46 = vld [vmem:[%s6159_s11 + $0x30] ss:$8 sps:$4 sm:$0xff]  }
 0x961   : > { %v4485_v47 = vld [vmem:[%s6159_s11 + $0x130] ss:$8 sps:$4 sm:$0xff]  }
 0x962   : > { %2675 = vmatpush1.bf16.msra.mxu1 %v4012_v3  ;;  %2716 = vmatpush1.bf16.msra.mxu0 %v4014_v4  ;;  %v1877_v3 = vld [vmem:[%s6157_s9 + $0x358] sm:$0xff] }
 0x963   : > { %2676 = vmatprep.subr.bf16.mxu1 %v4021_v6  ;;  %2717 = vmatprep.subr.bf16.mxu0 %v4023_v9  ;;  %v1881_v4 = vld [vmem:[%s6157_s9 + $0x378] sm:$0xff]  ;;  %v4068_v6 = vcombine.low %v1868_v52, %v1872_v53  ;;  %v4070_v9 = vcombine.low %v1869_v54, %v1873_v55  ;;  %v4502_v55 = vld [vmem:[%s6159_s11 + $0x64] ss:$8 sps:$4 sm:$0xff]  }
 0x964   : > { %v4079_v11 = vcombine.high %v1877_v3, %v1881_v4  ;;  %v4499_v52 = vld [vmem:[%s6159_s11 + $0x154] ss:$8 sps:$4 sm:$0xff]   ;;  %v4494_v53 = vld [vmem:[%s6159_s11 + $0x50] ss:$8 sps:$4 sm:$0xff]  }
 0x965   : > { %v4497_v54 = vld [vmem:[%s6159_s11 + $0x150] ss:$8 sps:$4 sm:$0xff]  }
 0x966   : > { %2677 = vmatpush1.bf16.msra.mxu1 %v4020_v18  ;;  %2718 = vmatpush1.bf16.msra.mxu0 %v4022_v19  ;;  %v1885_v18 = vld [vmem:[%s6157_s9 + $0x398] sm:$0xff] }
 0x967   : > { %2678 = vmatprep.subr.bf16.mxu1 %v4029_v20  ;;  %2719 = vmatprep.subr.bf16.mxu0 %v4031_v2  ;;  %v1889_v19 = vld [vmem:[%s6157_s9 + $0x3b8] sm:$0xff]  ;;  %v4076_v20 = vcombine.low %v1876_v62, %v1880_v63  ;;  %v4078_v2 = vcombine.low %v1877_v3, %v1881_v4  ;;  %v4514_v4 = vld [vmem:[%s6159_s11 + $0x84] ss:$8 sps:$4 sm:$0xff]  }
 0x968   : > { %v4087_v59 = vcombine.high %v1885_v18, %v1889_v19  ;;  %v4511_v62 = vld [vmem:[%s6159_s11 + $0x174] ss:$8 sps:$4 sm:$0xff]   ;;  %v4506_v63 = vld [vmem:[%s6159_s11 + $0x70] ss:$8 sps:$4 sm:$0xff]  }
 0x969   : > { %v4509_v3 = vld [vmem:[%s6159_s11 + $0x170] ss:$8 sps:$4 sm:$0xff]  }
 0x96a   : > { %2679 = vmatpush1.bf16.msra.mxu1 %v4028_v27  ;;  %2720 = vmatpush1.bf16.msra.mxu0 %v4030_v28  ;;  %v1893_v27 = vld [vmem:[%s6157_s9 + $0x3d8] sm:$0xff] }
 0x96b   : > { %2680 = vmatprep.subr.bf16.mxu1 %v4037_v7  ;;  %2721 = vmatprep.subr.bf16.mxu0 %v4039_v29  ;;  %v1897_v28 = vld [vmem:[%s6157_s9 + $0x3f8] sm:$0xff]  ;;  %v4084_v7 = vcombine.low %v1884_v12, %v1888_v14  ;;  %v4086_v29 = vcombine.low %v1885_v18, %v1889_v19  ;;  %v4526_v19 = vld [vmem:[%s6159_s11 + $0xa4] ss:$8 sps:$4 sm:$0xff]  }
 0x96c   : > { %v4095_v31 = vcombine.high %v1893_v27, %v1897_v28  ;;  %v4094_v33 = vcombine.low %v1893_v27, %v1897_v28  ;;  %v4523_v12 = vld [vmem:[%s6159_s11 + $0x194] ss:$8 sps:$4 sm:$0xff]   ;;  %v4518_v14 = vld [vmem:[%s6159_s11 + $0x90] ss:$8 sps:$4 sm:$0xff]   ;;  %v4538_v28 = vld [vmem:[%s6159_s11 + $0xc4] ss:$8 sps:$4 sm:$0xff]  }
 0x96d   : > { %v4521_v18 = vld [vmem:[%s6159_s11 + $0x190] ss:$8 sps:$4 sm:$0xff]  }
 0x96e   : > { %2681 = vmatpush1.bf16.msra.mxu1 %v4036_v0  ;;  %2722 = vmatpush1.bf16.msra.mxu0 %v4038_v34  ;;  %v4466_v0 = vld [vmem:[%s6159_s11 + $0x4] ss:$8 sps:$4 sm:$0xff]   ;;  %v4533_v27 = vld [vmem:[%s6159_s11 + $0x1b0] ss:$8 sps:$4 sm:$0xff]  }
 0x96f   : > { %2682 = vmatprep.subr.bf16.mxu1 %v4045_v35  ;;  %2723 = vmatprep.subr.bf16.mxu0 %v4047_v36  ;;  %v4469_v34 = vld [vmem:[%s6159_s11 + $0x104] ss:$8 sps:$4 sm:$0xff]   ;;  %v4464_v35 = vld [vmem:[%s6159_s11] ss:$8 sps:$4 sm:$0xff]  }
 0x970   : > { %v4467_v36 = vld [vmem:[%s6159_s11 + $0x100] ss:$8 sps:$4 sm:$0xff]  }
 0x972   : > { %2683 = vmatpush1.bf16.msra.mxu1 %v4044_v38  ;;  %2724 = vmatpush1.bf16.msra.mxu0 %v4046_v42  ;;  %v4478_v38 = vld [vmem:[%s6159_s11 + $0x24] ss:$8 sps:$4 sm:$0xff]   ;;  %v4476_v42 = vld [vmem:[%s6159_s11 + $0x20] ss:$8 sps:$4 sm:$0xff]  }
 0x973   : > { %2684 = vmatprep.subr.bf16.mxu1 %v4053_v43  ;;  %2725 = vmatprep.subr.bf16.mxu0 %v4055_v44  ;;  %v4479_v43 = vld [vmem:[%s6159_s11 + $0x120] ss:$8 sps:$4 sm:$0xff]   ;;  %v4484_v44 = vld [vmem:[%s6159_s11 + $0x34] ss:$8 sps:$4 sm:$0xff]  }
 0x976   : > { %2685 = vmatpush1.bf16.msra.mxu1 %v4052_v48  ;;  %2726 = vmatpush1.bf16.msra.mxu0 %v4054_v49  ;;  %v4493_v48 = vld [vmem:[%s6159_s11 + $0x144] ss:$8 sps:$4 sm:$0xff]   ;;  %v4488_v49 = vld [vmem:[%s6159_s11 + $0x40] ss:$8 sps:$4 sm:$0xff]  }
 0x977   : > { %2686 = vmatprep.subr.bf16.mxu1 %v4061_v50  ;;  %2727 = vmatprep.subr.bf16.mxu0 %v4063_v51  ;;  %v4491_v50 = vld [vmem:[%s6159_s11 + $0x140] ss:$8 sps:$4 sm:$0xff]   ;;  %v4496_v51 = vld [vmem:[%s6159_s11 + $0x54] ss:$8 sps:$4 sm:$0xff]  }
 0x97a   : > { %2687 = vmatpush1.bf16.msra.mxu1 %v4060_v56  ;;  %2728 = vmatpush1.bf16.msra.mxu0 %v4062_v57  ;;  %v4505_v56 = vld [vmem:[%s6159_s11 + $0x164] ss:$8 sps:$4 sm:$0xff]   ;;  %v4500_v57 = vld [vmem:[%s6159_s11 + $0x60] ss:$8 sps:$4 sm:$0xff]  }
 0x97b   : > { %2688 = vmatprep.subr.bf16.mxu1 %v4069_v58  ;;  %2729 = vmatprep.subr.bf16.mxu0 %v4071_v61  ;;  %v4503_v58 = vld [vmem:[%s6159_s11 + $0x160] ss:$8 sps:$4 sm:$0xff]   ;;  %v4508_v61 = vld [vmem:[%s6159_s11 + $0x74] ss:$8 sps:$4 sm:$0xff]  }
 0x97e   : > { %2689 = vmatpush1.bf16.msra.mxu1 %v4068_v6  ;;  %2730 = vmatpush1.bf16.msra.mxu0 %v4070_v9  ;;  %v4517_v6 = vld [vmem:[%s6159_s11 + $0x184] ss:$8 sps:$4 sm:$0xff]   ;;  %v4512_v9 = vld [vmem:[%s6159_s11 + $0x80] ss:$8 sps:$4 sm:$0xff]  }
 0x97f   : > { %2690 = vmatprep.subr.bf16.mxu1 %v4077_v10  ;;  %2731 = vmatprep.subr.bf16.mxu0 %v4079_v11  ;;  %v4515_v10 = vld [vmem:[%s6159_s11 + $0x180] ss:$8 sps:$4 sm:$0xff]   ;;  %v4520_v11 = vld [vmem:[%s6159_s11 + $0x94] ss:$8 sps:$4 sm:$0xff]  }
 0x982   : > { %2691 = vmatpush1.bf16.msra.mxu1 %v4076_v20  ;;  %2732 = vmatpush1.bf16.msra.mxu0 %v4078_v2  ;;  %v4529_v20 = vld [vmem:[%s6159_s11 + $0x1a4] ss:$8 sps:$4 sm:$0xff]   ;;  %v4524_v2 = vld [vmem:[%s6159_s11 + $0xa0] ss:$8 sps:$4 sm:$0xff]  }
 0x983   : > { %2692 = vmatprep.subr.bf16.mxu1 %v4085_v8  ;;  %2733 = vmatprep.subr.bf16.mxu0 %v4087_v59  ;;  %v4527_v8 = vld [vmem:[%s6159_s11 + $0x1a0] ss:$8 sps:$4 sm:$0xff]   ;;  %v4532_v59 = vld [vmem:[%s6159_s11 + $0xb4] ss:$8 sps:$4 sm:$0xff]  }
 0x986   : > { %2693 = vmatpush1.bf16.msra.mxu1 %v4084_v7  ;;  %2734 = vmatpush1.bf16.msra.mxu0 %v4086_v29  ;;  %v4541_v7 = vld [vmem:[%s6159_s11 + $0x1c4] ss:$8 sps:$4 sm:$0xff]   ;;  %v4536_v29 = vld [vmem:[%s6159_s11 + $0xc0] ss:$8 sps:$4 sm:$0xff]  }
 0x987   : > { %2694 = vmatprep.subr.bf16.mxu1 %v4093_v30  ;;  %2735 = vmatprep.subr.bf16.mxu0 %v4095_v31  ;;  %v4539_v30 = vld [vmem:[%s6159_s11 + $0x1c0] ss:$8 sps:$4 sm:$0xff]   ;;  %v4544_v31 = vld [vmem:[%s6159_s11 + $0xd4] ss:$8 sps:$4 sm:$0xff]  }
 0x98a   : > { %2695 = vmatpush1.bf16.msra.mxu1 %v4092_v32  ;;  %2736 = vmatpush1.bf16.msra.mxu0 %v4094_v33  ;;  %v4547_v32 = vld [vmem:[%s6159_s11 + $0x1d4] ss:$8 sps:$4 sm:$0xff]   ;;  %v4542_v33 = vld [vmem:[%s6159_s11 + $0xd0] ss:$8 sps:$4 sm:$0xff]  }
 0x98b   : > { %3606 = vmatprep.subr.bf16.mxu1 %v4466_v0  ;;  %3647 = vmatprep.subr.bf16.mxu0 %v4469_v34  ;;  %v4545_v0 = vld [vmem:[%s6159_s11 + $0x1d0] ss:$8 sps:$4 sm:$0xff]   ;;  %v4550_v34 = vld [vmem:[%s6159_s11 + $0xe4] ss:$8 sps:$4 sm:$0xff]  }
 0x98d   : > { %2697 = vmatmul.mubr.bf16.vlgmr.msra.gmra.mrb[28].mxu1 %v5522_v26  ;;  %2738 = vmatmul.mubr.bf16.vlgmr.msra.gmra.mrb[16].mxu0 %v5522_v26  ;;  %v4481_v26 = vld [vmem:[%s6159_s11 + $0x124] ss:$8 sps:$4 sm:$0xff]  }
 0x98e   : > { %3607 = vmatpush1.bf16.msra.mxu1 %v4464_v35  ;;  %3648 = vmatpush1.bf16.msra.mxu0 %v4467_v36  ;;  %v4553_v35 = vld [vmem:[%s6159_s11 + $0x1e4] ss:$8 sps:$4 sm:$0xff]   ;;  %v4548_v36 = vld [vmem:[%s6159_s11 + $0xe0] ss:$8 sps:$4 sm:$0xff]  }
 0x98f   : > { %3608 = vmatprep.subr.bf16.mxu1 %v4472_v37  ;;  %3649 = vmatprep.subr.bf16.mxu0 %v4475_v39  ;;  %v4551_v37 = vld [vmem:[%s6159_s11 + $0x1e0] ss:$8 sps:$4 sm:$0xff]   ;;  %v4556_v39 = vld [vmem:[%s6159_s11 + $0xf4] ss:$8 sps:$4 sm:$0xff]  }
 0x992   : > { %3609 = vmatpush1.bf16.msra.mxu1 %v4470_v40  ;;  %3650 = vmatpush1.bf16.msra.mxu0 %v4473_v41  ;;  %v4559_v40 = vld [vmem:[%s6159_s11 + $0x1f4] ss:$8 sps:$4 sm:$0xff]   ;;  %v4554_v41 = vld [vmem:[%s6159_s11 + $0xf0] ss:$8 sps:$4 sm:$0xff]  }
 0x993   : > { %3610 = vmatprep.subr.bf16.mxu1 %v4478_v38  ;;  %3651 = vmatprep.subr.bf16.mxu0 %v4481_v26  ;;  %v4557_v38 = vld [vmem:[%s6159_s11 + $0x1f0] ss:$8 sps:$4 sm:$0xff]   ;;  %v4562_v26 = vld [vmem:[%s6159_s11 + $0x204] ss:$8 sps:$4 sm:$0xff]  }
 0x996   : > { %3611 = vmatpush1.bf16.msra.mxu1 %v4476_v42  ;;  %3652 = vmatpush1.bf16.msra.mxu0 %v4479_v43  ;;  %v4565_v42 = vld [vmem:[%s6159_s11 + $0x304] ss:$8 sps:$4 sm:$0xff]  }
 0x997   : > { %3612 = vmatprep.subr.bf16.mxu1 %v4484_v44  ;;  %3653 = vmatprep.subr.bf16.mxu0 %v4487_v45  ;;  %v5897_v43 = vld [vmem:[%s6158_s10] sm:$0xff] }
 0x998   : > { %v1905_v44 = vrot.slane %v5897_v43, %v5006_v17  ;;  %v1913_v45 = vrot.slane %v5897_v43, %v599_v1 }
 0x99a   : > { %3613 = vmatpush1.bf16.msra.mxu1 %v4482_v46  ;;  %3654 = vmatpush1.bf16.msra.mxu0 %v4485_v47  ;;  %v1909_v46 = vrot.slane %v5897_v43, %v5003_v16  ;;  %v1917_v47 = vrot.slane %v5897_v43, %v603_v5 }
 0x99b   : > { %3614 = vmatprep.subr.bf16.mxu1 %v4490_v13  ;;  %3655 = vmatprep.subr.bf16.mxu0 %v4493_v48 }
 0x99e   : > { %3615 = vmatpush1.bf16.msra.mxu1 %v4488_v49  ;;  %3656 = vmatpush1.bf16.msra.mxu0 %v4491_v50 }
 0x99f   : > { %3616 = vmatprep.subr.bf16.mxu1 %v4496_v51  ;;  %3657 = vmatprep.subr.bf16.mxu0 %v4499_v52 }
 0x9a2   : > { %3617 = vmatpush1.bf16.msra.mxu1 %v4494_v53  ;;  %3658 = vmatpush1.bf16.msra.mxu0 %v4497_v54 }
 0x9a3   : > { %3618 = vmatprep.subr.bf16.mxu1 %v4502_v55  ;;  %3659 = vmatprep.subr.bf16.mxu0 %v4505_v56 }
 0x9a6   : > { %3619 = vmatpush1.bf16.msra.mxu1 %v4500_v57  ;;  %3660 = vmatpush1.bf16.msra.mxu0 %v4503_v58 }
 0x9a7   : > { %3620 = vmatprep.subr.bf16.mxu1 %v4508_v61  ;;  %3661 = vmatprep.subr.bf16.mxu0 %v4511_v62 }
 0x9aa   : > { %3621 = vmatpush1.bf16.msra.mxu1 %v4506_v63  ;;  %3662 = vmatpush1.bf16.msra.mxu0 %v4509_v3 }
 0x9ab   : > { %3622 = vmatprep.subr.bf16.mxu1 %v4514_v4  ;;  %3663 = vmatprep.subr.bf16.mxu0 %v4517_v6 }
 0x9ae   : > { %3623 = vmatpush1.bf16.msra.mxu1 %v4512_v9  ;;  %3664 = vmatpush1.bf16.msra.mxu0 %v4515_v10 }
 0x9af   : > { %3624 = vmatprep.subr.bf16.mxu1 %v4520_v11  ;;  %3665 = vmatprep.subr.bf16.mxu0 %v4523_v12 }
 0x9b2   : > { %3625 = vmatpush1.bf16.msra.mxu1 %v4518_v14  ;;  %3666 = vmatpush1.bf16.msra.mxu0 %v4521_v18 }
 0x9b3   : > { %3626 = vmatprep.subr.bf16.mxu1 %v4526_v19  ;;  %3667 = vmatprep.subr.bf16.mxu0 %v4529_v20 }
 0x9b6   : > { %3627 = vmatpush1.bf16.msra.mxu1 %v4524_v2  ;;  %3668 = vmatpush1.bf16.msra.mxu0 %v4527_v8 }
 0x9b7   : > { %3628 = vmatprep.subr.bf16.mxu1 %v4532_v59  ;;  %3669 = vmatprep.subr.bf16.mxu0 %v4535_v60 }
 0x9ba   : > { %3629 = vmatpush1.bf16.msra.mxu1 %v4530_v23  ;;  %3670 = vmatpush1.bf16.msra.mxu0 %v4533_v27 }
 0x9bb   : > { %3630 = vmatprep.subr.bf16.mxu1 %v4538_v28  ;;  %3671 = vmatprep.subr.bf16.mxu0 %v4541_v7 }
 0x9be   : > { %3631 = vmatpush1.bf16.msra.mxu1 %v4536_v29  ;;  %3672 = vmatpush1.bf16.msra.mxu0 %v4539_v30 }
 0x9bf   : > { %3632 = vmatprep.subr.bf16.mxu1 %v4544_v31  ;;  %3673 = vmatprep.subr.bf16.mxu0 %v4547_v32 }
 0x9c2   : > { %3633 = vmatpush1.bf16.msra.mxu1 %v4542_v33  ;;  %3674 = vmatpush1.bf16.msra.mxu0 %v4545_v0 }
 0x9c3   : > { %3634 = vmatprep.subr.bf16.mxu1 %v4550_v34  ;;  %3675 = vmatprep.subr.bf16.mxu0 %v4553_v35 }
 0x9c6   : > { %3635 = vmatpush1.bf16.msra.mxu1 %v4548_v36  ;;  %3676 = vmatpush1.bf16.msra.mxu0 %v4551_v37 }
 0x9c7   : > { %3636 = vmatprep.subr.bf16.mxu1 %v4556_v39  ;;  %3677 = vmatprep.subr.bf16.mxu0 %v4559_v40 }
 0x9ca   : > { %3637 = vmatpush1.bf16.msra.mxu1 %v4554_v41  ;;  %3678 = vmatpush1.bf16.msra.mxu0 %v4557_v38  ;;  %v4560_v38 = vld [vmem:[%s6159_s11 + $0x200] ss:$8 sps:$4 sm:$0xff]  }
 0x9cb   : > { %3688 = vmatprep.subr.bf16.mxu1 %v4562_v26  ;;  %3729 = vmatprep.subr.bf16.mxu0 %v4565_v42  ;;  %v4563_v42 = vld [vmem:[%s6159_s11 + $0x300] ss:$8 sps:$4 sm:$0xff]  }
 0xa20   : > { %v2616_v13 = vpop.f32.mrb[24].mxu1  ;;  %v2657_v48 = vpop.f32.mrb[12].mxu0 }
 0xa21   : > { %v2617_v49 = vadd.f32 %v2616_v13, %v1905_v44  ;;  %v2658_v50 = vadd.f32 %v2657_v48, %v1913_v45  ;;  %v2618_v51 = vpop.f32.mrb[25].mxu1  ;;  %v2659_v52 = vpop.f32.mrb[13].mxu0  ;;  %v4568_v45 = vld [vmem:[%s6159_s11 + $0x214] ss:$8 sps:$4 sm:$0xff]   ;;  %v4566_v13 = vld [vmem:[%s6159_s11 + $0x210] ss:$8 sps:$4 sm:$0xff]  }
 0xa22   : > { %v2619_v53 = vadd.f32 %v2618_v51, %v1909_v46  ;;  %v2660_v54 = vadd.f32 %v2659_v52, %v1917_v47  ;;  %v2620_v55 = vpop.f32.mrb[26].mxu1  ;;  %v2661_v56 = vpop.f32.mrb[14].mxu0  ;;  %v4571_v47 = vld [vmem:[%s6159_s11 + $0x314] ss:$8 sps:$4 sm:$0xff]   ;;  %v4569_v48 = vld [vmem:[%s6159_s11 + $0x310] ss:$8 sps:$4 sm:$0xff]  }
 0xa23   : > { %v2746_v57 = vmul.f32 %v2617_v49, %v2617_v49  ;;  %v2748_v58 = vmul.f32 %v2658_v50, %v2658_v50  ;;  %v2621_v1 = vpop.f32.mrb[27].mxu1  ;;  %v2662_v61 = vpop.f32.mrb[15].mxu0  ;;  %v4572_v51 = vld [vmem:[%s6159_s11 + $0x220] ss:$8 sps:$4 sm:$0xff]   ;;  %v4578_v55 = vld [vmem:[%s6159_s11 + $0x230] ss:$8 sps:$4 sm:$0xff]  }
 0xa24   : > { %v2747_v62 = vmul.f32 %v2619_v53, %v2619_v53  ;;  %v2749_v63 = vmul.f32 %v2660_v54, %v2660_v54  ;;  %v4575_v52 = vld [vmem:[%s6159_s11 + $0x320] ss:$8 sps:$4 sm:$0xff]   ;;  %v4581_v56 = vld [vmem:[%s6159_s11 + $0x330] ss:$8 sps:$4 sm:$0xff]  }
 0xa25   : > { %v2754_v3 = vmul.f32 %v2746_v57, %v2617_v49  ;;  %v2756_v4 = vmul.f32 %v2748_v58, %v2658_v50  ;;  %v4586_v57 = vld [vmem:[%s6159_s11 + $0x244] ss:$8 sps:$4 sm:$0xff]   ;;  %v4584_v1 = vld [vmem:[%s6159_s11 + $0x240] ss:$8 sps:$4 sm:$0xff]  }
 0xa26   : > { %v2755_v6 = vmul.f32 %v2747_v62, %v2619_v53  ;;  %v2757_v5 = vmul.f32 %v2749_v63, %v2660_v54  ;;  %v4589_v58 = vld [vmem:[%s6159_s11 + $0x344] ss:$8 sps:$4 sm:$0xff]   ;;  %v4587_v61 = vld [vmem:[%s6159_s11 + $0x340] ss:$8 sps:$4 sm:$0xff]   ;;  %v4592_v62 = vld [vmem:[%s6159_s11 + $0x254] ss:$8 sps:$4 sm:$0xff]  }
 0xa27   : > { %v2762_v9 = vmul.f32 0.044715, %v2754_v3  ;;  %v2764_v10 = vmul.f32 0.044715, %v2756_v4  ;;  %v4595_v63 = vld [vmem:[%s6159_s11 + $0x354] ss:$8 sps:$4 sm:$0xff]  }
 0xa28   : > { %v2763_v11 = vmul.f32 0.044715, %v2755_v6  ;;  %v2765_v12 = vmul.f32 0.044715, %v2757_v5  ;;  %v4590_v3 = vld [vmem:[%s6159_s11 + $0x250] ss:$8 sps:$4 sm:$0xff]  }
 0xa29   : > { %v2770_v14 = vadd.f32 %v2762_v9, %v2617_v49  ;;  %v2772_v18 = vadd.f32 %v2764_v10, %v2658_v50  ;;  %v4593_v4 = vld [vmem:[%s6159_s11 + $0x350] ss:$8 sps:$4 sm:$0xff]   ;;  %v4598_v6 = vld [vmem:[%s6159_s11 + $0x264] ss:$8 sps:$4 sm:$0xff]   ;;  %v4596_v9 = vld [vmem:[%s6159_s11 + $0x260] ss:$8 sps:$4 sm:$0xff]  }
 0xa2a   : > { %v2771_v19 = vadd.f32 %v2763_v11, %v2619_v53  ;;  %v2773_v20 = vadd.f32 %v2765_v12, %v2660_v54  ;;  %v4601_v5 = vld [vmem:[%s6159_s11 + $0x364] ss:$8 sps:$4 sm:$0xff]   ;;  %v4599_v10 = vld [vmem:[%s6159_s11 + $0x360] ss:$8 sps:$4 sm:$0xff]   ;;  %v4604_v11 = vld [vmem:[%s6159_s11 + $0x274] ss:$8 sps:$4 sm:$0xff]  }
 0xa2b   : > { %v2778_v2 = vmul.f32 0.7978846, %v2770_v14  ;;  %v2780_v8 = vmul.f32 0.7978846, %v2772_v18  ;;  %v1928_v12 = vsub.s32 6, %v5000_v15  ;;  %v1932_v18 = vsub.s32 7, %v5000_v15 }
 0xa2c   : > { %v2779_v59 = vmul.f32 0.7978846, %v2771_v19  ;;  %v2781_v60 = vmul.f32 0.7978846, %v2773_v20  ;;  %v4607_v14 = vld [vmem:[%s6159_s11 + $0x374] ss:$8 sps:$4 sm:$0xff]  }
 0xa2d   : > { %4668 = vtanh.f32 %v2778_v2  ;;  %v4602_v19 = vld [vmem:[%s6159_s11 + $0x270] ss:$8 sps:$4 sm:$0xff]   ;;  %v1921_v2 = vrot.slane %v5897_v43, %v607_v21 }
 0xa2e   : > { %4670 = vtanh.f32 %v2780_v8  ;;  %v4605_v20 = vld [vmem:[%s6159_s11 + $0x370] ss:$8 sps:$4 sm:$0xff]   ;;  %v1929_v8 = vrot.slane %v5897_v43, %v1928_v12  ;;  %v4635_v12 = vld [vmem:[%s6159_s11 + $0x3c0] ss:$8 sps:$4 sm:$0xff]  }
 0xa2f   : > { %4672 = vtanh.f32 %v2779_v59  ;;  %v4610_v59 = vld [vmem:[%s6159_s11 + $0x284] ss:$8 sps:$4 sm:$0xff]  }
 0xa30   : > { %4674 = vtanh.f32 %v2781_v60  ;;  %v1925_v60 = vrot.slane %v5897_v43, %v611_v22 }
 0xa37   : > { %v4669_v23 = vpop.eup %4668 }
 0xa38   : > { %v4671_v27 = vpop.eup %4670  ;;  %v2794_v28 = vadd.f32 1.0, %v4669_v23  ;;  %v1933_v23 = vrot.slane %v5897_v43, %v1932_v18  ;;  %v4611_v43 = vld [vmem:[%s6159_s11 + $0x380] ss:$8 sps:$4 sm:$0xff]   ;;  %v4643_v18 = vld [vmem:[%s6159_s11 + $0x3d4] ss:$8 sps:$4 sm:$0xff]  }
 0xa39   : > { %v4673_v7 = vpop.eup %4672  ;;  %v2796_v29 = vadd.f32 1.0, %v4671_v27  ;;  %v4613_v27 = vld [vmem:[%s6159_s11 + $0x384] ss:$8 sps:$4 sm:$0xff]  }
 0xa3a   : > { %v4675_v30 = vpop.eup %4674  ;;  %v2795_v31 = vadd.f32 1.0, %v4673_v7  ;;  %v2802_v32 = vmul.f32 0.5, %v2794_v28  ;;  %v4608_v7 = vld [vmem:[%s6159_s11 + $0x280] ss:$8 sps:$4 sm:$0xff]  }
 0xa3b   : > { %v2797_v33 = vadd.f32 1.0, %v4675_v30  ;;  %v2804_v0 = vmul.f32 0.5, %v2796_v29 }
 0xa3c   : > { %v2803_v34 = vmul.f32 0.5, %v2795_v31  ;;  %v2810_v36 = vmul.f32 %v2802_v32, %v2617_v49  ;;  %v4574_v49 = vld [vmem:[%s6159_s11 + $0x224] ss:$8 sps:$4 sm:$0xff]   ;;  %v4616_v31 = vld [vmem:[%s6159_s11 + $0x294] ss:$8 sps:$4 sm:$0xff]  }
 0xa3d   : > { %v2805_v35 = vmul.f32 0.5, %v2797_v33  ;;  %v2812_v39 = vmul.f32 %v2804_v0, %v2658_v50  ;;  %v4577_v50 = vld [vmem:[%s6159_s11 + $0x324] ss:$8 sps:$4 sm:$0xff]  }
 0xa3e   : > { %v2811_v37 = vmul.f32 %v2803_v34, %v2619_v53  ;;  %v2946_v44 = vpack.c.bf16 %v2810_v36, %v2810_v36  ;;  %v4580_v53 = vld [vmem:[%s6159_s11 + $0x234] ss:$8 sps:$4 sm:$0xff]  }
 0xa3f   : > { %v2813_v40 = vmul.f32 %v2805_v35, %v2660_v54  ;;  %v2948_v46 = vpack.c.bf16 %v2812_v39, %v2812_v39  ;;  %v4583_v54 = vld [vmem:[%s6159_s11 + $0x334] ss:$8 sps:$4 sm:$0xff]  }
 0xa40   : > { %v2947_v41 = vpack.c.bf16 %v2811_v37, %v2811_v37  ;;  %v4619_v35 = vld [vmem:[%s6159_s11 + $0x394] ss:$8 sps:$4 sm:$0xff]  }
 0xa41   : > { %v2949_v26 = vpack.c.bf16 %v2813_v40, %v2813_v40 }
 0xa42   : > { %3638 = vmatprep.mubr.bf16.mxu1 %v2947_v41 }
 0xa43   : > { %3679 = vmatprep.mubr.bf16.mxu0 %v2949_v26  ;;  %3639 = vmatmul.mubr.bf16.vlgmr.msra.gmra.mrb[32].mxu1 %v2946_v44  ;;  %v4614_v26 = vld [vmem:[%s6159_s11 + $0x290] ss:$8 sps:$4 sm:$0xff]  }
 0xa44   : > { %3680 = vmatmul.mubr.bf16.vlgmr.msra.gmra.mrb[20].mxu0 %v2948_v46  ;;  %3689 = vmatpush1.bf16.msra.mxu1 %v4560_v38  ;;  %v4622_v46 = vld [vmem:[%s6159_s11 + $0x2a4] ss:$8 sps:$4 sm:$0xff]  }
 0xa45   : > { %3730 = vmatpush1.bf16.msra.mxu0 %v4563_v42  ;;  %3690 = vmatprep.subr.bf16.mxu1 %v4568_v45  ;;  %v4617_v45 = vld [vmem:[%s6159_s11 + $0x390] ss:$8 sps:$4 sm:$0xff]  }
 0xa46   : > { %3731 = vmatprep.subr.bf16.mxu0 %v4571_v47 }
 0xa48   : > { %3691 = vmatpush1.bf16.msra.mxu1 %v4566_v13 }
 0xa49   : > { %3732 = vmatpush1.bf16.msra.mxu0 %v4569_v48  ;;  %3692 = vmatprep.subr.bf16.mxu1 %v4574_v49  ;;  %v4625_v48 = vld [vmem:[%s6159_s11 + $0x3a4] ss:$8 sps:$4 sm:$0xff]  }
 0xa4a   : > { %3733 = vmatprep.subr.bf16.mxu0 %v4577_v50 }
 0xa4c   : > { %3693 = vmatpush1.bf16.msra.mxu1 %v4572_v51 }
 0xa4d   : > { %3734 = vmatpush1.bf16.msra.mxu0 %v4575_v52  ;;  %3694 = vmatprep.subr.bf16.mxu1 %v4580_v53  ;;  %v4620_v53 = vld [vmem:[%s6159_s11 + $0x2a0] ss:$8 sps:$4 sm:$0xff]  }
 0xa4e   : > { %3735 = vmatprep.subr.bf16.mxu0 %v4583_v54 }
 0xa50   : > { %3695 = vmatpush1.bf16.msra.mxu1 %v4578_v55 }
 0xa51   : > { %3736 = vmatpush1.bf16.msra.mxu0 %v4581_v56  ;;  %3696 = vmatprep.subr.bf16.mxu1 %v4586_v57  ;;  %v4623_v56 = vld [vmem:[%s6159_s11 + $0x3a0] ss:$8 sps:$4 sm:$0xff]   ;;  %v4628_v57 = vld [vmem:[%s6159_s11 + $0x2b4] ss:$8 sps:$4 sm:$0xff]  }
 0xa52   : > { %3737 = vmatprep.subr.bf16.mxu0 %v4589_v58 }
 0xa54   : > { %3697 = vmatpush1.bf16.msra.mxu1 %v4584_v1 }
 0xa55   : > { %3738 = vmatpush1.bf16.msra.mxu0 %v4587_v61  ;;  %3698 = vmatprep.subr.bf16.mxu1 %v4592_v62  ;;  %v4631_v61 = vld [vmem:[%s6159_s11 + $0x3b4] ss:$8 sps:$4 sm:$0xff]  }
 0xa56   : > { %3739 = vmatprep.subr.bf16.mxu0 %v4595_v63 }
 0xa58   : > { %3699 = vmatpush1.bf16.msra.mxu1 %v4590_v3 }
 0xa59   : > { %3740 = vmatpush1.bf16.msra.mxu0 %v4593_v4  ;;  %3700 = vmatprep.subr.bf16.mxu1 %v4598_v6  ;;  %v4626_v6 = vld [vmem:[%s6159_s11 + $0x2b0] ss:$8 sps:$4 sm:$0xff]  }
 0xa5a   : > { %3741 = vmatprep.subr.bf16.mxu0 %v4601_v5  ;;  %v4629_v5 = vld [vmem:[%s6159_s11 + $0x3b0] ss:$8 sps:$4 sm:$0xff]  }
 0xa5c   : > { %3701 = vmatpush1.bf16.msra.mxu1 %v4596_v9  ;;  %v4634_v9 = vld [vmem:[%s6159_s11 + $0x2c4] ss:$8 sps:$4 sm:$0xff]  }
 0xa5d   : > { %3742 = vmatpush1.bf16.msra.mxu0 %v4599_v10  ;;  %3702 = vmatprep.subr.bf16.mxu1 %v4604_v11  ;;  %v4637_v10 = vld [vmem:[%s6159_s11 + $0x3c4] ss:$8 sps:$4 sm:$0xff]   ;;  %v4632_v11 = vld [vmem:[%s6159_s11 + $0x2c0] ss:$8 sps:$4 sm:$0xff]  }
 0xa5e   : > { %3743 = vmatprep.subr.bf16.mxu0 %v4607_v14  ;;  %v4640_v14 = vld [vmem:[%s6159_s11 + $0x2d4] ss:$8 sps:$4 sm:$0xff]  }
 0xa60   : > { %3703 = vmatpush1.bf16.msra.mxu1 %v4602_v19  ;;  %v2698_v28 = vpop.f32.mrb[28].mxu1  ;;  %v2739_v21 = vpop.f32.mrb[16].mxu0  ;;  %v4638_v19 = vld [vmem:[%s6159_s11 + $0x2d0] ss:$8 sps:$4 sm:$0xff]  }
 0xa61   : > { %3744 = vmatpush1.bf16.msra.mxu0 %v4605_v20  ;;  %v6018_v29 = vadd.f32 %v2698_v28, %v1921_v2  ;;  %v6020_v30 = vadd.f32 %v2739_v21, %v1929_v8  ;;  %v2700_v15 = vpop.f32.mrb[29].mxu1  ;;  %v2741_v22 = vpop.f32.mrb[17].mxu0  ;;  %3704 = vmatprep.subr.bf16.mxu1 %v4610_v59  ;;  %v4641_v20 = vld [vmem:[%s6159_s11 + $0x3d0] ss:$8 sps:$4 sm:$0xff]   ;;  %v4646_v2 = vld [vmem:[%s6159_s11 + $0x2e4] ss:$8 sps:$4 sm:$0xff]  }
 0xa62   : > { %v6028_v32 = vadd.f32 %v2700_v15, %v1925_v60  ;;  %v6030_v33 = vadd.f32 %v2741_v22, %v1933_v23  ;;  %v2702_v0 = vpop.f32.mrb[30].mxu1  ;;  %v2743_v34 = vpop.f32.mrb[18].mxu0  ;;  %3745 = vmatprep.subr.bf16.mxu0 %v4613_v27  ;;  %v4649_v8 = vld [vmem:[%s6159_s11 + $0x3e4] ss:$8 sps:$4 sm:$0xff]   ;;  %v4644_v23 = vld [vmem:[%s6159_s11 + $0x2e0] ss:$8 sps:$4 sm:$0xff]  }
 0xa63   : > { %v2750_v36 = vmul.f32 %v6018_v29, %v6018_v29  ;;  %v2752_v37 = vmul.f32 %v6020_v30, %v6020_v30  ;;  %v2703_v39 = vpop.f32.mrb[31].mxu1  ;;  %v2744_v40 = vpop.f32.mrb[19].mxu0  ;;  %v4647_v21 = vld [vmem:[%s6159_s11 + $0x3e0] ss:$8 sps:$4 sm:$0xff]  }
 0xa64   : > { %v2751_v41 = vmul.f32 %v6028_v32, %v6028_v32  ;;  %v2753_v38 = vmul.f32 %v6030_v33, %v6030_v33  ;;  %3705 = vmatpush1.bf16.msra.mxu1 %v4608_v7  ;;  %v4652_v7 = vld [vmem:[%s6159_s11 + $0x2f4] ss:$8 sps:$4 sm:$0xff]   ;;  %v4653_v39 = vld [vmem:[%s6159_s11 + $0x3f0] ss:$8 sps:$4 sm:$0xff]  }
 0xa65   : > { %v2758_v42 = vmul.f32 %v2750_v36, %v6018_v29  ;;  %v2760_v44 = vmul.f32 %v2752_v37, %v6020_v30  ;;  %3746 = vmatpush1.bf16.msra.mxu0 %v4611_v43  ;;  %3706 = vmatprep.subr.bf16.mxu1 %v4616_v31  ;;  %v4655_v43 = vld [vmem:[%s6159_s11 + $0x3f4] ss:$8 sps:$4 sm:$0xff]   ;;  %v4650_v36 = vld [vmem:[%s6159_s11 + $0x2f0] ss:$8 sps:$4 sm:$0xff]  }
 0xa66   : > { %v2759_v47 = vmul.f32 %v2751_v41, %v6028_v32  ;;  %v2761_v13 = vmul.f32 %v2753_v38, %v6030_v33  ;;  %3747 = vmatprep.subr.bf16.mxu0 %v4619_v35 }
 0xa67   : > { %v2766_v49 = vmul.f32 0.044715, %v2758_v42  ;;  %v2768_v50 = vmul.f32 0.044715, %v2760_v44 }
 0xa68   : > { %v2767_v51 = vmul.f32 0.044715, %v2759_v47  ;;  %v2769_v52 = vmul.f32 0.044715, %v2761_v13  ;;  %3707 = vmatpush1.bf16.msra.mxu1 %v4614_v26 }
 0xa69   : > { %v2774_v54 = vadd.f32 %v2766_v49, %v6018_v29  ;;  %v2776_v55 = vadd.f32 %v2768_v50, %v6020_v30  ;;  %3748 = vmatpush1.bf16.msra.mxu0 %v4617_v45  ;;  %3708 = vmatprep.subr.bf16.mxu1 %v4622_v46 }
 0xa6a   : > { %v2775_v58 = vadd.f32 %v2767_v51, %v6028_v32  ;;  %v2777_v1 = vadd.f32 %v2769_v52, %v6030_v33  ;;  %3749 = vmatprep.subr.bf16.mxu0 %v4625_v48 }
 0xa6b   : > { %v2782_v62 = vmul.f32 0.7978846, %v2774_v54  ;;  %v2784_v63 = vmul.f32 0.7978846, %v2776_v55 }
 0xa6c   : > { %v2783_v3 = vmul.f32 0.7978846, %v2775_v58  ;;  %v2785_v4 = vmul.f32 0.7978846, %v2777_v1  ;;  %3709 = vmatpush1.bf16.msra.mxu1 %v4620_v53 }
 0xa6d   : > { %4676 = vtanh.f32 %v2782_v62  ;;  %3750 = vmatpush1.bf16.msra.mxu0 %v4623_v56  ;;  %3710 = vmatprep.subr.bf16.mxu1 %v4628_v57 }
 0xa6e   : > { %4678 = vtanh.f32 %v2784_v63  ;;  %3751 = vmatprep.subr.bf16.mxu0 %v4631_v61 }
 0xa6f   : > { %4680 = vtanh.f32 %v2783_v3 }
 0xa70   : > { %4682 = vtanh.f32 %v2785_v4  ;;  %3711 = vmatpush1.bf16.msra.mxu1 %v4626_v6 }
 0xa71   : > { %3752 = vmatpush1.bf16.msra.mxu0 %v4629_v5  ;;  %3712 = vmatprep.subr.bf16.mxu1 %v4634_v9 }
 0xa72   : > { %3753 = vmatprep.subr.bf16.mxu0 %v4637_v10 }
 0xa74   : > { %3713 = vmatpush1.bf16.msra.mxu1 %v4632_v11 }
 0xa75   : > { %3754 = vmatpush1.bf16.msra.mxu0 %v4635_v12  ;;  %3714 = vmatprep.subr.bf16.mxu1 %v4640_v14 }
 0xa76   : > { %3755 = vmatprep.subr.bf16.mxu0 %v4643_v18 }
 0xa77   : > { %v4677_v59 = vpop.eup %4676 }
 0xa78   : > { %v4679_v60 = vpop.eup %4678  ;;  %3715 = vmatpush1.bf16.msra.mxu1 %v4638_v19  ;;  %v2798_v27 = vadd.f32 1.0, %v4677_v59 }
 0xa79   : > { %v4681_v28 = vpop.eup %4680  ;;  %3756 = vmatpush1.bf16.msra.mxu0 %v4641_v20  ;;  %3716 = vmatprep.subr.bf16.mxu1 %v4646_v2  ;;  %v2800_v15 = vadd.f32 1.0, %v4679_v60 }
 0xa7a   : > { %v4683_v22 = vpop.eup %4682  ;;  %3757 = vmatprep.subr.bf16.mxu0 %v4649_v8  ;;  %v2799_v31 = vadd.f32 1.0, %v4681_v28  ;;  %v2806_v0 = vmul.f32 0.5, %v2798_v27 }
 0xa7b   : > { %v2801_v34 = vadd.f32 1.0, %v4683_v22  ;;  %v2808_v35 = vmul.f32 0.5, %v2800_v15 }
 0xa7c   : > { %3717 = vmatpush1.bf16.msra.mxu1 %v4644_v23  ;;  %v2807_v37 = vmul.f32 0.5, %v2799_v31  ;;  %v2814_v41 = vmul.f32 %v2806_v0, %v6018_v29  ;;  %v2954_v29 = vld [vmem:[%s6160_s12] sm:$0x3] }
 0xa7d   : > { %3758 = vmatpush1.bf16.msra.mxu0 %v4647_v21  ;;  %3718 = vmatprep.subr.bf16.mxu1 %v4652_v7  ;;  %v2809_v40 = vmul.f32 0.5, %v2801_v34  ;;  %v2816_v26 = vmul.f32 %v2808_v35, %v6020_v30  ;;  %v2963_v30 = vrot.slane %v2954_v29, %v5003_v16 }
 0xa7e   : > { %3759 = vmatprep.subr.bf16.mxu0 %v4655_v43  ;;  %v2815_v38 = vmul.f32 %v2807_v37, %v6028_v32  ;;  %v2950_v46 = vpack.c.bf16 %v2814_v41, %v2814_v41  ;;  %v2959_v32 = vrot.slane %v2954_v29, %v5006_v17 }
 0xa7f   : > { %v2817_v42 = vmul.f32 %v2809_v40, %v6030_v33  ;;  %v2952_v47 = vpack.c.bf16 %v2816_v26, %v2816_v26 }
 0xa80   : > { %3719 = vmatpush1.bf16.msra.mxu1 %v4650_v36  ;;  %v2951_v44 = vpack.c.bf16 %v2815_v38, %v2815_v38 }
 0xa81   : > { %3760 = vmatpush1.bf16.msra.mxu0 %v4653_v39  ;;  %v2953_v45 = vpack.c.bf16 %v2817_v42, %v2817_v42 }
 0xa82   : > { %3720 = vmatprep.mubr.bf16.mxu1 %v2951_v44 }
 0xa83   : > { %3761 = vmatprep.mubr.bf16.mxu0 %v2953_v45  ;;  %3721 = vmatmul.mubr.bf16.vlgmr.msra.gmra.mrb[36].mxu1 %v2950_v46 }
 0xa84   : > { %3762 = vmatmul.mubr.bf16.vlgmr.msra.gmra.mrb[24].mxu0 %v2952_v47 }
 0xb16   : > { %v3640_v13 = vpop.f32.mrb[32].mxu1 }
 0xb17   : > { %v3641_v33 = vadd.f32 %v3640_v13, %v2959_v32  ;;  %v3681_v48 = vpop.f32.mrb[20].mxu0  ;;  %v3642_v49 = vpop.f32.mrb[33].mxu1 }
 0xb18   : > { %v3643_v50 = vadd.f32 %v3642_v49, %v2963_v30  ;;  %v3683_v51 = vpop.f32.mrb[21].mxu0  ;;  %v3644_v52 = vpop.f32.mrb[34].mxu1 }
 0xb19   : > { %v3682_v53 = vadd.f32 %v3681_v48, %v3641_v33  ;;  %v3685_v54 = vpop.f32.mrb[22].mxu0  ;;  %v3645_v55 = vpop.f32.mrb[35].mxu1 }
 0xb1a   : > { %v3684_v56 = vadd.f32 %v3683_v51, %v3643_v50  ;;  %v3686_v57 = vpop.f32.mrb[23].mxu0 }
 0xb56   : > { %v3722_v58 = vpop.f32.mrb[36].mxu1 }
 0xb57   : > { %v3723_v1 = vadd.f32 %v3722_v58, %v3682_v53  ;;  %v3763_v61 = vpop.f32.mrb[24].mxu0  ;;  %v3724_v62 = vpop.f32.mrb[37].mxu1 }
 0xb58   : > { %v3725_v17 = vadd.f32 %v3724_v62, %v3684_v56  ;;  %v3765_v63 = vpop.f32.mrb[25].mxu0  ;;  %v3726_v16 = vpop.f32.mrb[38].mxu1 }
 0xb59   : > { %v3764_v3 = vadd.f32 %v3763_v61, %v3723_v1  ;;  %v3767_v4 = vpop.f32.mrb[26].mxu0  ;;  %v3727_v6 = vpop.f32.mrb[39].mxu1 }
 0xb5a   : > { %v3766_v5 = vadd.f32 %v3765_v63, %v3725_v17  ;;  %v3768_v9 = vpop.f32.mrb[27].mxu0 }
 0xb5b   : > { %v3770_v10 = vadd.f32 %v3764_v3, %v5278_v24 }
 0xb5c   : > { %v3771_v11 = vadd.f32 %v3766_v5, %v5280_v25 }
 0xb5d   : > { %3772 = vst [vmem:[%s440_s22] sm:$0xff] %v3770_v10 }
 0xb5e   : > { %3773 = vst [vmem:[%s440_s22 + $0x8] sm:$0xff] %v3771_v11 }
 0xb5f PF: > { %s23_s25 = sadd.s32 1, %s4692_s25  }
 0xb60   : > { %p20_p4 = scmp.ge.s32.totalorder %s23_s25, 4  }
 0xb62   :  { %22 = sbr.rel (!%p20_p4) target bundleno = 1 (0x1), region = 102 }

</bundles_post_ra>
